<compile_context>
chip_gen: v7x
topology: tpu7x:2x2x1
jax: 0.10.0
libtpu: 0.0.40
codegen_flags: <defaults>
</compile_context>

<pallas_src>
import jax
import jax.numpy as jnp
from jax import lax
from jax.experimental import pallas as pl
from jax.experimental.pallas import tpu as pltpu


def _rep_dwconv_kernel(xp_ref, w_ref, b_ref, o_ref):
    """Fused re-parameterized depthwise conv (+ folded BN affine).

    xp_ref: (Bt, H+2p, W+2p, Ct)  spatially pre-padded input, channels-last
    w_ref : (K*K, Ct)             per-channel taps (BN scale folded, branches summed)
    b_ref : (1, Ct)               per-channel bias (BN shifts, branches summed)
    o_ref : (Bt, H, W, Ct)
    """
    bt, hh, ww, c = o_ref.shape
    hp = xp_ref.shape[1]
    k = hp - hh + 1  # kernel size (static)

    # Start the accumulator at the folded bias -> saves one full-tile add.
    acc = jnp.broadcast_to(b_ref[0, :].astype(jnp.float32), (bt, hh, ww, c))

    # Statically unrolled shift-and-MAC over the K*K taps (pure VPU work;
    # depthwise conv has no useful MXU mapping).
    for dy in range(k):
        for dx in range(k):
            tap = w_ref[dy * k + dx, :].astype(jnp.float32)            # (Ct,)
            xs = xp_ref[:, dy:dy + hh, dx:dx + ww, :].astype(jnp.float32)
            acc = acc + xs * tap

    o_ref[...] = acc.astype(o_ref.dtype)


def rep_convs(x, w_fused, b_fused, kernel_size):
    """x: (B, C, H, W) NCHW.  w_fused: (K, K, C).  b_fused: (C,)."""
    B, C, H, W = x.shape
    K = int(kernel_size)
    assert K % 2 == 1, "Rep_Convs assumes odd kernel sizes (padding = K // 2)"
    p = K // 2
    Hp, Wp = H + 2 * p, W + 2 * p
    itemsize = jnp.dtype(x.dtype).itemsize

    # NCHW -> NHWC (channels on the lane axis) and zero-pad the spatial dims.
    x_nhwc = jnp.transpose(x, (0, 2, 3, 1))
    x_pad = jnp.pad(x_nhwc, ((0, 0), (p, p), (p, p), (0, 0)))

    # ---- tile-size selection -------------------------------------------
    slab_budget = 2 << 20  # ~2 MiB input slab per grid step (double-buffered
    #                        in+out + f32 acc stays far below 32 MiB VMEM)

    # Channel tile: keep full C unless a single padded image slab is too big
    # and C splits into lane-dense (multiple-of-128) chunks.
    ct = C
    if C % 128 == 0 and Hp * Wp * C * itemsize > slab_budget:
        cand = [d for d in range(128, C, 128) if C % d == 0]
        fitting = [d for d in cand if Hp * Wp * d * itemsize <= slab_budget]
        if fitting:
            ct = max(fitting)
        elif cand:
            ct = min(cand)

    # Batch tile: as many images as fit the slab budget; keep >= 2 grid steps
    # when possible so both TensorCores (v7x megacore) get work.
    img_bytes = Hp * Wp * ct * itemsize
    bt = max(1, min(B, slab_budget // max(1, img_bytes)))
    if C // ct == 1:
        bt = min(bt, max(1, B // 2))
    while B % bt:
        bt -= 1
    grid = (B // bt, C // ct)

    w2 = w_fused.reshape(K * K, C)
    b2 = b_fused.reshape(1, C)

    out_nhwc = pl.pallas_call(
        _rep_dwconv_kernel,
        out_shape=jax.ShapeDtypeStruct((B, H, W, C), x.dtype),
        grid_spec=pltpu.PrefetchScalarGridSpec(
            num_scalar_prefetch=0,
            grid=grid,
            in_specs=[
                pl.BlockSpec((bt, Hp, Wp, ct), lambda i, j: (i, 0, 0, j)),
                # constant batch index -> weights/bias stay resident in VMEM
                pl.BlockSpec((K * K, ct), lambda i, j: (0, j)),
                pl.BlockSpec((1, ct), lambda i, j: (0, j)),
            ],
            out_specs=pl.BlockSpec((bt, H, W, ct), lambda i, j: (i, 0, 0, j)),
        ),
        compiler_params=pltpu.CompilerParams(
            dimension_semantics=("parallel", "parallel"),
            vmem_limit_bytes=32 << 20,
        ),
    )(x_pad, w2, b2)

    return jnp.transpose(out_nhwc, (0, 3, 1, 2))  # back to NCHW


def fuse_rep_convs(branches, k_large, eps):
    """Fold per-branch Conv+BN (running stats) and merge branches into a
    single depthwise kernel of size k_large, exactly like convert_to_deploy."""
    C = branches[0][1]["w"].shape[0]
    w_fused = jnp.zeros((k_large, k_large, C), jnp.float32)
    b_fused = jnp.zeros((C,), jnp.float32)
    for k, prm in branches:
        scale = prm["gamma"] / jnp.sqrt(prm["var"] + eps)            # (C,)
        wk = prm["w"][:, 0] * scale[:, None, None]                   # (C, k, k)
        bk = prm["beta"] - prm["mean"] * scale                       # (C,)
        pad = (k_large - k) // 2
        wk = jnp.pad(wk, ((0, 0), (pad, pad), (pad, pad)))
        w_fused = w_fused + jnp.transpose(wk, (1, 2, 0))             # (K, K, C)
        b_fused = b_fused + bk
    return w_fused, b_fused


if __name__ == "__main__":
    B, C, H, W = 2, 128, 16, 16         # C = 128 -> lane-dense channels-last
    K_LARGE = 5
    SMALL_KERNELS = (3,)
    EPS = 1e-5

    key = jax.random.PRNGKey(0)
    keys = jax.random.split(key, 1 + 5 * (1 + len(SMALL_KERNELS)))

    x = jax.random.normal(keys[0], (B, C, H, W), dtype=jnp.float32)

    def make_branch(k, kw, kg, kb, km, kv):
        return {
            "w": jax.random.normal(kw, (C, 1, k, k), dtype=jnp.float32) * 0.1,
            "gamma": 1.0 + 0.1 * jax.random.normal(kg, (C,), dtype=jnp.float32),
            "beta": 0.1 * jax.random.normal(kb, (C,), dtype=jnp.float32),
            "mean": 0.1 * jax.random.normal(km, (C,), dtype=jnp.float32),
            "var": jax.random.uniform(kv, (C,), minval=0.5, maxval=1.5,
                                      dtype=jnp.float32),
        }

    branches = []
    idx = 1
    for k in [K_LARGE] + list(SMALL_KERNELS):
        branches.append((k, make_branch(k, *keys[idx:idx + 5])))
        idx += 5

    # --- Pallas kernel path (BN folded, branches merged) ---
    w_fused, b_fused = fuse_rep_convs(branches, K_LARGE, EPS)
    out = rep_convs(x, w_fused, b_fused, K_LARGE)
    jax.block_until_ready(out)

    # --- reference: per-branch depthwise conv + eval-mode BN, summed ---
    def conv_bn_ref(x, k, prm):
        y = lax.conv_general_dilated(
            x, prm["w"], window_strides=(1, 1),
            padding=[(k // 2, k // 2), (k // 2, k // 2)],
            dimension_numbers=("NCHW", "OIHW", "NCHW"),
            feature_group_count=C)
        scale = (prm["gamma"] / jnp.sqrt(prm["var"] + EPS))[None, :, None, None]
        return (y - prm["mean"][None, :, None, None]) * scale \
            + prm["beta"][None, :, None, None]

    ref = None
    for k, prm in branches:
        r = conv_bn_ref(x, k, prm)
        ref = r if ref is None else ref + r

    assert jnp.allclose(out, ref, atol=1e-4, rtol=1e-4), "mismatch vs reference"
    print("KERNEL_OK")
</pallas_src>

<mosaic_0001>
module attributes {stable_mosaic.version = 11 : i64} {
  func.func @_rep_dwconv_kernel(%arg0: i32, %arg1: i32, %arg2: memref<1x20x20x128xf32, #tpu.memory_space<vmem>>, %arg3: memref<25x128xf32, #tpu.memory_space<vmem>>, %arg4: memref<1x128xf32, #tpu.memory_space<vmem>>, %arg5: memref<1x16x16x128xf32, #tpu.memory_space<vmem>>) attributes {dimension_semantics = [#tpu.dimension_semantics<parallel>, #tpu.dimension_semantics<parallel>], iteration_bounds = array<i64: 2, 1>, scalar_prefetch = 0 : i64, scratch_operands = 0 : i64, tpu.core_type = #tpu.core_type<tc>, window_params = [{transform_indices = @transform_0, window_bounds = array<i64: 1, 20, 20, 128>}, {transform_indices = @transform_1, window_bounds = array<i64: 25, 128>}, {transform_indices = @transform_2, window_bounds = array<i64: 1, 128>}, {transform_indices = @transform_3, window_bounds = array<i64: 1, 16, 16, 128>}]} {
    %c0 = arith.constant 0 : index
    %c0_0 = arith.constant 0 : index
    %0 = vector.load %arg4[%c0, %c0_0] : memref<1x128xf32, #tpu.memory_space<vmem>>, vector<1x128xf32>
    %1 = vector.shape_cast %0 : vector<1x128xf32> to vector<128xf32>
    %2 = vector.shape_cast %1 : vector<128xf32> to vector<1x1x1x128xf32>
    %3 = vector.broadcast %2 : vector<1x1x1x128xf32> to vector<1x16x16x128xf32>
    %c0_1 = arith.constant 0 : index
    %c0_2 = arith.constant 0 : index
    %4 = vector.load %arg3[%c0_1, %c0_2] : memref<25x128xf32, #tpu.memory_space<vmem>>, vector<1x128xf32>
    %5 = vector.shape_cast %4 : vector<1x128xf32> to vector<128xf32>
    %c0_3 = arith.constant 0 : index
    %c0_4 = arith.constant 0 : index
    %c0_5 = arith.constant 0 : index
    %c0_6 = arith.constant 0 : index
    %6 = vector.load %arg2[%c0_3, %c0_4, %c0_5, %c0_6] : memref<1x20x20x128xf32, #tpu.memory_space<vmem>>, vector<1x16x16x128xf32>
    %7 = vector.shape_cast %5 : vector<128xf32> to vector<1x1x1x128xf32>
    %8 = vector.broadcast %7 : vector<1x1x1x128xf32> to vector<1x16x16x128xf32>
    %9 = arith.mulf %6, %8 : vector<1x16x16x128xf32>
    %10 = arith.addf %3, %9 : vector<1x16x16x128xf32>
    %c1 = arith.constant 1 : index
    %c0_7 = arith.constant 0 : index
    %11 = vector.load %arg3[%c1, %c0_7] : memref<25x128xf32, #tpu.memory_space<vmem>>, vector<1x128xf32>
    %12 = vector.shape_cast %11 : vector<1x128xf32> to vector<128xf32>
    %c0_8 = arith.constant 0 : index
    %c0_9 = arith.constant 0 : index
    %c1_10 = arith.constant 1 : index
    %c0_11 = arith.constant 0 : index
    %13 = vector.load %arg2[%c0_8, %c0_9, %c1_10, %c0_11] : memref<1x20x20x128xf32, #tpu.memory_space<vmem>>, vector<1x16x16x128xf32>
    %14 = vector.shape_cast %12 : vector<128xf32> to vector<1x1x1x128xf32>
    %15 = vector.broadcast %14 : vector<1x1x1x128xf32> to vector<1x16x16x128xf32>
    %16 = arith.mulf %13, %15 : vector<1x16x16x128xf32>
    %17 = arith.addf %10, %16 : vector<1x16x16x128xf32>
    %c2 = arith.constant 2 : index
    %c0_12 = arith.constant 0 : index
    %18 = vector.load %arg3[%c2, %c0_12] : memref<25x128xf32, #tpu.memory_space<vmem>>, vector<1x128xf32>
    %19 = vector.shape_cast %18 : vector<1x128xf32> to vector<128xf32>
    %c0_13 = arith.constant 0 : index
    %c0_14 = arith.constant 0 : index
    %c2_15 = arith.constant 2 : index
    %c0_16 = arith.constant 0 : index
    %20 = vector.load %arg2[%c0_13, %c0_14, %c2_15, %c0_16] : memref<1x20x20x128xf32, #tpu.memory_space<vmem>>, vector<1x16x16x128xf32>
    %21 = vector.shape_cast %19 : vector<128xf32> to vector<1x1x1x128xf32>
    %22 = vector.broadcast %21 : vector<1x1x1x128xf32> to vector<1x16x16x128xf32>
    %23 = arith.mulf %20, %22 : vector<1x16x16x128xf32>
    %24 = arith.addf %17, %23 : vector<1x16x16x128xf32>
    %c3 = arith.constant 3 : index
    %c0_17 = arith.constant 0 : index
    %25 = vector.load %arg3[%c3, %c0_17] : memref<25x128xf32, #tpu.memory_space<vmem>>, vector<1x128xf32>
    %26 = vector.shape_cast %25 : vector<1x128xf32> to vector<128xf32>
    %c0_18 = arith.constant 0 : index
    %c0_19 = arith.constant 0 : index
    %c3_20 = arith.constant 3 : index
    %c0_21 = arith.constant 0 : index
    %27 = vector.load %arg2[%c0_18, %c0_19, %c3_20, %c0_21] : memref<1x20x20x128xf32, #tpu.memory_space<vmem>>, vector<1x16x16x128xf32>
    %28 = vector.shape_cast %26 : vector<128xf32> to vector<1x1x1x128xf32>
    %29 = vector.broadcast %28 : vector<1x1x1x128xf32> to vector<1x16x16x128xf32>
    %30 = arith.mulf %27, %29 : vector<1x16x16x128xf32>
    %31 = arith.addf %24, %30 : vector<1x16x16x128xf32>
    %c4 = arith.constant 4 : index
    %c0_22 = arith.constant 0 : index
    %32 = vector.load %arg3[%c4, %c0_22] : memref<25x128xf32, #tpu.memory_space<vmem>>, vector<1x128xf32>
    %33 = vector.shape_cast %32 : vector<1x128xf32> to vector<128xf32>
    %c0_23 = arith.constant 0 : index
    %c0_24 = arith.constant 0 : index
    %c4_25 = arith.constant 4 : index
    %c0_26 = arith.constant 0 : index
    %34 = vector.load %arg2[%c0_23, %c0_24, %c4_25, %c0_26] : memref<1x20x20x128xf32, #tpu.memory_space<vmem>>, vector<1x16x16x128xf32>
    %35 = vector.shape_cast %33 : vector<128xf32> to vector<1x1x1x128xf32>
    %36 = vector.broadcast %35 : vector<1x1x1x128xf32> to vector<1x16x16x128xf32>
    %37 = arith.mulf %34, %36 : vector<1x16x16x128xf32>
    %38 = arith.addf %31, %37 : vector<1x16x16x128xf32>
    %c5 = arith.constant 5 : index
    %c0_27 = arith.constant 0 : index
    %39 = vector.load %arg3[%c5, %c0_27] : memref<25x128xf32, #tpu.memory_space<vmem>>, vector<1x128xf32>
    %40 = vector.shape_cast %39 : vector<1x128xf32> to vector<128xf32>
    %c0_28 = arith.constant 0 : index
    %c1_29 = arith.constant 1 : index
    %c0_30 = arith.constant 0 : index
    %c0_31 = arith.constant 0 : index
    %41 = vector.load %arg2[%c0_28, %c1_29, %c0_30, %c0_31] : memref<1x20x20x128xf32, #tpu.memory_space<vmem>>, vector<1x16x16x128xf32>
    %42 = vector.shape_cast %40 : vector<128xf32> to vector<1x1x1x128xf32>
    %43 = vector.broadcast %42 : vector<1x1x1x128xf32> to vector<1x16x16x128xf32>
    %44 = arith.mulf %41, %43 : vector<1x16x16x128xf32>
    %45 = arith.addf %38, %44 : vector<1x16x16x128xf32>
    %c6 = arith.constant 6 : index
    %c0_32 = arith.constant 0 : index
    %46 = vector.load %arg3[%c6, %c0_32] : memref<25x128xf32, #tpu.memory_space<vmem>>, vector<1x128xf32>
    %47 = vector.shape_cast %46 : vector<1x128xf32> to vector<128xf32>
    %c0_33 = arith.constant 0 : index
    %c1_34 = arith.constant 1 : index
    %c1_35 = arith.constant 1 : index
    %c0_36 = arith.constant 0 : index
    %48 = vector.load %arg2[%c0_33, %c1_34, %c1_35, %c0_36] : memref<1x20x20x128xf32, #tpu.memory_space<vmem>>, vector<1x16x16x128xf32>
    %49 = vector.shape_cast %47 : vector<128xf32> to vector<1x1x1x128xf32>
    %50 = vector.broadcast %49 : vector<1x1x1x128xf32> to vector<1x16x16x128xf32>
    %51 = arith.mulf %48, %50 : vector<1x16x16x128xf32>
    %52 = arith.addf %45, %51 : vector<1x16x16x128xf32>
    %c7 = arith.constant 7 : index
    %c0_37 = arith.constant 0 : index
    %53 = vector.load %arg3[%c7, %c0_37] : memref<25x128xf32, #tpu.memory_space<vmem>>, vector<1x128xf32>
    %54 = vector.shape_cast %53 : vector<1x128xf32> to vector<128xf32>
    %c0_38 = arith.constant 0 : index
    %c1_39 = arith.constant 1 : index
    %c2_40 = arith.constant 2 : index
    %c0_41 = arith.constant 0 : index
    %55 = vector.load %arg2[%c0_38, %c1_39, %c2_40, %c0_41] : memref<1x20x20x128xf32, #tpu.memory_space<vmem>>, vector<1x16x16x128xf32>
    %56 = vector.shape_cast %54 : vector<128xf32> to vector<1x1x1x128xf32>
    %57 = vector.broadcast %56 : vector<1x1x1x128xf32> to vector<1x16x16x128xf32>
    %58 = arith.mulf %55, %57 : vector<1x16x16x128xf32>
    %59 = arith.addf %52, %58 : vector<1x16x16x128xf32>
    %c8 = arith.constant 8 : index
    %c0_42 = arith.constant 0 : index
    %60 = vector.load %arg3[%c8, %c0_42] : memref<25x128xf32, #tpu.memory_space<vmem>>, vector<1x128xf32>
    %61 = vector.shape_cast %60 : vector<1x128xf32> to vector<128xf32>
    %c0_43 = arith.constant 0 : index
    %c1_44 = arith.constant 1 : index
    %c3_45 = arith.constant 3 : index
    %c0_46 = arith.constant 0 : index
    %62 = vector.load %arg2[%c0_43, %c1_44, %c3_45, %c0_46] : memref<1x20x20x128xf32, #tpu.memory_space<vmem>>, vector<1x16x16x128xf32>
    %63 = vector.shape_cast %61 : vector<128xf32> to vector<1x1x1x128xf32>
    %64 = vector.broadcast %63 : vector<1x1x1x128xf32> to vector<1x16x16x128xf32>
    %65 = arith.mulf %62, %64 : vector<1x16x16x128xf32>
    %66 = arith.addf %59, %65 : vector<1x16x16x128xf32>
    %c9 = arith.constant 9 : index
    %c0_47 = arith.constant 0 : index
    %67 = vector.load %arg3[%c9, %c0_47] : memref<25x128xf32, #tpu.memory_space<vmem>>, vector<1x128xf32>
    %68 = vector.shape_cast %67 : vector<1x128xf32> to vector<128xf32>
    %c0_48 = arith.constant 0 : index
    %c1_49 = arith.constant 1 : index
    %c4_50 = arith.constant 4 : index
    %c0_51 = arith.constant 0 : index
    %69 = vector.load %arg2[%c0_48, %c1_49, %c4_50, %c0_51] : memref<1x20x20x128xf32, #tpu.memory_space<vmem>>, vector<1x16x16x128xf32>
    %70 = vector.shape_cast %68 : vector<128xf32> to vector<1x1x1x128xf32>
    %71 = vector.broadcast %70 : vector<1x1x1x128xf32> to vector<1x16x16x128xf32>
    %72 = arith.mulf %69, %71 : vector<1x16x16x128xf32>
    %73 = arith.addf %66, %72 : vector<1x16x16x128xf32>
    %c10 = arith.constant 10 : index
    %c0_52 = arith.constant 0 : index
    %74 = vector.load %arg3[%c10, %c0_52] : memref<25x128xf32, #tpu.memory_space<vmem>>, vector<1x128xf32>
    %75 = vector.shape_cast %74 : vector<1x128xf32> to vector<128xf32>
    %c0_53 = arith.constant 0 : index
    %c2_54 = arith.constant 2 : index
    %c0_55 = arith.constant 0 : index
    %c0_56 = arith.constant 0 : index
    %76 = vector.load %arg2[%c0_53, %c2_54, %c0_55, %c0_56] : memref<1x20x20x128xf32, #tpu.memory_space<vmem>>, vector<1x16x16x128xf32>
    %77 = vector.shape_cast %75 : vector<128xf32> to vector<1x1x1x128xf32>
    %78 = vector.broadcast %77 : vector<1x1x1x128xf32> to vector<1x16x16x128xf32>
    %79 = arith.mulf %76, %78 : vector<1x16x16x128xf32>
    %80 = arith.addf %73, %79 : vector<1x16x16x128xf32>
    %c11 = arith.constant 11 : index
    %c0_57 = arith.constant 0 : index
    %81 = vector.load %arg3[%c11, %c0_57] : memref<25x128xf32, #tpu.memory_space<vmem>>, vector<1x128xf32>
    %82 = vector.shape_cast %81 : vector<1x128xf32> to vector<128xf32>
    %c0_58 = arith.constant 0 : index
    %c2_59 = arith.constant 2 : index
    %c1_60 = arith.constant 1 : index
    %c0_61 = arith.constant 0 : index
    %83 = vector.load %arg2[%c0_58, %c2_59, %c1_60, %c0_61] : memref<1x20x20x128xf32, #tpu.memory_space<vmem>>, vector<1x16x16x128xf32>
    %84 = vector.shape_cast %82 : vector<128xf32> to vector<1x1x1x128xf32>
    %85 = vector.broadcast %84 : vector<1x1x1x128xf32> to vector<1x16x16x128xf32>
    %86 = arith.mulf %83, %85 : vector<1x16x16x128xf32>
    %87 = arith.addf %80, %86 : vector<1x16x16x128xf32>
    %c12 = arith.constant 12 : index
    %c0_62 = arith.constant 0 : index
    %88 = vector.load %arg3[%c12, %c0_62] : memref<25x128xf32, #tpu.memory_space<vmem>>, vector<1x128xf32>
    %89 = vector.shape_cast %88 : vector<1x128xf32> to vector<128xf32>
    %c0_63 = arith.constant 0 : index
    %c2_64 = arith.constant 2 : index
    %c2_65 = arith.constant 2 : index
    %c0_66 = arith.constant 0 : index
    %90 = vector.load %arg2[%c0_63, %c2_64, %c2_65, %c0_66] : memref<1x20x20x128xf32, #tpu.memory_space<vmem>>, vector<1x16x16x128xf32>
    %91 = vector.shape_cast %89 : vector<128xf32> to vector<1x1x1x128xf32>
    %92 = vector.broadcast %91 : vector<1x1x1x128xf32> to vector<1x16x16x128xf32>
    %93 = arith.mulf %90, %92 : vector<1x16x16x128xf32>
    %94 = arith.addf %87, %93 : vector<1x16x16x128xf32>
    %c13 = arith.constant 13 : index
    %c0_67 = arith.constant 0 : index
    %95 = vector.load %arg3[%c13, %c0_67] : memref<25x128xf32, #tpu.memory_space<vmem>>, vector<1x128xf32>
    %96 = vector.shape_cast %95 : vector<1x128xf32> to vector<128xf32>
    %c0_68 = arith.constant 0 : index
    %c2_69 = arith.constant 2 : index
    %c3_70 = arith.constant 3 : index
    %c0_71 = arith.constant 0 : index
    %97 = vector.load %arg2[%c0_68, %c2_69, %c3_70, %c0_71] : memref<1x20x20x128xf32, #tpu.memory_space<vmem>>, vector<1x16x16x128xf32>
    %98 = vector.shape_cast %96 : vector<128xf32> to vector<1x1x1x128xf32>
    %99 = vector.broadcast %98 : vector<1x1x1x128xf32> to vector<1x16x16x128xf32>
    %100 = arith.mulf %97, %99 : vector<1x16x16x128xf32>
    %101 = arith.addf %94, %100 : vector<1x16x16x128xf32>
    %c14 = arith.constant 14 : index
    %c0_72 = arith.constant 0 : index
    %102 = vector.load %arg3[%c14, %c0_72] : memref<25x128xf32, #tpu.memory_space<vmem>>, vector<1x128xf32>
    %103 = vector.shape_cast %102 : vector<1x128xf32> to vector<128xf32>
    %c0_73 = arith.constant 0 : index
    %c2_74 = arith.constant 2 : index
    %c4_75 = arith.constant 4 : index
    %c0_76 = arith.constant 0 : index
    %104 = vector.load %arg2[%c0_73, %c2_74, %c4_75, %c0_76] : memref<1x20x20x128xf32, #tpu.memory_space<vmem>>, vector<1x16x16x128xf32>
    %105 = vector.shape_cast %103 : vector<128xf32> to vector<1x1x1x128xf32>
    %106 = vector.broadcast %105 : vector<1x1x1x128xf32> to vector<1x16x16x128xf32>
    %107 = arith.mulf %104, %106 : vector<1x16x16x128xf32>
    %108 = arith.addf %101, %107 : vector<1x16x16x128xf32>
    %c15 = arith.constant 15 : index
    %c0_77 = arith.constant 0 : index
    %109 = vector.load %arg3[%c15, %c0_77] : memref<25x128xf32, #tpu.memory_space<vmem>>, vector<1x128xf32>
    %110 = vector.shape_cast %109 : vector<1x128xf32> to vector<128xf32>
    %c0_78 = arith.constant 0 : index
    %c3_79 = arith.constant 3 : index
    %c0_80 = arith.constant 0 : index
    %c0_81 = arith.constant 0 : index
    %111 = vector.load %arg2[%c0_78, %c3_79, %c0_80, %c0_81] : memref<1x20x20x128xf32, #tpu.memory_space<vmem>>, vector<1x16x16x128xf32>
    %112 = vector.shape_cast %110 : vector<128xf32> to vector<1x1x1x128xf32>
    %113 = vector.broadcast %112 : vector<1x1x1x128xf32> to vector<1x16x16x128xf32>
    %114 = arith.mulf %111, %113 : vector<1x16x16x128xf32>
    %115 = arith.addf %108, %114 : vector<1x16x16x128xf32>
    %c16 = arith.constant 16 : index
    %c0_82 = arith.constant 0 : index
    %116 = vector.load %arg3[%c16, %c0_82] : memref<25x128xf32, #tpu.memory_space<vmem>>, vector<1x128xf32>
    %117 = vector.shape_cast %116 : vector<1x128xf32> to vector<128xf32>
    %c0_83 = arith.constant 0 : index
    %c3_84 = arith.constant 3 : index
    %c1_85 = arith.constant 1 : index
    %c0_86 = arith.constant 0 : index
    %118 = vector.load %arg2[%c0_83, %c3_84, %c1_85, %c0_86] : memref<1x20x20x128xf32, #tpu.memory_space<vmem>>, vector<1x16x16x128xf32>
    %119 = vector.shape_cast %117 : vector<128xf32> to vector<1x1x1x128xf32>
    %120 = vector.broadcast %119 : vector<1x1x1x128xf32> to vector<1x16x16x128xf32>
    %121 = arith.mulf %118, %120 : vector<1x16x16x128xf32>
    %122 = arith.addf %115, %121 : vector<1x16x16x128xf32>
    %c17 = arith.constant 17 : index
    %c0_87 = arith.constant 0 : index
    %123 = vector.load %arg3[%c17, %c0_87] : memref<25x128xf32, #tpu.memory_space<vmem>>, vector<1x128xf32>
    %124 = vector.shape_cast %123 : vector<1x128xf32> to vector<128xf32>
    %c0_88 = arith.constant 0 : index
    %c3_89 = arith.constant 3 : index
    %c2_90 = arith.constant 2 : index
    %c0_91 = arith.constant 0 : index
    %125 = vector.load %arg2[%c0_88, %c3_89, %c2_90, %c0_91] : memref<1x20x20x128xf32, #tpu.memory_space<vmem>>, vector<1x16x16x128xf32>
    %126 = vector.shape_cast %124 : vector<128xf32> to vector<1x1x1x128xf32>
    %127 = vector.broadcast %126 : vector<1x1x1x128xf32> to vector<1x16x16x128xf32>
    %128 = arith.mulf %125, %127 : vector<1x16x16x128xf32>
    %129 = arith.addf %122, %128 : vector<1x16x16x128xf32>
    %c18 = arith.constant 18 : index
    %c0_92 = arith.constant 0 : index
    %130 = vector.load %arg3[%c18, %c0_92] : memref<25x128xf32, #tpu.memory_space<vmem>>, vector<1x128xf32>
    %131 = vector.shape_cast %130 : vector<1x128xf32> to vector<128xf32>
    %c0_93 = arith.constant 0 : index
    %c3_94 = arith.constant 3 : index
    %c3_95 = arith.constant 3 : index
    %c0_96 = arith.constant 0 : index
    %132 = vector.load %arg2[%c0_93, %c3_94, %c3_95, %c0_96] : memref<1x20x20x128xf32, #tpu.memory_space<vmem>>, vector<1x16x16x128xf32>
    %133 = vector.shape_cast %131 : vector<128xf32> to vector<1x1x1x128xf32>
    %134 = vector.broadcast %133 : vector<1x1x1x128xf32> to vector<1x16x16x128xf32>
    %135 = arith.mulf %132, %134 : vector<1x16x16x128xf32>
    %136 = arith.addf %129, %135 : vector<1x16x16x128xf32>
    %c19 = arith.constant 19 : index
    %c0_97 = arith.constant 0 : index
    %137 = vector.load %arg3[%c19, %c0_97] : memref<25x128xf32, #tpu.memory_space<vmem>>, vector<1x128xf32>
    %138 = vector.shape_cast %137 : vector<1x128xf32> to vector<128xf32>
    %c0_98 = arith.constant 0 : index
    %c3_99 = arith.constant 3 : index
    %c4_100 = arith.constant 4 : index
    %c0_101 = arith.constant 0 : index
    %139 = vector.load %arg2[%c0_98, %c3_99, %c4_100, %c0_101] : memref<1x20x20x128xf32, #tpu.memory_space<vmem>>, vector<1x16x16x128xf32>
    %140 = vector.shape_cast %138 : vector<128xf32> to vector<1x1x1x128xf32>
    %141 = vector.broadcast %140 : vector<1x1x1x128xf32> to vector<1x16x16x128xf32>
    %142 = arith.mulf %139, %141 : vector<1x16x16x128xf32>
    %143 = arith.addf %136, %142 : vector<1x16x16x128xf32>
    %c20 = arith.constant 20 : index
    %c0_102 = arith.constant 0 : index
    %144 = vector.load %arg3[%c20, %c0_102] : memref<25x128xf32, #tpu.memory_space<vmem>>, vector<1x128xf32>
    %145 = vector.shape_cast %144 : vector<1x128xf32> to vector<128xf32>
    %c0_103 = arith.constant 0 : index
    %c4_104 = arith.constant 4 : index
    %c0_105 = arith.constant 0 : index
    %c0_106 = arith.constant 0 : index
    %146 = vector.load %arg2[%c0_103, %c4_104, %c0_105, %c0_106] : memref<1x20x20x128xf32, #tpu.memory_space<vmem>>, vector<1x16x16x128xf32>
    %147 = vector.shape_cast %145 : vector<128xf32> to vector<1x1x1x128xf32>
    %148 = vector.broadcast %147 : vector<1x1x1x128xf32> to vector<1x16x16x128xf32>
    %149 = arith.mulf %146, %148 : vector<1x16x16x128xf32>
    %150 = arith.addf %143, %149 : vector<1x16x16x128xf32>
    %c21 = arith.constant 21 : index
    %c0_107 = arith.constant 0 : index
    %151 = vector.load %arg3[%c21, %c0_107] : memref<25x128xf32, #tpu.memory_space<vmem>>, vector<1x128xf32>
    %152 = vector.shape_cast %151 : vector<1x128xf32> to vector<128xf32>
    %c0_108 = arith.constant 0 : index
    %c4_109 = arith.constant 4 : index
    %c1_110 = arith.constant 1 : index
    %c0_111 = arith.constant 0 : index
    %153 = vector.load %arg2[%c0_108, %c4_109, %c1_110, %c0_111] : memref<1x20x20x128xf32, #tpu.memory_space<vmem>>, vector<1x16x16x128xf32>
    %154 = vector.shape_cast %152 : vector<128xf32> to vector<1x1x1x128xf32>
    %155 = vector.broadcast %154 : vector<1x1x1x128xf32> to vector<1x16x16x128xf32>
    %156 = arith.mulf %153, %155 : vector<1x16x16x128xf32>
    %157 = arith.addf %150, %156 : vector<1x16x16x128xf32>
    %c22 = arith.constant 22 : index
    %c0_112 = arith.constant 0 : index
    %158 = vector.load %arg3[%c22, %c0_112] : memref<25x128xf32, #tpu.memory_space<vmem>>, vector<1x128xf32>
    %159 = vector.shape_cast %158 : vector<1x128xf32> to vector<128xf32>
    %c0_113 = arith.constant 0 : index
    %c4_114 = arith.constant 4 : index
    %c2_115 = arith.constant 2 : index
    %c0_116 = arith.constant 0 : index
    %160 = vector.load %arg2[%c0_113, %c4_114, %c2_115, %c0_116] : memref<1x20x20x128xf32, #tpu.memory_space<vmem>>, vector<1x16x16x128xf32>
    %161 = vector.shape_cast %159 : vector<128xf32> to vector<1x1x1x128xf32>
    %162 = vector.broadcast %161 : vector<1x1x1x128xf32> to vector<1x16x16x128xf32>
    %163 = arith.mulf %160, %162 : vector<1x16x16x128xf32>
    %164 = arith.addf %157, %163 : vector<1x16x16x128xf32>
    %c23 = arith.constant 23 : index
    %c0_117 = arith.constant 0 : index
    %165 = vector.load %arg3[%c23, %c0_117] : memref<25x128xf32, #tpu.memory_space<vmem>>, vector<1x128xf32>
    %166 = vector.shape_cast %165 : vector<1x128xf32> to vector<128xf32>
    %c0_118 = arith.constant 0 : index
    %c4_119 = arith.constant 4 : index
    %c3_120 = arith.constant 3 : index
    %c0_121 = arith.constant 0 : index
    %167 = vector.load %arg2[%c0_118, %c4_119, %c3_120, %c0_121] : memref<1x20x20x128xf32, #tpu.memory_space<vmem>>, vector<1x16x16x128xf32>
    %168 = vector.shape_cast %166 : vector<128xf32> to vector<1x1x1x128xf32>
    %169 = vector.broadcast %168 : vector<1x1x1x128xf32> to vector<1x16x16x128xf32>
    %170 = arith.mulf %167, %169 : vector<1x16x16x128xf32>
    %171 = arith.addf %164, %170 : vector<1x16x16x128xf32>
    %c24 = arith.constant 24 : index
    %c0_122 = arith.constant 0 : index
    %172 = vector.load %arg3[%c24, %c0_122] : memref<25x128xf32, #tpu.memory_space<vmem>>, vector<1x128xf32>
    %173 = vector.shape_cast %172 : vector<1x128xf32> to vector<128xf32>
    %c0_123 = arith.constant 0 : index
    %c4_124 = arith.constant 4 : index
    %c4_125 = arith.constant 4 : index
    %c0_126 = arith.constant 0 : index
    %174 = vector.load %arg2[%c0_123, %c4_124, %c4_125, %c0_126] : memref<1x20x20x128xf32, #tpu.memory_space<vmem>>, vector<1x16x16x128xf32>
    %175 = vector.shape_cast %173 : vector<128xf32> to vector<1x1x1x128xf32>
    %176 = vector.broadcast %175 : vector<1x1x1x128xf32> to vector<1x16x16x128xf32>
    %177 = arith.mulf %174, %176 : vector<1x16x16x128xf32>
    %178 = arith.addf %171, %177 : vector<1x16x16x128xf32>
    %c0_127 = arith.constant 0 : index
    %c0_128 = arith.constant 0 : index
    %c0_129 = arith.constant 0 : index
    %c0_130 = arith.constant 0 : index
    %179 = vector.load %arg5[%c0_127, %c0_128, %c0_129, %c0_130] : memref<1x16x16x128xf32, #tpu.memory_space<vmem>>, vector<1x16x16x128xf32>
    tpu.vector_store %arg5[%c0_127, %c0_128, %c0_129, %c0_130], %178 {strides = array<i32>} : memref<1x16x16x128xf32, #tpu.memory_space<vmem>>, vector<1x16x16x128xf32>,
    return
  }
  func.func @transform_0(%arg0: i32, %arg1: i32) -> (i32, i32, i32, i32) {
    %c0_i32 = arith.constant 0 : i32
    %c0_i32_0 = arith.constant 0 : i32
    %c0_i32_1 = arith.constant 0 : i32
    return %arg0, %c0_i32, %c0_i32_0, %arg1 : i32, i32, i32, i32
  }
  func.func @transform_1(%arg0: i32, %arg1: i32) -> (i32, i32) {
    %c0_i32 = arith.constant 0 : i32
    %c0_i32_0 = arith.constant 0 : i32
    return %c0_i32, %arg1 : i32, i32
  }
  func.func @transform_2(%arg0: i32, %arg1: i32) -> (i32, i32) {
    %c0_i32 = arith.constant 0 : i32
    %c0_i32_0 = arith.constant 0 : i32
    return %c0_i32, %arg1 : i32, i32
  }
  func.func @transform_3(%arg0: i32, %arg1: i32) -> (i32, i32, i32, i32) {
    %c0_i32 = arith.constant 0 : i32
    %c0_i32_0 = arith.constant 0 : i32
    %c0_i32_1 = arith.constant 0 : i32
    return %arg0, %c0_i32, %c0_i32_0, %arg1 : i32, i32, i32, i32
  }
}

</mosaic_0001>

<bundles_post_ra>
// kernel: tpu_custom_call.1
= control target key start
LH: loop header
LB: loop body
LE: loop exit
PB: predicated region body
PF: predicated region fallthrough
CT: control target
= control target key end

     0   :  { %8 = vsyncpa [#allocation3], 0  ;;  %s8627_s0 = inlined_call_operand.vmem [shape: f32[2,20,20,128], index: 0, kind: input, shape index: {}]   ;;  %s8628_s1 = inlined_call_operand.vmem [shape: f32[25,128], index: 1, kind: input, shape index: {}]   ;;  %s8629_s2 = inlined_call_operand.vmem [shape: f32[1,128], index: 2, kind: input, shape index: {}]   ;;  %s8630_s3 = inlined_call_operand.hbm [shape: f32[2,16,16,128], index: 3, kind: output, shape index: {}]  }
   0x1   :  { %10 = vsyncpa [#allocation3 + $0x1], 0  ;;  %s3756_s12 = smov 0   ;;  %s3758_s13 = smov 0  }
   0x2   :  { %s3760_s14 = smov 0   ;;  %s3762_s15 = smov 0  }
   0x3   :  { %s3764_s16 = smov 0   ;;  %s3766_s17 = smov 0  }
   0x4 LB: > { %s2913_s18 = sadd.s32 4294967295, %s3731_s17   ;;  %s2914_s19 = sadd.s32 4294967294, %s3731_s17   ;;  %s3731_s17 = sphi %s3766_s17, %s16_s17   ;;  %s3727_s16 = sphi %s3764_s16, %s10063_s16   ;;  %s3723_s15 = sphi %s3762_s15, %s10062_s15   ;;  %s3719_s14 = sphi %s3760_s14, %s10061_s14   ;;  %s3715_s13 = sphi %s3758_s13, %s10060_s13   ;;  %s3711_s12 = sphi %s3756_s12, %s10059_s12  }
   0x5   : > { %s28_s20 = sadd.s32 1, %s3727_s16  ;;  %s117_s21 = sadd.s32 1, %s3719_s14 }
   0x6   : > { %p30_p0 = scmp.ge.s32.totalorder %s28_s20, 2  ;;  %p127_p1 = scmp.ne.s32.totalorder %s3719_s14, %s3715_s13 }
   0x7   : > { %p128_p2 = scmp.eq.s32.totalorder %s2913_s18, 1  ;;  %p133_p3 = scmp.ne.s32.totalorder %s3715_s13, %s3711_s12 }
   0x8   : > { %s10065_s20 = smov (%p30_p0, %s28_s20), 0  ;;  %p134_p5 = scmp.eq.s32.totalorder %s2914_s19, 1 }
   0x9   : > { %p3796_p4 = por %p128_p2, %p127_p1  ;;  %s112_s23 = ssub.s32 %s3727_s16, %s10065_s20 }
   0xa   : > { %p2919_p6 = scmp.ge.s32.totalorder %s3731_s17, 1  ;;  %p115_p7 = scmp.eq.s32.totalorder %s112_s23, 0 }
   0xb   : > { %p3803_p8 = por %p134_p5, %p133_p3  ;;  %p176_p9 = scmp.lt.s32.totalorder %s3731_s17, 3 }
   0xc   : > { %s3809_s25 = scalar_select %p115_p7, %s3719_s14, %s117_s21  }
   0xd   : > { %p177_p10 = pnand %p2919_p6, %p176_p9 }
   0xf   : > { %180 = sbr.rel (%p177_p10) target bundleno = 523 (0x20b), region = 32 }
  0x16   : > { %p210_p11 = scmp.lt.s32.totalorder %s3723_s15, 1  ;;  %v3816_v0 = vld [vmem:[%s8628_s1] ss:$0 sm:$0xff]  ;;  %v3821_v1 = vld [vmem:[%s8628_s1 + $0x5] ss:$0 sm:$0xff]  ;;  %s207_s10 = sand.u32 1, %s3715_s13  }
  0x17   : > { %8953 = vst [vmem:[#allocation5_spill] sm:$0xff] %v3821_v1  ;;  %v3831_v2 = vld [vmem:[%s8629_s2] ss:$0 sm:$0xff]  ;;  %s8479_s11 = sshll.u32 %s207_s10, 8  ;;  %s3593_s18 = sshll.u32 %s3723_s15, 12 }
  0x18   : > { %s211_s26 = scalar_select %p210_p11, %s3723_s15, 1 }
  0x19   : > { %s8559_s23 = scalar_lea.hbm %s8630_s3, %s3593_s18  ;;  %s3733_s28 = smov [#allocation2]  }
  0x1a   : > { %s3594_s27 = smul.u32 480, %s211_s26  ;;  %s8581_s26 = scalar_lea.sflag [#allocation3], %s207_s10 }
  0x1b   : > { %s3657_s29 = sshll.u32 %s3733_s28, 4  ;;  %s3658_s29 = int_to_ptr.vmem [resolvable:$false] %s3657_s29 }
  0x1c   : > { %s3826_s7 = scalar_lea.vmem %s8627_s0, %s3594_s27  ;;  %s3659_s30 = scalar_lea.vmem %s3658_s29, 8192 }
  0x1d   : > { %v233_v3 = vld [vmem:[%s3826_s7] sm:$0xff]  ;;  %v234_v4 = vld [vmem:[%s3826_s7 + $0x8] sm:$0xff]  ;;  %v235_v5 = vld [vmem:[%s3826_s7 + $0x18] sm:$0xff] }
  0x1e   : > { %v236_v6 = vld [vmem:[%s3826_s7 + $0x20] sm:$0xff]  ;;  %v3838_v7 = vld [vmem:[%s3826_s7 + $0x30] sm:$0xff]  ;;  %v3841_v8 = vld [vmem:[%s3826_s7 + $0x38] sm:$0xff]  ;;  %v269_v9 = vmul.f32 %v3816_v0, %v233_v3  ;;  %v270_v10 = vmul.f32 %v3816_v0, %v234_v4  ;;  %v271_v11 = vmul.f32 %v3816_v0, %v235_v5  ;;  %v3847_v12 = vmul.f32 %v3821_v1, %v235_v5 }
  0x1f   : > { %8954 = vst [vmem:[#allocation6_spill] sm:$0xff] %v3838_v7  ;;  %8955 = vst [vmem:[#allocation7_spill] sm:$0xff] %v3841_v8  ;;  %v3850_v13 = vld [vmem:[%s3826_s7 + $0x48] sm:$0xff]  ;;  %v3853_v14 = vld [vmem:[%s3826_s7 + $0x50] sm:$0xff]  ;;  %v272_v16 = vmul.f32 %v3816_v0, %v236_v6  ;;  %v273_v17 = vmul.f32 %v3816_v0, %v3838_v7  ;;  %v274_v18 = vmul.f32 %v3816_v0, %v3841_v8 }
  0x20   : > { %8956 = vst [vmem:[#allocation8_spill] sm:$0xff] %v3847_v12  ;;  %8957 = vst [vmem:[#allocation9_spill] sm:$0xff] %v3850_v13  ;;  %v3856_v15 = vld [vmem:[%s3826_s7 + $0x60] sm:$0xff]  ;;  %v3864_v19 = vmul.f32 %v3821_v1, %v236_v6  ;;  %v3867_v20 = vld [vmem:[%s3826_s7 + $0x68] sm:$0xff]  ;;  %v275_v23 = vmul.f32 %v3816_v0, %v3850_v13  ;;  %v276_v24 = vmul.f32 %v3816_v0, %v3853_v14 }
  0x21   : > { %8958 = vst [vmem:[#allocation10_spill] sm:$0xff] %v3853_v14  ;;  %8959 = vst [vmem:[#allocation11_spill] sm:$0xff] %v3856_v15  ;;  %v3870_v21 = vld [vmem:[%s3826_s7 + $0x78] sm:$0xff]  ;;  %v3873_v22 = vld [vmem:[%s3826_s7 + $0x80] sm:$0xff]  ;;  %v277_v25 = vmul.f32 %v3816_v0, %v3856_v15  ;;  %v3882_v26 = vadd.f32 %v3831_v2, %v269_v9  ;;  %v278_v30 = vmul.f32 %v3816_v0, %v3867_v20 }
  0x22   : > { %8960 = vst [vmem:[#allocation12_spill] sm:$0xff] %v3864_v19  ;;  %8961 = vst [vmem:[#allocation13_spill] sm:$0xff] %v3867_v20  ;;  %v3885_v27 = vld [vmem:[%s3826_s7 + $0x90] sm:$0xff]  ;;  %v3888_v28 = vld [vmem:[%s3826_s7 + $0x98] sm:$0xff]  ;;  %v279_v31 = vmul.f32 %v3816_v0, %v3870_v21  ;;  %v280_v32 = vmul.f32 %v3816_v0, %v3873_v22  ;;  %v3900_v33 = vadd.f32 %v3831_v2, %v270_v10 }
  0x23   : > { %8962 = vst [vmem:[#allocation14_spill] sm:$0xff] %v3870_v21  ;;  %8963 = vst [vmem:[#allocation15_spill] sm:$0xff] %v3873_v22  ;;  %v3891_v29 = vld [vmem:[%s3826_s7 + $0xa8] sm:$0xff]  ;;  %v3903_v34 = vld [vmem:[%s3826_s7 + $0xb0] sm:$0xff]  ;;  %v281_v37 = vmul.f32 %v3816_v0, %v3885_v27  ;;  %v282_v38 = vmul.f32 %v3816_v0, %v3888_v28  ;;  %v3918_v40 = vadd.f32 %v3831_v2, %v271_v11 }
  0x24   : > { %8964 = vst [vmem:[#allocation16_spill] sm:$0xff] %v3885_v27  ;;  %8965 = vst [vmem:[#allocation17_spill] sm:$0xff] %v3888_v28  ;;  %v3906_v35 = vld [vmem:[%s3826_s7 + $0xc0] sm:$0xff]  ;;  %v3909_v36 = vld [vmem:[%s3826_s7 + $0xc8] sm:$0xff]  ;;  %v283_v39 = vmul.f32 %v3816_v0, %v3891_v29  ;;  %v284_v44 = vmul.f32 %v3816_v0, %v3903_v34  ;;  %v3936_v47 = vadd.f32 %v3831_v2, %v272_v16 }
  0x25   : > { %8966 = vst [vmem:[#allocation18_spill] sm:$0xff] %v3891_v29  ;;  %8967 = vst [vmem:[#allocation19_spill] sm:$0xff] %v3903_v34  ;;  %v3921_v41 = vld [vmem:[%s3826_s7 + $0xd8] sm:$0xff]  ;;  %v3924_v42 = vld [vmem:[%s3826_s7 + $0xe0] sm:$0xff]  ;;  %v285_v45 = vmul.f32 %v3816_v0, %v3906_v35  ;;  %v286_v46 = vmul.f32 %v3816_v0, %v3909_v36  ;;  %v3954_v54 = vadd.f32 %v3831_v2, %v273_v17 }
  0x26   : > { %8968 = vst [vmem:[#allocation20_spill] sm:$0xff] %v3906_v35  ;;  %8969 = vst [vmem:[#allocation21_spill] sm:$0xff] %v3909_v36  ;;  %v3927_v43 = vld [vmem:[%s3826_s7 + $0xf0] sm:$0xff]  ;;  %v3939_v48 = vld [vmem:[%s3826_s7 + $0xf8] sm:$0xff]  ;;  %v287_v51 = vmul.f32 %v3816_v0, %v3921_v41  ;;  %v288_v52 = vmul.f32 %v3816_v0, %v3924_v42  ;;  %v3972_v61 = vadd.f32 %v3831_v2, %v274_v18 }
  0x27   : > { %8970 = vst [vmem:[#allocation22_spill] sm:$0xff] %v3921_v41  ;;  %8971 = vst [vmem:[#allocation23_spill] sm:$0xff] %v3924_v42  ;;  %v3942_v49 = vld [vmem:[%s3826_s7 + $0x108] sm:$0xff]  ;;  %v3945_v50 = vld [vmem:[%s3826_s7 + $0x110] sm:$0xff]  ;;  %v289_v53 = vmul.f32 %v3816_v0, %v3927_v43  ;;  %v290_v58 = vmul.f32 %v3816_v0, %v3939_v48  ;;  %v3990_v9 = vadd.f32 %v3831_v2, %v275_v23 }
  0x28   : > { %8972 = vst [vmem:[#allocation24_spill] sm:$0xff] %v3927_v43  ;;  %8973 = vst [vmem:[#allocation25_spill] sm:$0xff] %v3939_v48  ;;  %v3957_v55 = vld [vmem:[%s3826_s7 + $0x120] sm:$0xff]  ;;  %v3960_v56 = vld [vmem:[%s3826_s7 + $0x128] sm:$0xff]  ;;  %v291_v59 = vmul.f32 %v3816_v0, %v3942_v49  ;;  %v292_v60 = vmul.f32 %v3816_v0, %v3945_v50  ;;  %v4005_v19 = vadd.f32 %v3831_v2, %v276_v24 }
  0x29   : > { %8974 = vst [vmem:[#allocation26_spill] sm:$0xff] %v3942_v49  ;;  %8975 = vst [vmem:[#allocation27_spill] sm:$0xff] %v3945_v50  ;;  %v3963_v57 = vld [vmem:[%s3826_s7 + $0x138] sm:$0xff]  ;;  %v3975_v62 = vld [vmem:[%s3826_s7 + $0x140] sm:$0xff]  ;;  %v293_v4 = vmul.f32 %v3816_v0, %v3957_v55  ;;  %v294_v5 = vmul.f32 %v3816_v0, %v3960_v56  ;;  %v4021_v24 = vadd.f32 %v3831_v2, %v280_v32 }
  0x2a   : > { %8976 = vst [vmem:[#allocation28_spill] sm:$0xff] %v3957_v55  ;;  %8977 = vst [vmem:[#allocation29_spill] sm:$0xff] %v3960_v56  ;;  %v3978_v63 = vld [vmem:[%s3826_s7 + $0x150] sm:$0xff]  ;;  %v3981_v3 = vld [vmem:[%s3826_s7 + $0x158] sm:$0xff]  ;;  %v295_v6 = vmul.f32 %v3816_v0, %v3963_v57  ;;  %v296_v16 = vmul.f32 %v3816_v0, %v3975_v62  ;;  %v4040_v32 = vadd.f32 %v3831_v2, %v284_v44 }
  0x2b   : > { %8978 = vst [vmem:[#allocation30_spill] sm:$0xff] %v3963_v57  ;;  %8979 = vst [vmem:[#allocation31_spill] sm:$0xff] %v3975_v62  ;;  %v3993_v10 = vld [vmem:[%s3826_s7 + $0x168] sm:$0xff]  ;;  %v3996_v11 = vld [vmem:[%s3826_s7 + $0x170] sm:$0xff]  ;;  %v297_v17 = vmul.f32 %v3816_v0, %v3978_v63  ;;  %v298_v18 = vmul.f32 %v3816_v0, %v3981_v3  ;;  %v4012_v62 = vadd.f32 %v3831_v2, %v277_v25 }
  0x2c   : > { %8980 = vst [vmem:[#allocation32_spill] sm:$0xff] %v3978_v63  ;;  %8981 = vst [vmem:[#allocation33_spill] sm:$0xff] %v3981_v3  ;;  %v299_v23 = vmul.f32 %v3816_v0, %v3993_v10  ;;  %v300_v12 = vmul.f32 %v3816_v0, %v3996_v11  ;;  %v4015_v63 = vadd.f32 %v3831_v2, %v278_v30  ;;  %v4032_v0 = vld [vmem:[%s8628_s1 + $0x1] ss:$0 sm:$0xff]  ;;  %v335_v30 = vld [vmem:[%s3826_s7 + $0x9] sm:$0xff] }
  0x2d   : > { %8982 = vst [vmem:[#allocation34_spill] sm:$0xff] %v3993_v10  ;;  %8983 = vst [vmem:[#allocation35_spill] sm:$0xff] %v3996_v11  ;;  %v4018_v3 = vadd.f32 %v3831_v2, %v279_v31  ;;  %v4024_v10 = vadd.f32 %v3831_v2, %v281_v37  ;;  %v4027_v57 = vadd.f32 %v3831_v2, %v282_v38  ;;  %v334_v25 = vld [vmem:[%s3826_s7 + $0x1] sm:$0xff]  ;;  %v4049_v11 = vld [vmem:[%s3826_s7 + $0x19] sm:$0xff] }
  0x2e   : > { %v4037_v31 = vadd.f32 %v3831_v2, %v283_v39  ;;  %v4043_v37 = vadd.f32 %v3831_v2, %v285_v45  ;;  %v4046_v38 = vadd.f32 %v3831_v2, %v286_v46  ;;  %8984 = vst [vmem:[#allocation36_spill] sm:$0xff] %v4049_v11  ;;  %v4052_v56 = vld [vmem:[%s3826_s7 + $0x21] sm:$0xff]  ;;  %v4055_v55 = vld [vmem:[%s3826_s7 + $0x31] sm:$0xff]  ;;  %v4058_v39 = vld [vmem:[%s3826_s7 + $0x39] sm:$0xff]  ;;  %v4061_v44 = vadd.f32 %v3831_v2, %v287_v51 }
  0x2f   : > { %8985 = vst [vmem:[#allocation37_spill] sm:$0xff] %v4052_v56  ;;  %8986 = vst [vmem:[#allocation38_spill] sm:$0xff] %v4055_v55  ;;  %v4064_v45 = vadd.f32 %v3831_v2, %v288_v52  ;;  %v4067_v46 = vadd.f32 %v3831_v2, %v289_v53  ;;  %v4070_v50 = vadd.f32 %v3831_v2, %v290_v58  ;;  %v4073_v49 = vld [vmem:[%s3826_s7 + $0x49] sm:$0xff]  ;;  %v4076_v48 = vld [vmem:[%s3826_s7 + $0x51] sm:$0xff] }
  0x30   : > { %8987 = vst [vmem:[#allocation39_spill] sm:$0xff] %v4058_v39  ;;  %8988 = vst [vmem:[#allocation40_spill] sm:$0xff] %v4073_v49  ;;  %v4079_v43 = vld [vmem:[%s3826_s7 + $0x61] sm:$0xff]  ;;  %v4082_v51 = vadd.f32 %v3831_v2, %v291_v59  ;;  %v4085_v52 = vadd.f32 %v3831_v2, %v292_v60  ;;  %v4088_v53 = vadd.f32 %v3831_v2, %v293_v4  ;;  %v4094_v42 = vld [vmem:[%s3826_s7 + $0x69] sm:$0xff] }
  0x31   : > { %8989 = vst [vmem:[#allocation41_spill] sm:$0xff] %v4076_v48  ;;  %8990 = vst [vmem:[#allocation42_spill] sm:$0xff] %v4079_v43  ;;  %v4091_v58 = vadd.f32 %v3831_v2, %v294_v5  ;;  %v4097_v41 = vld [vmem:[%s3826_s7 + $0x79] sm:$0xff]  ;;  %v4100_v36 = vld [vmem:[%s3826_s7 + $0x81] sm:$0xff]  ;;  %v4103_v59 = vadd.f32 %v3831_v2, %v295_v6  ;;  %v4106_v60 = vadd.f32 %v3831_v2, %v296_v16 }
  0x32   : > { %8991 = vst [vmem:[#allocation43_spill] sm:$0xff] %v4088_v53  ;;  %8993 = vst [vmem:[#allocation45_spill] sm:$0xff] %v4094_v42  ;;  %v4109_v4 = vadd.f32 %v3831_v2, %v297_v17  ;;  %v4112_v5 = vadd.f32 %v3831_v2, %v298_v18  ;;  %v4115_v35 = vld [vmem:[%s3826_s7 + $0x91] sm:$0xff]  ;;  %v4118_v34 = vld [vmem:[%s3826_s7 + $0x99] sm:$0xff]  ;;  %v4124_v6 = vadd.f32 %v3831_v2, %v299_v23 }
  0x33   : > { %8992 = vst [vmem:[#allocation44_spill] sm:$0xff] %v4091_v58  ;;  %8994 = vst [vmem:[#allocation46_spill] sm:$0xff] %v4097_v41  ;;  %v4121_v29 = vld [vmem:[%s3826_s7 + $0xa9] sm:$0xff]  ;;  %v4127_v16 = vadd.f32 %v3831_v2, %v300_v12  ;;  %v4130_v17 = vld [vmem:[%s3826_s7 + $0xb1] sm:$0xff]  ;;  %v370_v27 = vmul.f32 %v4032_v0, %v334_v25  ;;  %v371_v22 = vmul.f32 %v4032_v0, %v335_v30 }
  0x34   : > { %8995 = vst [vmem:[#allocation47_spill] sm:$0xff] %v4100_v36  ;;  %8996 = vst [vmem:[#allocation48_spill] sm:$0xff] %v4103_v59  ;;  %v4133_v28 = vld [vmem:[%s3826_s7 + $0xc1] sm:$0xff]  ;;  %v4136_v18 = vld [vmem:[%s3826_s7 + $0xc9] sm:$0xff]  ;;  %v372_v2 = vmul.f32 %v4032_v0, %v4049_v11  ;;  %v373_v12 = vmul.f32 %v4032_v0, %v4052_v56  ;;  %v374_v25 = vmul.f32 %v4032_v0, %v4055_v55 }
  0x35   : > { %8997 = vst [vmem:[#allocation49_spill] sm:$0xff] %v4106_v60  ;;  %8998 = vst [vmem:[#allocation50_spill] sm:$0xff] %v4109_v4  ;;  %v4141_v21 = vld [vmem:[%s3826_s7 + $0xd9] sm:$0xff]  ;;  %v4144_v23 = vld [vmem:[%s3826_s7 + $0xe1] sm:$0xff]  ;;  %v375_v30 = vmul.f32 %v4032_v0, %v4058_v39  ;;  %v376_v11 = vmul.f32 %v4032_v0, %v4073_v49  ;;  %v377_v56 = vmul.f32 %v4032_v0, %v4076_v48 }
  0x36   : > { %8999 = vst [vmem:[#allocation51_spill] sm:$0xff] %v4112_v5  ;;  %9000 = vst [vmem:[#allocation52_spill] sm:$0xff] %v4115_v35  ;;  %v4147_v20 = vld [vmem:[%s3826_s7 + $0xf1] sm:$0xff]  ;;  %v4158_v15 = vld [vmem:[%s3826_s7 + $0xf9] sm:$0xff]  ;;  %v378_v55 = vmul.f32 %v4032_v0, %v4079_v43  ;;  %v379_v39 = vmul.f32 %v4032_v0, %v4094_v42  ;;  %v380_v49 = vmul.f32 %v4032_v0, %v4097_v41 }
  0x37   : > { %9001 = vst [vmem:[#allocation53_spill] sm:$0xff] %v4118_v34  ;;  %9002 = vst [vmem:[#allocation54_spill] sm:$0xff] %v4121_v29  ;;  %v4161_v14 = vld [vmem:[%s3826_s7 + $0x109] sm:$0xff]  ;;  %v4164_v13 = vld [vmem:[%s3826_s7 + $0x111] sm:$0xff]  ;;  %v381_v48 = vmul.f32 %v4032_v0, %v4100_v36  ;;  %v382_v43 = vmul.f32 %v4032_v0, %v4115_v35  ;;  %v384_v4 = vmul.f32 %v4032_v0, %v4121_v29 }
  0x38   : > { %9003 = vst [vmem:[#allocation55_spill] sm:$0xff] %v4124_v6  ;;  %9004 = vst [vmem:[#allocation56_spill] sm:$0xff] %v4127_v16  ;;  %v4175_v8 = vld [vmem:[%s3826_s7 + $0x121] sm:$0xff]  ;;  %v4178_v1 = vld [vmem:[%s3826_s7 + $0x129] sm:$0xff]  ;;  %v383_v16 = vmul.f32 %v4032_v0, %v4118_v34  ;;  %v385_v41 = vmul.f32 %v4032_v0, %v4130_v17  ;;  %v386_v36 = vmul.f32 %v4032_v0, %v4133_v28 }
  0x39   : > { %9005 = vst [vmem:[#allocation57_spill] sm:$0xff] %v4130_v17  ;;  %9006 = vst [vmem:[#allocation58_spill] sm:$0xff] %v4133_v28  ;;  %v4181_v7 = vld [vmem:[%s3826_s7 + $0x139] sm:$0xff]  ;;  %v4192_v42 = vld [vmem:[%s3826_s7 + $0x141] sm:$0xff]  ;;  %v387_v35 = vmul.f32 %v4032_v0, %v4136_v18  ;;  %v388_v59 = vmul.f32 %v4032_v0, %v4141_v21  ;;  %v389_v58 = vmul.f32 %v4032_v0, %v4144_v23 }
  0x3a   : > { %9007 = vst [vmem:[#allocation59_spill] sm:$0xff] %v4136_v18  ;;  %9008 = vst [vmem:[#allocation60_spill] sm:$0xff] %v4141_v21  ;;  %v4195_v6 = vld [vmem:[%s3826_s7 + $0x151] sm:$0xff]  ;;  %v4198_v5 = vld [vmem:[%s3826_s7 + $0x159] sm:$0xff]  ;;  %v390_v29 = vmul.f32 %v4032_v0, %v4147_v20  ;;  %v391_v17 = vmul.f32 %v4032_v0, %v4158_v15  ;;  %v392_v28 = vmul.f32 %v4032_v0, %v4161_v14 }
  0x3b   : > { %9009 = vst [vmem:[#allocation61_spill] sm:$0xff] %v4144_v23  ;;  %9010 = vst [vmem:[#allocation62_spill] sm:$0xff] %v4147_v20  ;;  %v4209_v60 = vld [vmem:[%s3826_s7 + $0x169] sm:$0xff]  ;;  %v4212_v34 = vld [vmem:[%s3826_s7 + $0x171] sm:$0xff]  ;;  %v393_v18 = vmul.f32 %v4032_v0, %v4164_v13  ;;  %v394_v53 = vmul.f32 %v4032_v0, %v4175_v8  ;;  %v395_v21 = vmul.f32 %v4032_v0, %v4178_v1 }
  0x3c   : > { %9011 = vst [vmem:[#allocation63_spill] sm:$0xff] %v4158_v15  ;;  %9012 = vst [vmem:[#allocation64_spill] sm:$0xff] %v4161_v14  ;;  %v396_v23 = vmul.f32 %v4032_v0, %v4181_v7  ;;  %v397_v20 = vmul.f32 %v4032_v0, %v4192_v42  ;;  %v398_v15 = vmul.f32 %v4032_v0, %v4195_v6 }
  0x3d   : > { %9013 = vst [vmem:[#allocation65_spill] sm:$0xff] %v4164_v13  ;;  %9014 = vst [vmem:[#allocation66_spill] sm:$0xff] %v4175_v8  ;;  %v399_v14 = vmul.f32 %v4032_v0, %v4198_v5  ;;  %v400_v13 = vmul.f32 %v4032_v0, %v4209_v60  ;;  %v401_v8 = vmul.f32 %v4032_v0, %v4212_v34  ;;  %v4334_v0 = vld [vmem:[%s3826_s7 + $0x62] sm:$0xff] }
  0x3e   : > { %9015 = vst [vmem:[#allocation67_spill] sm:$0xff] %v4178_v1  ;;  %9016 = vst [vmem:[#allocation68_spill] sm:$0xff] %v4181_v7  ;;  %v4243_v1 = vadd.f32 %v370_v27, %v3882_v26  ;;  %v4246_v7 = vadd.f32 %v371_v22, %v3900_v33  ;;  %v4261_v26 = vadd.f32 %v376_v11, %v3990_v9  ;;  %v4313_v9 = vld [vmem:[%s3826_s7 + $0x3a] sm:$0xff]  ;;  %v4328_v11 = vld [vmem:[%s3826_s7 + $0x4a] sm:$0xff] }
  0x3f   : > { %9017 = vst [vmem:[#allocation69_spill] sm:$0xff] %v4192_v42  ;;  %9018 = vst [vmem:[#allocation70_spill] sm:$0xff] %v4195_v6  ;;  %v4249_v42 = vadd.f32 %v372_v2, %v3918_v40  ;;  %v4252_v6 = vadd.f32 %v373_v12, %v3936_v47  ;;  %v4264_v22 = vadd.f32 %v377_v56, %v4005_v19  ;;  %v435_v56 = vld [vmem:[%s3826_s7 + $0x2] sm:$0xff]  ;;  %v9049_v2 = vld [vmem:[#allocation56_spill] sm:$0xff] }
  0x40   : > { %9019 = vst [vmem:[#allocation71_spill] sm:$0xff] %v4198_v5  ;;  %9020 = vst [vmem:[#allocation72_spill] sm:$0xff] %v4209_v60  ;;  %v4255_v5 = vadd.f32 %v374_v25, %v3954_v54  ;;  %v4258_v60 = vadd.f32 %v375_v30, %v3972_v61  ;;  %v4267_v27 = vadd.f32 %v378_v55, %v4012_v62  ;;  %v4287_v55 = vld [vmem:[%s8628_s1 + $0x2] ss:$0 sm:$0xff]  ;;  %v4304_v62 = vld [vmem:[%s3826_s7 + $0x1a] sm:$0xff] }
  0x41   : > { %9021 = vst [vmem:[#allocation73_spill] sm:$0xff] %v4212_v34  ;;  %v4270_v33 = vadd.f32 %v379_v39, %v4015_v63  ;;  %v4273_v40 = vadd.f32 %v380_v49, %v4018_v3  ;;  %v4276_v47 = vadd.f32 %v381_v48, %v4021_v24  ;;  %v4279_v54 = vadd.f32 %v382_v43, %v4024_v10  ;;  %v436_v49 = vld [vmem:[%s3826_s7 + $0xa] sm:$0xff]  ;;  %v4307_v63 = vld [vmem:[%s3826_s7 + $0x22] sm:$0xff]  ;;  %v4310_v3 = vld [vmem:[%s3826_s7 + $0x32] sm:$0xff] }
  0x42   : > { %v4282_v19 = vadd.f32 %v383_v16, %v4027_v57  ;;  %v4292_v61 = vadd.f32 %v384_v4, %v4037_v31  ;;  %v4295_v48 = vadd.f32 %v385_v41, %v4040_v32  ;;  %v4298_v43 = vadd.f32 %v386_v36, %v4043_v37  ;;  %9022 = vst [vmem:[#allocation74_spill] sm:$0xff] %v4304_v62  ;;  %v4331_v24 = vld [vmem:[%s3826_s7 + $0x52] sm:$0xff]  ;;  %v4349_v39 = vld [vmem:[%s3826_s7 + $0x6a] sm:$0xff]  ;;  %v4373_v16 = vld [vmem:[%s3826_s7 + $0x9a] sm:$0xff] }
  0x43   : > { %v4301_v57 = vadd.f32 %v387_v35, %v4046_v38  ;;  %9023 = vst [vmem:[#allocation75_spill] sm:$0xff] %v4307_v63  ;;  %9024 = vst [vmem:[#allocation76_spill] sm:$0xff] %v4310_v3  ;;  %v4316_v41 = vadd.f32 %v388_v59, %v4061_v44  ;;  %v4319_v36 = vadd.f32 %v389_v58, %v4064_v45  ;;  %v4352_v44 = vld [vmem:[%s3826_s7 + $0x7a] sm:$0xff]  ;;  %v4355_v45 = vld [vmem:[%s3826_s7 + $0x82] sm:$0xff] }
  0x44   : > { %9025 = vst [vmem:[#allocation77_spill] sm:$0xff] %v4313_v9  ;;  %v4322_v35 = vadd.f32 %v390_v29, %v4067_v46  ;;  %v4325_v10 = vadd.f32 %v391_v17, %v4070_v50  ;;  %9026 = vst [vmem:[#allocation78_spill] sm:$0xff] %v4328_v11  ;;  %v4337_v31 = vadd.f32 %v392_v28, %v4082_v51  ;;  %v9029_v29 = vld [vmem:[#allocation43_spill] sm:$0xff]  ;;  %v9031_v50 = vld [vmem:[#allocation44_spill] sm:$0xff] }
  0x45   : > { %9027 = vst [vmem:[#allocation79_spill] sm:$0xff] %v4331_v24  ;;  %9028 = vst [vmem:[#allocation80_spill] sm:$0xff] %v4334_v0  ;;  %v4340_v32 = vadd.f32 %v393_v18, %v4085_v52  ;;  %v4343_v37 = vadd.f32 %v394_v53, %v9029_v29  ;;  %v4346_v38 = vadd.f32 %v395_v21, %v9031_v50  ;;  %v9036_v28 = vld [vmem:[#allocation48_spill] sm:$0xff]  ;;  %v9038_v51 = vld [vmem:[#allocation49_spill] sm:$0xff] }
  0x46   : > { %9033 = vst [vmem:[#allocation81_spill] sm:$0xff] %v4349_v39  ;;  %9034 = vst [vmem:[#allocation82_spill] sm:$0xff] %v4352_v44  ;;  %v4358_v46 = vadd.f32 %v396_v23, %v9036_v28  ;;  %v4361_v52 = vadd.f32 %v397_v20, %v9038_v51  ;;  %v9040_v53 = vld [vmem:[#allocation50_spill] sm:$0xff]  ;;  %v9042_v21 = vld [vmem:[#allocation51_spill] sm:$0xff]  ;;  %v4382_v20 = vadd.f32 %v401_v8, %v9049_v2 }
  0x47   : > { %9030 = vst [vmem:[#allocation43_spill] sm:$0xff] %v4343_v37  ;;  %9032 = vst [vmem:[#allocation44_spill] sm:$0xff] %v4346_v38  ;;  %v4364_v58 = vadd.f32 %v398_v15, %v9040_v53  ;;  %v4367_v59 = vadd.f32 %v399_v14, %v9042_v21  ;;  %v4370_v4 = vld [vmem:[%s3826_s7 + $0x92] sm:$0xff]  ;;  %v4376_v17 = vld [vmem:[%s3826_s7 + $0xaa] sm:$0xff]  ;;  %v471_v25 = vmul.f32 %v4287_v55, %v435_v56 }
  0x48   : > { %9035 = vst [vmem:[#allocation83_spill] sm:$0xff] %v4355_v45  ;;  %9037 = vst [vmem:[#allocation48_spill] sm:$0xff] %v4358_v46  ;;  %v9047_v18 = vld [vmem:[#allocation55_spill] sm:$0xff]  ;;  %v4388_v12 = vld [vmem:[%s3826_s7 + $0xc2] sm:$0xff]  ;;  %v472_v30 = vmul.f32 %v4287_v55, %v436_v49  ;;  %v473_v8 = vmul.f32 %v4287_v55, %v4304_v62  ;;  %v474_v28 = vmul.f32 %v4287_v55, %v4307_v63 }
  0x49   : > { %9039 = vst [vmem:[#allocation49_spill] sm:$0xff] %v4361_v52  ;;  %9041 = vst [vmem:[#allocation50_spill] sm:$0xff] %v4364_v58  ;;  %v4379_v23 = vadd.f32 %v400_v13, %v9047_v18  ;;  %v4385_v15 = vld [vmem:[%s3826_s7 + $0xb2] sm:$0xff]  ;;  %v4391_v14 = vld [vmem:[%s3826_s7 + $0xca] sm:$0xff]  ;;  %v475_v56 = vmul.f32 %v4287_v55, %v4310_v3  ;;  %v476_v49 = vmul.f32 %v4287_v55, %v4313_v9 }
  0x4a   : > { %9043 = vst [vmem:[#allocation51_spill] sm:$0xff] %v4367_v59  ;;  %9044 = vst [vmem:[#allocation84_spill] sm:$0xff] %v4370_v4  ;;  %v4396_v29 = vld [vmem:[%s3826_s7 + $0xda] sm:$0xff]  ;;  %v4399_v13 = vld [vmem:[%s3826_s7 + $0xe2] sm:$0xff]  ;;  %v477_v18 = vmul.f32 %v4287_v55, %v4328_v11  ;;  %v478_v2 = vmul.f32 %v4287_v55, %v4331_v24  ;;  %v479_v3 = vmul.f32 %v4287_v55, %v4334_v0 }
  0x4b   : > { %9045 = vst [vmem:[#allocation85_spill] sm:$0xff] %v4373_v16  ;;  %9046 = vst [vmem:[#allocation86_spill] sm:$0xff] %v4376_v17  ;;  %v4402_v50 = vld [vmem:[%s3826_s7 + $0xf2] sm:$0xff]  ;;  %v4413_v51 = vld [vmem:[%s3826_s7 + $0xfa] sm:$0xff]  ;;  %v480_v9 = vmul.f32 %v4287_v55, %v4349_v39  ;;  %v481_v11 = vmul.f32 %v4287_v55, %v4352_v44  ;;  %v482_v24 = vmul.f32 %v4287_v55, %v4355_v45 }
  0x4c   : > { %9048 = vst [vmem:[#allocation55_spill] sm:$0xff] %v4379_v23  ;;  %9050 = vst [vmem:[#allocation56_spill] sm:$0xff] %v4382_v20  ;;  %v4416_v53 = vld [vmem:[%s3826_s7 + $0x10a] sm:$0xff]  ;;  %v4419_v21 = vld [vmem:[%s3826_s7 + $0x112] sm:$0xff]  ;;  %v483_v0 = vmul.f32 %v4287_v55, %v4370_v4  ;;  %v484_v20 = vmul.f32 %v4287_v55, %v4373_v16  ;;  %v485_v58 = vmul.f32 %v4287_v55, %v4376_v17 }
  0x4d   : > { %9051 = vst [vmem:[#allocation87_spill] sm:$0xff] %v4385_v15  ;;  %9052 = vst [vmem:[#allocation88_spill] sm:$0xff] %v4388_v12  ;;  %v4430_v63 = vld [vmem:[%s3826_s7 + $0x122] sm:$0xff]  ;;  %v4433_v62 = vld [vmem:[%s3826_s7 + $0x12a] sm:$0xff]  ;;  %v486_v44 = vmul.f32 %v4287_v55, %v4385_v15  ;;  %v487_v45 = vmul.f32 %v4287_v55, %v4388_v12  ;;  %v488_v4 = vmul.f32 %v4287_v55, %v4391_v14 }
  0x4e   : > { %9053 = vst [vmem:[#allocation89_spill] sm:$0xff] %v4391_v14  ;;  %9054 = vst [vmem:[#allocation90_spill] sm:$0xff] %v4396_v29  ;;  %v4436_v34 = vld [vmem:[%s3826_s7 + $0x13a] sm:$0xff]  ;;  %v4447_v39 = vld [vmem:[%s3826_s7 + $0x142] sm:$0xff]  ;;  %v489_v46 = vmul.f32 %v4287_v55, %v4396_v29  ;;  %v490_v38 = vmul.f32 %v4287_v55, %v4399_v13  ;;  %v491_v17 = vmul.f32 %v4287_v55, %v4402_v50 }
  0x4f   : > { %9055 = vst [vmem:[#allocation91_spill] sm:$0xff] %v4399_v13  ;;  %9056 = vst [vmem:[#allocation92_spill] sm:$0xff] %v4402_v50  ;;  %v4450_v23 = vld [vmem:[%s3826_s7 + $0x152] sm:$0xff]  ;;  %v4453_v59 = vld [vmem:[%s3826_s7 + $0x15a] sm:$0xff]  ;;  %v492_v15 = vmul.f32 %v4287_v55, %v4413_v51  ;;  %v493_v12 = vmul.f32 %v4287_v55, %v4416_v53  ;;  %v494_v14 = vmul.f32 %v4287_v55, %v4419_v21 }
  0x50   : > { %9057 = vst [vmem:[#allocation93_spill] sm:$0xff] %v4413_v51  ;;  %9058 = vst [vmem:[#allocation94_spill] sm:$0xff] %v4416_v53  ;;  %v4464_v52 = vld [vmem:[%s3826_s7 + $0x16a] sm:$0xff]  ;;  %v4467_v16 = vld [vmem:[%s3826_s7 + $0x172] sm:$0xff]  ;;  %v495_v37 = vmul.f32 %v4287_v55, %v4430_v63  ;;  %v496_v29 = vmul.f32 %v4287_v55, %v4433_v62  ;;  %v497_v13 = vmul.f32 %v4287_v55, %v4436_v34 }
  0x51   : > { %9059 = vst [vmem:[#allocation95_spill] sm:$0xff] %v4419_v21  ;;  %9060 = vst [vmem:[#allocation96_spill] sm:$0xff] %v4430_v63  ;;  %v498_v50 = vmul.f32 %v4287_v55, %v4447_v39  ;;  %v499_v51 = vmul.f32 %v4287_v55, %v4450_v23  ;;  %v500_v53 = vmul.f32 %v4287_v55, %v4453_v59 }
  0x52   : > { %9061 = vst [vmem:[#allocation97_spill] sm:$0xff] %v4433_v62  ;;  %9062 = vst [vmem:[#allocation98_spill] sm:$0xff] %v4436_v34  ;;  %v501_v21 = vmul.f32 %v4287_v55, %v4464_v52  ;;  %v502_v63 = vmul.f32 %v4287_v55, %v4467_v16  ;;  %v4498_v62 = vadd.f32 %v471_v25, %v4243_v1 }
  0x53   : > { %9063 = vst [vmem:[#allocation99_spill] sm:$0xff] %v4447_v39  ;;  %9064 = vst [vmem:[#allocation100_spill] sm:$0xff] %v4450_v23  ;;  %v4501_v34 = vadd.f32 %v472_v30, %v4246_v7  ;;  %v4504_v39 = vadd.f32 %v473_v8, %v4249_v42  ;;  %v4507_v23 = vadd.f32 %v474_v28, %v4252_v6  ;;  %v4625_v30 = vld [vmem:[%s3826_s7 + $0x93] sm:$0xff]  ;;  %v4631_v8 = vld [vmem:[%s3826_s7 + $0xab] sm:$0xff] }
  0x54   : > { %9065 = vst [vmem:[#allocation101_spill] sm:$0xff] %v4453_v59  ;;  %9066 = vst [vmem:[#allocation102_spill] sm:$0xff] %v4464_v52  ;;  %v4510_v59 = vadd.f32 %v475_v56, %v4255_v5  ;;  %v4513_v52 = vadd.f32 %v476_v49, %v4258_v60  ;;  %v4516_v1 = vadd.f32 %v477_v18, %v4261_v26  ;;  %v9093_v28 = vld [vmem:[#allocation55_spill] sm:$0xff]  ;;  %v9095_v56 = vld [vmem:[#allocation56_spill] sm:$0xff] }
  0x55   : > { %9067 = vst [vmem:[#allocation103_spill] sm:$0xff] %v4467_v16  ;;  %v4519_v7 = vadd.f32 %v478_v2, %v4264_v22  ;;  %v4522_v42 = vadd.f32 %v479_v3, %v4267_v27  ;;  %v4525_v6 = vadd.f32 %v480_v9, %v4270_v33  ;;  %v4528_v5 = vadd.f32 %v481_v11, %v4273_v40  ;;  %v4542_v27 = vld [vmem:[%s8628_s1 + $0x3] ss:$0 sm:$0xff]  ;;  %v537_v40 = vld [vmem:[%s3826_s7 + $0xb] sm:$0xff]  ;;  %v4559_v3 = vld [vmem:[%s3826_s7 + $0x1b] sm:$0xff] }
  0x56   : > { %v4531_v60 = vadd.f32 %v482_v24, %v4276_v47  ;;  %v4534_v26 = vadd.f32 %v483_v0, %v4279_v54  ;;  %v4537_v22 = vadd.f32 %v484_v20, %v4282_v19  ;;  %v536_v33 = vld [vmem:[%s3826_s7 + $0x3] sm:$0xff]  ;;  %v4547_v55 = vadd.f32 %v485_v58, %v4292_v61  ;;  %9068 = vst [vmem:[#allocation104_spill] sm:$0xff] %v4559_v3  ;;  %v4565_v11 = vld [vmem:[%s3826_s7 + $0x33] sm:$0xff]  ;;  %v4568_v61 = vld [vmem:[%s3826_s7 + $0x3b] sm:$0xff] }
  0x57   : > { %v4550_v47 = vadd.f32 %v486_v44, %v4295_v48  ;;  %v4553_v54 = vadd.f32 %v487_v45, %v4298_v43  ;;  %v4556_v19 = vadd.f32 %v488_v4, %v4301_v57  ;;  %v4562_v9 = vld [vmem:[%s3826_s7 + $0x23] sm:$0xff]  ;;  %9070 = vst [vmem:[#allocation106_spill] sm:$0xff] %v4565_v11  ;;  %9071 = vst [vmem:[#allocation107_spill] sm:$0xff] %v4568_v61  ;;  %v4583_v0 = vld [vmem:[%s3826_s7 + $0x4b] sm:$0xff] }
  0x58   : > { %9069 = vst [vmem:[#allocation105_spill] sm:$0xff] %v4562_v9  ;;  %v4571_v48 = vadd.f32 %v489_v46, %v4316_v41  ;;  %v4574_v43 = vadd.f32 %v490_v38, %v4319_v36  ;;  %v4577_v57 = vadd.f32 %v491_v17, %v4322_v35  ;;  %v4580_v24 = vadd.f32 %v492_v15, %v4325_v10  ;;  %v4586_v44 = vld [vmem:[%s3826_s7 + $0x53] sm:$0xff]  ;;  %v4589_v45 = vld [vmem:[%s3826_s7 + $0x63] sm:$0xff]  ;;  %v4604_v58 = vld [vmem:[%s3826_s7 + $0x6b] sm:$0xff] }
  0x59   : > { %9072 = vst [vmem:[#allocation108_spill] sm:$0xff] %v4583_v0  ;;  %9073 = vst [vmem:[#allocation109_spill] sm:$0xff] %v4586_v44  ;;  %v4592_v41 = vadd.f32 %v493_v12, %v4337_v31  ;;  %v4595_v36 = vadd.f32 %v494_v14, %v4340_v32  ;;  %v9075_v35 = vld [vmem:[#allocation43_spill] sm:$0xff]  ;;  %v9077_v10 = vld [vmem:[#allocation44_spill] sm:$0xff]  ;;  %v572_v18 = vmul.f32 %v4542_v27, %v536_v33 }
  0x5a   : > { %9074 = vst [vmem:[#allocation110_spill] sm:$0xff] %v4589_v45  ;;  %v4598_v38 = vadd.f32 %v495_v37, %v9075_v35  ;;  %v4601_v46 = vadd.f32 %v496_v29, %v9077_v10  ;;  %9079 = vst [vmem:[#allocation111_spill] sm:$0xff] %v4604_v58  ;;  %v4607_v4 = vld [vmem:[%s3826_s7 + $0x7b] sm:$0xff]  ;;  %v4610_v17 = vld [vmem:[%s3826_s7 + $0x83] sm:$0xff]  ;;  %v573_v2 = vmul.f32 %v4542_v27, %v537_v40 }
  0x5b   : > { %9080 = vst [vmem:[#allocation112_spill] sm:$0xff] %v4607_v4  ;;  %9081 = vst [vmem:[#allocation113_spill] sm:$0xff] %v4610_v17  ;;  %v9082_v31 = vld [vmem:[#allocation48_spill] sm:$0xff]  ;;  %v9084_v32 = vld [vmem:[#allocation49_spill] sm:$0xff]  ;;  %v576_v33 = vmul.f32 %v4542_v27, %v4565_v11  ;;  %v577_v40 = vmul.f32 %v4542_v27, %v4568_v61  ;;  %v580_v11 = vmul.f32 %v4542_v27, %v4589_v45 }
  0x5c   : > { %9076 = vst [vmem:[#allocation43_spill] sm:$0xff] %v4598_v38  ;;  %9078 = vst [vmem:[#allocation44_spill] sm:$0xff] %v4601_v46  ;;  %v4613_v20 = vadd.f32 %v497_v13, %v9082_v31  ;;  %v4616_v15 = vadd.f32 %v498_v50, %v9084_v32  ;;  %v9086_v37 = vld [vmem:[#allocation50_spill] sm:$0xff]  ;;  %v9088_v14 = vld [vmem:[#allocation51_spill] sm:$0xff]  ;;  %v4634_v13 = vadd.f32 %v501_v21, %v9093_v28 }
  0x5d   : > { %v4619_v12 = vadd.f32 %v499_v51, %v9086_v37  ;;  %v4622_v25 = vadd.f32 %v500_v53, %v9088_v14  ;;  %9090 = vst [vmem:[#allocation114_spill] sm:$0xff] %v4625_v30  ;;  %v4628_v29 = vld [vmem:[%s3826_s7 + $0x9b] sm:$0xff]  ;;  %9092 = vst [vmem:[#allocation116_spill] sm:$0xff] %v4631_v8  ;;  %v4637_v50 = vadd.f32 %v502_v63, %v9095_v56  ;;  %v4640_v49 = vld [vmem:[%s3826_s7 + $0xb3] sm:$0xff] }
  0x5e   : > { %9083 = vst [vmem:[#allocation48_spill] sm:$0xff] %v4613_v20  ;;  %9085 = vst [vmem:[#allocation49_spill] sm:$0xff] %v4616_v15  ;;  %v4643_v51 = vld [vmem:[%s3826_s7 + $0xc3] sm:$0xff]  ;;  %v4646_v53 = vld [vmem:[%s3826_s7 + $0xcb] sm:$0xff]  ;;  %v574_v63 = vmul.f32 %v4542_v27, %v4559_v3  ;;  %v575_v31 = vmul.f32 %v4542_v27, %v4562_v9  ;;  %v578_v28 = vmul.f32 %v4542_v27, %v4583_v0 }
  0x5f   : > { %9087 = vst [vmem:[#allocation50_spill] sm:$0xff] %v4619_v12  ;;  %9089 = vst [vmem:[#allocation51_spill] sm:$0xff] %v4622_v25  ;;  %v4651_v35 = vld [vmem:[%s3826_s7 + $0xdb] sm:$0xff]  ;;  %v4654_v21 = vld [vmem:[%s3826_s7 + $0xe3] sm:$0xff]  ;;  %v579_v56 = vmul.f32 %v4542_v27, %v4586_v44  ;;  %v581_v61 = vmul.f32 %v4542_v27, %v4604_v58  ;;  %v582_v0 = vmul.f32 %v4542_v27, %v4607_v4 }
  0x60   : > { %9091 = vst [vmem:[#allocation115_spill] sm:$0xff] %v4628_v29  ;;  %9094 = vst [vmem:[#allocation55_spill] sm:$0xff] %v4634_v13  ;;  %v4657_v10 = vld [vmem:[%s3826_s7 + $0xf3] sm:$0xff]  ;;  %v4668_v32 = vld [vmem:[%s3826_s7 + $0xfb] sm:$0xff]  ;;  %v583_v44 = vmul.f32 %v4542_v27, %v4610_v17  ;;  %v584_v45 = vmul.f32 %v4542_v27, %v4625_v30  ;;  %v586_v12 = vmul.f32 %v4542_v27, %v4631_v8 }
  0x61   : > { %9096 = vst [vmem:[#allocation56_spill] sm:$0xff] %v4637_v50  ;;  %9097 = vst [vmem:[#allocation117_spill] sm:$0xff] %v4640_v49  ;;  %v4671_v37 = vld [vmem:[%s3826_s7 + $0x10b] sm:$0xff]  ;;  %v4674_v14 = vld [vmem:[%s3826_s7 + $0x113] sm:$0xff]  ;;  %v585_v50 = vmul.f32 %v4542_v27, %v4628_v29  ;;  %v587_v4 = vmul.f32 %v4542_v27, %v4640_v49  ;;  %v588_v17 = vmul.f32 %v4542_v27, %v4643_v51 }
  0x62   : > { %9098 = vst [vmem:[#allocation118_spill] sm:$0xff] %v4643_v51  ;;  %9099 = vst [vmem:[#allocation119_spill] sm:$0xff] %v4646_v53  ;;  %v4685_v9 = vld [vmem:[%s3826_s7 + $0x123] sm:$0xff]  ;;  %v4688_v3 = vld [vmem:[%s3826_s7 + $0x12b] sm:$0xff]  ;;  %v589_v30 = vmul.f32 %v4542_v27, %v4646_v53  ;;  %v590_v20 = vmul.f32 %v4542_v27, %v4651_v35  ;;  %v591_v46 = vmul.f32 %v4542_v27, %v4654_v21 }
  0x63   : > { %9100 = vst [vmem:[#allocation120_spill] sm:$0xff] %v4651_v35  ;;  %9101 = vst [vmem:[#allocation121_spill] sm:$0xff] %v4654_v21  ;;  %v4691_v16 = vld [vmem:[%s3826_s7 + $0x13b] sm:$0xff]  ;;  %v4702_v58 = vld [vmem:[%s3826_s7 + $0x143] sm:$0xff]  ;;  %v592_v8 = vmul.f32 %v4542_v27, %v4657_v10  ;;  %v593_v49 = vmul.f32 %v4542_v27, %v4668_v32  ;;  %v594_v51 = vmul.f32 %v4542_v27, %v4671_v37 }
  0x64   : > { %9102 = vst [vmem:[#allocation122_spill] sm:$0xff] %v4657_v10  ;;  %9103 = vst [vmem:[#allocation123_spill] sm:$0xff] %v4668_v32  ;;  %v4705_v13 = vld [vmem:[%s3826_s7 + $0x153] sm:$0xff]  ;;  %v4708_v25 = vld [vmem:[%s3826_s7 + $0x15b] sm:$0xff]  ;;  %v595_v53 = vmul.f32 %v4542_v27, %v4674_v14  ;;  %v596_v38 = vmul.f32 %v4542_v27, %v4685_v9  ;;  %v597_v35 = vmul.f32 %v4542_v27, %v4688_v3 }
  0x65   : > { %9104 = vst [vmem:[#allocation124_spill] sm:$0xff] %v4671_v37  ;;  %9105 = vst [vmem:[#allocation125_spill] sm:$0xff] %v4674_v14  ;;  %v4719_v15 = vld [vmem:[%s3826_s7 + $0x16b] sm:$0xff]  ;;  %v4722_v29 = vld [vmem:[%s3826_s7 + $0x173] sm:$0xff]  ;;  %v598_v21 = vmul.f32 %v4542_v27, %v4691_v16  ;;  %v599_v10 = vmul.f32 %v4542_v27, %v4702_v58  ;;  %v600_v32 = vmul.f32 %v4542_v27, %v4705_v13 }
  0x66   : > { %9106 = vst [vmem:[#allocation126_spill] sm:$0xff] %v4685_v9  ;;  %9107 = vst [vmem:[#allocation127_spill] sm:$0xff] %v4688_v3  ;;  %v601_v37 = vmul.f32 %v4542_v27, %v4708_v25  ;;  %v602_v14 = vmul.f32 %v4542_v27, %v4719_v15  ;;  %v603_v9 = vmul.f32 %v4542_v27, %v4722_v29 }
  0x67   : > { %9108 = vst [vmem:[#allocation128_spill] sm:$0xff] %v4691_v16  ;;  %9109 = vst [vmem:[#allocation129_spill] sm:$0xff] %v4702_v58  ;;  %v4753_v3 = vadd.f32 %v572_v18, %v4498_v62  ;;  %v4756_v16 = vadd.f32 %v573_v2, %v4501_v34  ;;  %v4759_v58 = vadd.f32 %v574_v63, %v4504_v39  ;;  %v4880_v2 = vld [vmem:[%s3826_s7 + $0x94] sm:$0xff]  ;;  %v4886_v63 = vld [vmem:[%s3826_s7 + $0xac] sm:$0xff] }
  0x68   : > { %9110 = vst [vmem:[#allocation130_spill] sm:$0xff] %v4705_v13  ;;  %9111 = vst [vmem:[#allocation131_spill] sm:$0xff] %v4708_v25  ;;  %v4762_v13 = vadd.f32 %v575_v31, %v4507_v23  ;;  %v4765_v25 = vadd.f32 %v576_v33, %v4510_v59  ;;  %v4771_v62 = vadd.f32 %v578_v28, %v4516_v1  ;;  %v9139_v31 = vld [vmem:[#allocation55_spill] sm:$0xff]  ;;  %v9141_v33 = vld [vmem:[#allocation56_spill] sm:$0xff] }
  0x69   : > { %9112 = vst [vmem:[#allocation132_spill] sm:$0xff] %v4719_v15  ;;  %9113 = vst [vmem:[#allocation133_spill] sm:$0xff] %v4722_v29  ;;  %v4768_v15 = vadd.f32 %v577_v40, %v4513_v52  ;;  %v4774_v34 = vadd.f32 %v579_v56, %v4519_v7  ;;  %v4777_v39 = vadd.f32 %v580_v11, %v4522_v42  ;;  %v4797_v42 = vld [vmem:[%s8628_s1 + $0x4] ss:$0 sm:$0xff]  ;;  %v4814_v11 = vld [vmem:[%s3826_s7 + $0x1c] sm:$0xff] }
  0x6a   : > { %v4780_v23 = vadd.f32 %v581_v61, %v4525_v6  ;;  %v4783_v59 = vadd.f32 %v582_v0, %v4528_v5  ;;  %v4786_v52 = vadd.f32 %v583_v44, %v4531_v60  ;;  %v4789_v1 = vadd.f32 %v584_v45, %v4534_v26  ;;  %v637_v6 = vld [vmem:[%s3826_s7 + $0x4] sm:$0xff]  ;;  %v638_v5 = vld [vmem:[%s3826_s7 + $0xc] sm:$0xff]  ;;  %9114 = vst [vmem:[#allocation134_spill] sm:$0xff] %v4814_v11  ;;  %v4820_v0 = vld [vmem:[%s3826_s7 + $0x34] sm:$0xff] }
  0x6b   : > { %v4792_v7 = vadd.f32 %v585_v50, %v4537_v22  ;;  %v4802_v27 = vadd.f32 %v586_v12, %v4547_v55  ;;  %v4805_v60 = vadd.f32 %v587_v4, %v4550_v47  ;;  %v4808_v26 = vadd.f32 %v588_v17, %v4553_v54  ;;  %v4817_v61 = vld [vmem:[%s3826_s7 + $0x24] sm:$0xff]  ;;  %9116 = vst [vmem:[#allocation136_spill] sm:$0xff] %v4820_v0  ;;  %v4823_v55 = vld [vmem:[%s3826_s7 + $0x3c] sm:$0xff]  ;;  %v4838_v45 = vld [vmem:[%s3826_s7 + $0x4c] sm:$0xff] }
  0x6c   : > { %v4811_v22 = vadd.f32 %v589_v30, %v4556_v19  ;;  %9115 = vst [vmem:[#allocation135_spill] sm:$0xff] %v4817_v61  ;;  %9117 = vst [vmem:[#allocation137_spill] sm:$0xff] %v4823_v55  ;;  %v4826_v47 = vadd.f32 %v590_v20, %v4571_v48  ;;  %v4829_v54 = vadd.f32 %v591_v46, %v4574_v43  ;;  %v4841_v4 = vld [vmem:[%s3826_s7 + $0x54] sm:$0xff]  ;;  %v4844_v17 = vld [vmem:[%s3826_s7 + $0x64] sm:$0xff] }
  0x6d   : > { %v4832_v19 = vadd.f32 %v592_v8, %v4577_v57  ;;  %v4835_v44 = vadd.f32 %v593_v49, %v4580_v24  ;;  %9118 = vst [vmem:[#allocation138_spill] sm:$0xff] %v4838_v45  ;;  %9119 = vst [vmem:[#allocation139_spill] sm:$0xff] %v4841_v4  ;;  %v4847_v48 = vadd.f32 %v594_v51, %v4592_v41  ;;  %v9121_v57 = vld [vmem:[#allocation43_spill] sm:$0xff]  ;;  %v9123_v24 = vld [vmem:[#allocation44_spill] sm:$0xff] }
  0x6e   : > { %9120 = vst [vmem:[#allocation140_spill] sm:$0xff] %v4844_v17  ;;  %v4850_v43 = vadd.f32 %v595_v53, %v4595_v36  ;;  %v4853_v46 = vadd.f32 %v596_v38, %v9121_v57  ;;  %v4856_v20 = vadd.f32 %v597_v35, %v9123_v24  ;;  %v4859_v12 = vld [vmem:[%s3826_s7 + $0x6c] sm:$0xff]  ;;  %v4862_v30 = vld [vmem:[%s3826_s7 + $0x7c] sm:$0xff]  ;;  %v4865_v8 = vld [vmem:[%s3826_s7 + $0x84] sm:$0xff]  ;;  %v673_v28 = vmul.f32 %v4797_v42, %v637_v6 }
  0x6f   : > { %9125 = vst [vmem:[#allocation141_spill] sm:$0xff] %v4859_v12  ;;  %9126 = vst [vmem:[#allocation142_spill] sm:$0xff] %v4862_v30  ;;  %v9128_v41 = vld [vmem:[#allocation48_spill] sm:$0xff]  ;;  %v9130_v36 = vld [vmem:[#allocation49_spill] sm:$0xff]  ;;  %v674_v56 = vmul.f32 %v4797_v42, %v638_v5  ;;  %v677_v6 = vmul.f32 %v4797_v42, %v4820_v0  ;;  %v678_v5 = vmul.f32 %v4797_v42, %v4823_v55 }
  0x70   : > { %9122 = vst [vmem:[#allocation43_spill] sm:$0xff] %v4853_v46  ;;  %9124 = vst [vmem:[#allocation44_spill] sm:$0xff] %v4856_v20  ;;  %v4868_v50 = vadd.f32 %v598_v21, %v9128_v41  ;;  %v4871_v49 = vadd.f32 %v599_v10, %v9130_v36  ;;  %v9132_v38 = vld [vmem:[#allocation50_spill] sm:$0xff]  ;;  %v9134_v53 = vld [vmem:[#allocation51_spill] sm:$0xff]  ;;  %v4889_v21 = vadd.f32 %v602_v14, %v9139_v31 }
  0x71   : > { %9127 = vst [vmem:[#allocation143_spill] sm:$0xff] %v4865_v8  ;;  %v4874_v51 = vadd.f32 %v600_v32, %v9132_v38  ;;  %v4877_v18 = vadd.f32 %v601_v37, %v9134_v53  ;;  %9136 = vst [vmem:[#allocation144_spill] sm:$0xff] %v4880_v2  ;;  %v4883_v35 = vld [vmem:[%s3826_s7 + $0x9c] sm:$0xff]  ;;  %v4892_v10 = vadd.f32 %v603_v9, %v9141_v33  ;;  %v4895_v40 = vld [vmem:[%s3826_s7 + $0xb4] sm:$0xff] }
  0x72   : > { %9129 = vst [vmem:[#allocation48_spill] sm:$0xff] %v4868_v50  ;;  %9131 = vst [vmem:[#allocation49_spill] sm:$0xff] %v4871_v49  ;;  %v4898_v32 = vld [vmem:[%s3826_s7 + $0xc4] sm:$0xff]  ;;  %v4901_v37 = vld [vmem:[%s3826_s7 + $0xcc] sm:$0xff]  ;;  %v675_v9 = vmul.f32 %v4797_v42, %v4814_v11  ;;  %v676_v41 = vmul.f32 %v4797_v42, %v4817_v61  ;;  %v679_v31 = vmul.f32 %v4797_v42, %v4838_v45 }
  0x73   : > { %9133 = vst [vmem:[#allocation50_spill] sm:$0xff] %v4874_v51  ;;  %9135 = vst [vmem:[#allocation51_spill] sm:$0xff] %v4877_v18  ;;  %v4906_v57 = vld [vmem:[%s3826_s7 + $0xdc] sm:$0xff]  ;;  %v4909_v14 = vld [vmem:[%s3826_s7 + $0xe4] sm:$0xff]  ;;  %v680_v33 = vmul.f32 %v4797_v42, %v4841_v4  ;;  %v681_v0 = vmul.f32 %v4797_v42, %v4844_v17  ;;  %v682_v55 = vmul.f32 %v4797_v42, %v4859_v12 }
  0x74   : > { %9137 = vst [vmem:[#allocation145_spill] sm:$0xff] %v4883_v35  ;;  %9138 = vst [vmem:[#allocation146_spill] sm:$0xff] %v4886_v63  ;;  %v4912_v24 = vld [vmem:[%s3826_s7 + $0xf4] sm:$0xff]  ;;  %v4923_v36 = vld [vmem:[%s3826_s7 + $0xfc] sm:$0xff]  ;;  %v683_v45 = vmul.f32 %v4797_v42, %v4862_v30  ;;  %v684_v4 = vmul.f32 %v4797_v42, %v4865_v8  ;;  %v685_v17 = vmul.f32 %v4797_v42, %v4880_v2 }
  0x75   : > { %9140 = vst [vmem:[#allocation55_spill] sm:$0xff] %v4889_v21  ;;  %9142 = vst [vmem:[#allocation56_spill] sm:$0xff] %v4892_v10  ;;  %v4926_v38 = vld [vmem:[%s3826_s7 + $0x10c] sm:$0xff]  ;;  %v4929_v53 = vld [vmem:[%s3826_s7 + $0x114] sm:$0xff]  ;;  %v686_v10 = vmul.f32 %v4797_v42, %v4883_v35  ;;  %v687_v51 = vmul.f32 %v4797_v42, %v4886_v63  ;;  %v688_v30 = vmul.f32 %v4797_v42, %v4895_v40 }
  0x76   : > { %9143 = vst [vmem:[#allocation147_spill] sm:$0xff] %v4895_v40  ;;  %9144 = vst [vmem:[#allocation148_spill] sm:$0xff] %v4898_v32  ;;  %v4940_v61 = vld [vmem:[%s3826_s7 + $0x124] sm:$0xff]  ;;  %v4943_v11 = vld [vmem:[%s3826_s7 + $0x12c] sm:$0xff]  ;;  %v689_v8 = vmul.f32 %v4797_v42, %v4898_v32  ;;  %v690_v2 = vmul.f32 %v4797_v42, %v4901_v37  ;;  %v691_v50 = vmul.f32 %v4797_v42, %v4906_v57 }
  0x77   : > { %9145 = vst [vmem:[#allocation149_spill] sm:$0xff] %v4901_v37  ;;  %9146 = vst [vmem:[#allocation150_spill] sm:$0xff] %v4906_v57  ;;  %v4946_v29 = vld [vmem:[%s3826_s7 + $0x13c] sm:$0xff]  ;;  %v4957_v12 = vld [vmem:[%s3826_s7 + $0x144] sm:$0xff]  ;;  %v692_v20 = vmul.f32 %v4797_v42, %v4909_v14  ;;  %v693_v63 = vmul.f32 %v4797_v42, %v4912_v24  ;;  %v694_v40 = vmul.f32 %v4797_v42, %v4923_v36 }
  0x78   : > { %9147 = vst [vmem:[#allocation151_spill] sm:$0xff] %v4909_v14  ;;  %9148 = vst [vmem:[#allocation152_spill] sm:$0xff] %v4912_v24  ;;  %v4960_v21 = vld [vmem:[%s3826_s7 + $0x154] sm:$0xff]  ;;  %v4963_v18 = vld [vmem:[%s3826_s7 + $0x15c] sm:$0xff]  ;;  %v695_v32 = vmul.f32 %v4797_v42, %v4926_v38  ;;  %v696_v37 = vmul.f32 %v4797_v42, %v4929_v53  ;;  %v697_v46 = vmul.f32 %v4797_v42, %v4940_v61 }
  0x79   : > { %9149 = vst [vmem:[#allocation153_spill] sm:$0xff] %v4923_v36  ;;  %9150 = vst [vmem:[#allocation154_spill] sm:$0xff] %v4926_v38  ;;  %v4974_v49 = vld [vmem:[%s3826_s7 + $0x16c] sm:$0xff]  ;;  %v4977_v35 = vld [vmem:[%s3826_s7 + $0x174] sm:$0xff]  ;;  %v698_v57 = vmul.f32 %v4797_v42, %v4943_v11  ;;  %v699_v14 = vmul.f32 %v4797_v42, %v4946_v29  ;;  %v700_v24 = vmul.f32 %v4797_v42, %v4957_v12 }
  0x7a   : > { %9151 = vst [vmem:[#allocation155_spill] sm:$0xff] %v4929_v53  ;;  %9152 = vst [vmem:[#allocation156_spill] sm:$0xff] %v4940_v61  ;;  %v701_v36 = vmul.f32 %v4797_v42, %v4960_v21  ;;  %v702_v38 = vmul.f32 %v4797_v42, %v4963_v18  ;;  %v703_v53 = vmul.f32 %v4797_v42, %v4974_v49 }
  0x7b   : > { %9153 = vst [vmem:[#allocation157_spill] sm:$0xff] %v4943_v11  ;;  %9154 = vst [vmem:[#allocation158_spill] sm:$0xff] %v4946_v29  ;;  %v704_v61 = vmul.f32 %v4797_v42, %v4977_v35  ;;  %v5008_v11 = vadd.f32 %v673_v28, %v4753_v3  ;;  %v5011_v29 = vadd.f32 %v674_v56, %v4756_v16  ;;  %v9183_v56 = vld [vmem:[#allocation11_spill] sm:$0xff] }
  0x7c   : > { %9155 = vst [vmem:[#allocation159_spill] sm:$0xff] %v4957_v12  ;;  %9156 = vst [vmem:[#allocation160_spill] sm:$0xff] %v4960_v21  ;;  %v5014_v12 = vadd.f32 %v675_v9, %v4759_v58  ;;  %v5017_v21 = vadd.f32 %v676_v41, %v4762_v13  ;;  %v5026_v42 = vadd.f32 %v679_v31, %v4771_v62  ;;  %v9186_v41 = vld [vmem:[#allocation15_spill] sm:$0xff]  ;;  %v9189_v31 = vld [vmem:[#allocation18_spill] sm:$0xff] }
  0x7d   : > { %9157 = vst [vmem:[#allocation161_spill] sm:$0xff] %v4963_v18  ;;  %9158 = vst [vmem:[#allocation162_spill] sm:$0xff] %v4974_v49  ;;  %v5020_v18 = vadd.f32 %v677_v6, %v4765_v25  ;;  %v5023_v49 = vadd.f32 %v678_v5, %v4768_v15  ;;  %v5029_v3 = vadd.f32 %v680_v33, %v4774_v34  ;;  %v9187_v5 = vld [vmem:[#allocation16_spill] sm:$0xff] }
  0x7e   : > { %9159 = vst [vmem:[#allocation163_spill] sm:$0xff] %v4977_v35  ;;  %v5032_v16 = vadd.f32 %v681_v0, %v4777_v39  ;;  %v5035_v58 = vadd.f32 %v682_v55, %v4780_v23  ;;  %v5038_v13 = vadd.f32 %v683_v45, %v4783_v59  ;;  %v5041_v25 = vadd.f32 %v684_v4, %v4786_v52  ;;  %v9164_v55 = vld [vmem:[#allocation44_spill] sm:$0xff] }
  0x7f   : > { %v5044_v15 = vadd.f32 %v685_v17, %v4789_v1  ;;  %v5047_v62 = vadd.f32 %v686_v10, %v4792_v7  ;;  %v5050_v34 = vadd.f32 %v687_v51, %v4802_v27  ;;  %v5053_v39 = vadd.f32 %v688_v30, %v4805_v60  ;;  %v9179_v51 = vld [vmem:[#allocation5_spill] sm:$0xff] }
  0x80   : > { %v5056_v23 = vadd.f32 %v689_v8, %v4808_v26  ;;  %v5059_v59 = vadd.f32 %v690_v2, %v4811_v22  ;;  %v5062_v52 = vadd.f32 %v691_v50, %v4826_v47  ;;  %v5065_v1 = vadd.f32 %v692_v20, %v4829_v54  ;;  %v9162_v22 = vld [vmem:[#allocation43_spill] sm:$0xff]  ;;  %v9166_v54 = vld [vmem:[#allocation48_spill] sm:$0xff]  ;;  %v9178_v50 = vld [vmem:[#allocation6_spill] sm:$0xff] }
  0x81   : > { %v5068_v7 = vadd.f32 %v693_v63, %v4832_v19  ;;  %v5071_v27 = vadd.f32 %v694_v40, %v4835_v44  ;;  %v5074_v60 = vadd.f32 %v695_v32, %v4847_v48  ;;  %v5077_v26 = vadd.f32 %v696_v37, %v4850_v43  ;;  %v9168_v19 = vld [vmem:[#allocation49_spill] sm:$0xff]  ;;  %v9170_v44 = vld [vmem:[#allocation50_spill] sm:$0xff]  ;;  %v9172_v48 = vld [vmem:[#allocation51_spill] sm:$0xff] }
  0x82   : > { %v5080_v0 = vadd.f32 %v697_v46, %v9162_v22  ;;  %v5083_v47 = vadd.f32 %v698_v57, %v9164_v55  ;;  %v5086_v45 = vadd.f32 %v699_v14, %v9166_v54  ;;  %v5089_v4 = vadd.f32 %v700_v24, %v9168_v19  ;;  %v9174_v43 = vld [vmem:[#allocation55_spill] sm:$0xff]  ;;  %v9176_v46 = vld [vmem:[#allocation56_spill] sm:$0xff]  ;;  %v9181_v40 = vld [vmem:[#allocation9_spill] sm:$0xff] }
  0x83   : > { %9160 = vst [vmem:[#allocation164_spill] sm:$0xff] %v5074_v60  ;;  %9161 = vst [vmem:[#allocation165_spill] sm:$0xff] %v5077_v26  ;;  %v5092_v17 = vadd.f32 %v701_v36, %v9170_v44  ;;  %v5095_v20 = vadd.f32 %v702_v38, %v9172_v48  ;;  %v5098_v30 = vadd.f32 %v703_v53, %v9174_v43  ;;  %v9180_v63 = vld [vmem:[#allocation7_spill] sm:$0xff]  ;;  %v9182_v37 = vld [vmem:[#allocation10_spill] sm:$0xff] }
  0x84   : > { %9163 = vst [vmem:[#allocation43_spill] sm:$0xff] %v5080_v0  ;;  %9165 = vst [vmem:[#allocation44_spill] sm:$0xff] %v5083_v47  ;;  %v5101_v8 = vadd.f32 %v704_v61, %v9176_v46  ;;  %v777_v2 = vmul.f32 %v9179_v51, %v9178_v50  ;;  %v778_v10 = vmul.f32 %v9179_v51, %v9180_v63  ;;  %v9184_v14 = vld [vmem:[#allocation13_spill] sm:$0xff]  ;;  %v9185_v24 = vld [vmem:[#allocation14_spill] sm:$0xff] }
  0x85   : > { %9167 = vst [vmem:[#allocation48_spill] sm:$0xff] %v5086_v45  ;;  %9169 = vst [vmem:[#allocation49_spill] sm:$0xff] %v5089_v4  ;;  %v779_v32 = vmul.f32 %v9179_v51, %v9181_v40  ;;  %v780_v28 = vmul.f32 %v9179_v51, %v9182_v37  ;;  %v781_v57 = vmul.f32 %v9179_v51, %v9183_v56  ;;  %v9188_v38 = vld [vmem:[#allocation17_spill] sm:$0xff]  ;;  %v9190_v22 = vld [vmem:[#allocation19_spill] sm:$0xff] }
  0x86   : > { %9171 = vst [vmem:[#allocation50_spill] sm:$0xff] %v5092_v17  ;;  %9173 = vst [vmem:[#allocation51_spill] sm:$0xff] %v5095_v20  ;;  %v782_v61 = vmul.f32 %v9179_v51, %v9184_v14  ;;  %v783_v9 = vmul.f32 %v9179_v51, %v9185_v24  ;;  %v784_v6 = vmul.f32 %v9179_v51, %v9186_v41  ;;  %v9191_v54 = vld [vmem:[#allocation20_spill] sm:$0xff]  ;;  %v9192_v44 = vld [vmem:[#allocation21_spill] sm:$0xff] }
  0x87   : > { %9175 = vst [vmem:[#allocation55_spill] sm:$0xff] %v5098_v30  ;;  %9177 = vst [vmem:[#allocation56_spill] sm:$0xff] %v5101_v8  ;;  %v785_v36 = vmul.f32 %v9179_v51, %v9187_v5  ;;  %v786_v53 = vmul.f32 %v9179_v51, %v9188_v38  ;;  %v787_v33 = vmul.f32 %v9179_v51, %v9189_v31  ;;  %v5132_v43 = vld [vmem:[%s3826_s7 + $0x180] sm:$0xff]  ;;  %v5135_v46 = vld [vmem:[%s3826_s7 + $0x188] sm:$0xff] }
  0x88   : > { %v788_v55 = vmul.f32 %v9179_v51, %v9190_v22  ;;  %v789_v19 = vmul.f32 %v9179_v51, %v9191_v54  ;;  %v790_v48 = vmul.f32 %v9179_v51, %v9192_v44  ;;  %9193 = vst [vmem:[#allocation6_spill] sm:$0xff] %v5132_v43  ;;  %9194 = vst [vmem:[#allocation5_spill] sm:$0xff] %v5135_v46  ;;  %v9195_v50 = vld [vmem:[#allocation22_spill] sm:$0xff]  ;;  %v9196_v40 = vld [vmem:[#allocation23_spill] sm:$0xff] }
  0x89   : > { %v791_v63 = vmul.f32 %v9179_v51, %v9195_v50  ;;  %v792_v37 = vmul.f32 %v9179_v51, %v9196_v40  ;;  %v9197_v56 = vld [vmem:[#allocation24_spill] sm:$0xff]  ;;  %v9198_v24 = vld [vmem:[#allocation25_spill] sm:$0xff]  ;;  %v9199_v5 = vld [vmem:[#allocation26_spill] sm:$0xff] }
  0x8a   : > { %v793_v14 = vmul.f32 %v9179_v51, %v9197_v56  ;;  %v794_v41 = vmul.f32 %v9179_v51, %v9198_v24  ;;  %v795_v38 = vmul.f32 %v9179_v51, %v9199_v5  ;;  %v9200_v31 = vld [vmem:[#allocation27_spill] sm:$0xff]  ;;  %v9201_v54 = vld [vmem:[#allocation28_spill] sm:$0xff]  ;;  %v3652_v50 = vld [vmem:[%s8628_s1 + $0x5] ss:$0 sm:$0xff] }
  0x8b   : > { %v796_v22 = vmul.f32 %v9179_v51, %v9200_v31  ;;  %v797_v44 = vmul.f32 %v9179_v51, %v9201_v54  ;;  %v9202_v40 = vld [vmem:[#allocation29_spill] sm:$0xff]  ;;  %v9203_v8 = vld [vmem:[#allocation30_spill] sm:$0xff]  ;;  %v9204_v30 = vld [vmem:[#allocation31_spill] sm:$0xff]  ;;  %v805_v51 = vmul.f32 %v3652_v50, %v5132_v43  ;;  %v806_v54 = vmul.f32 %v3652_v50, %v5135_v46 }
  0x8c   : > { %v798_v35 = vmul.f32 %v3652_v50, %v9202_v40  ;;  %v799_v56 = vmul.f32 %v3652_v50, %v9203_v8  ;;  %v800_v20 = vmul.f32 %v3652_v50, %v9204_v30  ;;  %v9205_v24 = vld [vmem:[#allocation32_spill] sm:$0xff]  ;;  %v9206_v4 = vld [vmem:[#allocation33_spill] sm:$0xff]  ;;  %v9207_v45 = vld [vmem:[#allocation34_spill] sm:$0xff]  ;;  %v5172_v30 = vadd.f32 %v777_v2, %v5014_v12 }
  0x8d   : > { %v801_v17 = vmul.f32 %v3652_v50, %v9205_v24  ;;  %v802_v5 = vmul.f32 %v3652_v50, %v9206_v4  ;;  %v803_v47 = vmul.f32 %v3652_v50, %v9207_v45  ;;  %v9208_v31 = vld [vmem:[#allocation35_spill] sm:$0xff]  ;;  %v9209_v26 = vld [vmem:[#allocation8_spill] sm:$0xff]  ;;  %v5175_v4 = vadd.f32 %v778_v10, %v5017_v21 }
  0x8e   : > { %v804_v0 = vmul.f32 %v3652_v50, %v9208_v31  ;;  %v5165_v60 = vadd.f32 %v9209_v26, %v5008_v11  ;;  %v9210_v8 = vld [vmem:[#allocation12_spill] sm:$0xff]  ;;  %v5178_v45 = vadd.f32 %v779_v32, %v5020_v18  ;;  %v5181_v24 = vadd.f32 %v780_v28, %v5023_v49  ;;  %v9253_v46 = vld [vmem:[#allocation63_spill] sm:$0xff] }
  0x8f   : > { %v5169_v40 = vadd.f32 %v9210_v8, %v5011_v29  ;;  %v5184_v50 = vadd.f32 %v781_v57, %v5026_v42  ;;  %v5187_v11 = vadd.f32 %v782_v61, %v5029_v3  ;;  %v5190_v29 = vadd.f32 %v783_v9, %v5032_v16  ;;  %v9224_v61 = vld [vmem:[#allocation50_spill] sm:$0xff]  ;;  %v9241_v8 = vld [vmem:[#allocation47_spill] sm:$0xff]  ;;  %v9254_v43 = vld [vmem:[#allocation64_spill] sm:$0xff] }
  0x90   : > { %v5193_v12 = vadd.f32 %v784_v6, %v5035_v58  ;;  %v5196_v21 = vadd.f32 %v785_v36, %v5038_v13  ;;  %v5199_v18 = vadd.f32 %v786_v53, %v5041_v25  ;;  %v5202_v49 = vadd.f32 %v787_v33, %v5044_v15  ;;  %v9228_v36 = vld [vmem:[#allocation55_spill] sm:$0xff]  ;;  %v9230_v33 = vld [vmem:[#allocation56_spill] sm:$0xff] }
  0x91   : > { %v5205_v42 = vadd.f32 %v788_v55, %v5047_v62  ;;  %v5208_v3 = vadd.f32 %v789_v19, %v5050_v34  ;;  %v5211_v16 = vadd.f32 %v790_v48, %v5053_v39  ;;  %v5214_v58 = vadd.f32 %v791_v63, %v5056_v23  ;;  %v9212_v39 = vld [vmem:[#allocation164_spill] sm:$0xff]  ;;  %v9214_v23 = vld [vmem:[#allocation165_spill] sm:$0xff]  ;;  %v9234_v63 = vld [vmem:[#allocation38_spill] sm:$0xff] }
  0x92   : > { %v5217_v13 = vadd.f32 %v792_v37, %v5059_v59  ;;  %v5220_v25 = vadd.f32 %v793_v14, %v5062_v52  ;;  %v5223_v15 = vadd.f32 %v794_v41, %v5065_v1  ;;  %v5226_v62 = vadd.f32 %v795_v38, %v5068_v7  ;;  %v2993_v59 = vld [vmem:[%s8628_s1 + $0x6] ss:$0 sm:$0xff]  ;;  %v9216_v52 = vld [vmem:[#allocation43_spill] sm:$0xff]  ;;  %v9218_v1 = vld [vmem:[#allocation44_spill] sm:$0xff] }
  0x93   : > { %v5229_v34 = vadd.f32 %v796_v22, %v5071_v27  ;;  %v5232_v26 = vadd.f32 %v797_v44, %v9212_v39  ;;  %v5235_v2 = vadd.f32 %v798_v35, %v9214_v23  ;;  %v5241_v10 = vadd.f32 %v799_v56, %v9216_v52  ;;  %v9220_v7 = vld [vmem:[#allocation48_spill] sm:$0xff]  ;;  %v9222_v27 = vld [vmem:[#allocation49_spill] sm:$0xff]  ;;  %v9226_v35 = vld [vmem:[#allocation51_spill] sm:$0xff] }
  0x94   : > { %v5244_v32 = vadd.f32 %v800_v20, %v9218_v1  ;;  %v5247_v28 = vadd.f32 %v801_v17, %v9220_v7  ;;  %v5250_v57 = vadd.f32 %v802_v5, %v9222_v27  ;;  %v5253_v9 = vadd.f32 %v803_v47, %v9224_v61  ;;  %v9232_v20 = vld [vmem:[#allocation36_spill] sm:$0xff]  ;;  %v9233_v48 = vld [vmem:[#allocation37_spill] sm:$0xff]  ;;  %v9235_v14 = vld [vmem:[#allocation39_spill] sm:$0xff] }
  0x95   : > { %9211 = vst [vmem:[#allocation7_spill] sm:$0xff] %v5229_v34  ;;  %9213 = vst [vmem:[#allocation9_spill] sm:$0xff] %v5232_v26  ;;  %v5256_v6 = vadd.f32 %v804_v0, %v9226_v35  ;;  %v5259_v53 = vadd.f32 %v805_v51, %v9228_v36  ;;  %v5262_v55 = vadd.f32 %v806_v54, %v9230_v33  ;;  %v9236_v41 = vld [vmem:[#allocation40_spill] sm:$0xff]  ;;  %v9237_v0 = vld [vmem:[#allocation41_spill] sm:$0xff] }
  0x96   : > { %9215 = vst [vmem:[#allocation10_spill] sm:$0xff] %v5235_v2  ;;  %9217 = vst [vmem:[#allocation11_spill] sm:$0xff] %v5241_v10  ;;  %v876_v19 = vmul.f32 %v2993_v59, %v9232_v20  ;;  %v877_v17 = vmul.f32 %v2993_v59, %v9233_v48  ;;  %v878_v37 = vmul.f32 %v2993_v59, %v9234_v63  ;;  %v9238_v44 = vld [vmem:[#allocation42_spill] sm:$0xff]  ;;  %v9239_v5 = vld [vmem:[#allocation45_spill] sm:$0xff] }
  0x97   : > { %9219 = vst [vmem:[#allocation13_spill] sm:$0xff] %v5244_v32  ;;  %9221 = vst [vmem:[#allocation14_spill] sm:$0xff] %v5247_v28  ;;  %v879_v47 = vmul.f32 %v2993_v59, %v9235_v14  ;;  %v880_v38 = vmul.f32 %v2993_v59, %v9236_v41  ;;  %v881_v22 = vmul.f32 %v2993_v59, %v9237_v0  ;;  %v9240_v51 = vld [vmem:[#allocation46_spill] sm:$0xff]  ;;  %v9242_v23 = vld [vmem:[#allocation52_spill] sm:$0xff] }
  0x98   : > { %9223 = vst [vmem:[#allocation15_spill] sm:$0xff] %v5250_v57  ;;  %9225 = vst [vmem:[#allocation16_spill] sm:$0xff] %v5253_v9  ;;  %v882_v56 = vmul.f32 %v2993_v59, %v9238_v44  ;;  %v883_v31 = vmul.f32 %v2993_v59, %v9239_v5  ;;  %v884_v54 = vmul.f32 %v2993_v59, %v9240_v51  ;;  %v9243_v1 = vld [vmem:[#allocation53_spill] sm:$0xff]  ;;  %v9244_v27 = vld [vmem:[#allocation54_spill] sm:$0xff] }
  0x99   : > { %9227 = vst [vmem:[#allocation17_spill] sm:$0xff] %v5256_v6  ;;  %9229 = vst [vmem:[#allocation18_spill] sm:$0xff] %v5259_v53  ;;  %v885_v39 = vmul.f32 %v2993_v59, %v9241_v8  ;;  %v886_v52 = vmul.f32 %v2993_v59, %v9242_v23  ;;  %v887_v7 = vmul.f32 %v2993_v59, %v9243_v1  ;;  %v9245_v35 = vld [vmem:[#allocation57_spill] sm:$0xff]  ;;  %v9246_v33 = vld [vmem:[#allocation58_spill] sm:$0xff] }
  0x9a   : > { %9231 = vst [vmem:[#allocation19_spill] sm:$0xff] %v5262_v55  ;;  %v888_v61 = vmul.f32 %v2993_v59, %v9244_v27  ;;  %v889_v36 = vmul.f32 %v2993_v59, %v9245_v35  ;;  %v890_v20 = vmul.f32 %v2993_v59, %v9246_v33  ;;  %v9247_v48 = vld [vmem:[#allocation59_spill] sm:$0xff]  ;;  %v5281_v14 = vld [vmem:[%s3826_s7 + $0x181] sm:$0xff]  ;;  %v9250_v0 = vld [vmem:[#allocation60_spill] sm:$0xff]  ;;  %v895_v1 = vmul.f32 %v2993_v59, %v9253_v46 }
  0x9b   : > { %v891_v63 = vmul.f32 %v2993_v59, %v9247_v48  ;;  %9248 = vst [vmem:[#allocation20_spill] sm:$0xff] %v5281_v14  ;;  %v5284_v41 = vld [vmem:[%s3826_s7 + $0x189] sm:$0xff]  ;;  %v892_v44 = vmul.f32 %v2993_v59, %v9250_v0  ;;  %v9251_v5 = vld [vmem:[#allocation61_spill] sm:$0xff]  ;;  %v896_v27 = vmul.f32 %v2993_v59, %v9254_v43  ;;  %v9258_v9 = vld [vmem:[#allocation68_spill] sm:$0xff]  ;;  %v906_v43 = vmul.f32 %v2993_v59, %v5281_v14 }
  0x9c   : > { %9249 = vst [vmem:[#allocation21_spill] sm:$0xff] %v5284_v41  ;;  %v893_v51 = vmul.f32 %v2993_v59, %v9251_v5  ;;  %v9252_v8 = vld [vmem:[#allocation62_spill] sm:$0xff]  ;;  %v9255_v55 = vld [vmem:[#allocation65_spill] sm:$0xff]  ;;  %v9257_v6 = vld [vmem:[#allocation67_spill] sm:$0xff]  ;;  %v900_v57 = vmul.f32 %v2993_v59, %v9258_v9 }
  0x9d   : > { %v894_v23 = vmul.f32 %v2993_v59, %v9252_v8  ;;  %v897_v35 = vmul.f32 %v2993_v59, %v9255_v55  ;;  %v9256_v53 = vld [vmem:[#allocation66_spill] sm:$0xff]  ;;  %v899_v48 = vmul.f32 %v2993_v59, %v9257_v6  ;;  %v9259_v28 = vld [vmem:[#allocation69_spill] sm:$0xff]  ;;  %v9261_v2 = vld [vmem:[#allocation71_spill] sm:$0xff]  ;;  %v907_v55 = vmul.f32 %v2993_v59, %v5284_v41 }
  0x9e   : > { %v898_v33 = vmul.f32 %v2993_v59, %v9256_v53  ;;  %v901_v32 = vmul.f32 %v2993_v59, %v9259_v28  ;;  %v9260_v10 = vld [vmem:[#allocation70_spill] sm:$0xff]  ;;  %v903_v5 = vmul.f32 %v2993_v59, %v9261_v2  ;;  %v9262_v26 = vld [vmem:[#allocation72_spill] sm:$0xff]  ;;  %v9263_v34 = vld [vmem:[#allocation73_spill] sm:$0xff]  ;;  %v5303_v53 = vadd.f32 %v876_v19, %v5165_v60 }
  0x9f   : > { %v902_v0 = vmul.f32 %v2993_v59, %v9260_v10  ;;  %v904_v8 = vmul.f32 %v2993_v59, %v9262_v26  ;;  %v905_v46 = vmul.f32 %v2993_v59, %v9263_v34  ;;  %v5306_v6 = vadd.f32 %v877_v17, %v5169_v40  ;;  %v9307_v41 = vld [vmem:[#allocation93_spill] sm:$0xff]  ;;  %v9308_v14 = vld [vmem:[#allocation94_spill] sm:$0xff] }
  0xa0   : > { %v5309_v28 = vadd.f32 %v878_v37, %v5172_v30  ;;  %v5312_v10 = vadd.f32 %v879_v47, %v5175_v4  ;;  %v5315_v26 = vadd.f32 %v880_v38, %v5178_v45  ;;  %v5318_v34 = vadd.f32 %v881_v22, %v5181_v24  ;;  %v9276_v38 = vld [vmem:[#allocation15_spill] sm:$0xff] }
  0xa1   : > { %v5321_v2 = vadd.f32 %v882_v56, %v5184_v50  ;;  %v5324_v60 = vadd.f32 %v883_v31, %v5187_v11  ;;  %v5327_v40 = vadd.f32 %v884_v54, %v5190_v29  ;;  %v5330_v30 = vadd.f32 %v885_v39, %v5193_v12  ;;  %v9278_v56 = vld [vmem:[#allocation16_spill] sm:$0xff]  ;;  %v9280_v54 = vld [vmem:[#allocation17_spill] sm:$0xff] }
  0xa2   : > { %v5333_v4 = vadd.f32 %v886_v52, %v5196_v21  ;;  %v5336_v45 = vadd.f32 %v887_v7, %v5199_v18  ;;  %v5339_v24 = vadd.f32 %v888_v61, %v5202_v49  ;;  %v5342_v50 = vadd.f32 %v889_v36, %v5205_v42  ;;  %v9282_v52 = vld [vmem:[#allocation18_spill] sm:$0xff] }
  0xa3   : > { %v5345_v11 = vadd.f32 %v890_v20, %v5208_v3  ;;  %v5348_v29 = vadd.f32 %v891_v63, %v5211_v16  ;;  %v5351_v12 = vadd.f32 %v892_v44, %v5214_v58  ;;  %v5354_v21 = vadd.f32 %v893_v51, %v5217_v13  ;;  %v9264_v3 = vld [vmem:[#allocation7_spill] sm:$0xff]  ;;  %v9266_v16 = vld [vmem:[#allocation9_spill] sm:$0xff]  ;;  %v9268_v58 = vld [vmem:[#allocation10_spill] sm:$0xff] }
  0xa4   : > { %v5357_v18 = vadd.f32 %v894_v23, %v5220_v25  ;;  %v5360_v49 = vadd.f32 %v895_v1, %v5223_v15  ;;  %v5363_v42 = vadd.f32 %v896_v27, %v5226_v62  ;;  %v5366_v59 = vadd.f32 %v897_v35, %v9264_v3  ;;  %v3026_v13 = vld [vmem:[%s8628_s1 + $0x7] ss:$0 sm:$0xff]  ;;  %v9270_v25 = vld [vmem:[#allocation11_spill] sm:$0xff]  ;;  %v9274_v62 = vld [vmem:[#allocation14_spill] sm:$0xff] }
  0xa5   : > { %v5369_v9 = vadd.f32 %v898_v33, %v9266_v16  ;;  %v5372_v19 = vadd.f32 %v899_v48, %v9268_v58  ;;  %v5378_v17 = vadd.f32 %v900_v57, %v9270_v25  ;;  %v9272_v15 = vld [vmem:[#allocation13_spill] sm:$0xff]  ;;  %v5384_v47 = vadd.f32 %v902_v0, %v9274_v62  ;;  %v9284_v57 = vld [vmem:[#allocation19_spill] sm:$0xff]  ;;  %v9288_v44 = vld [vmem:[#allocation76_spill] sm:$0xff] }
  0xa6   : > { %9265 = vst [vmem:[#allocation22_spill] sm:$0xff] %v5366_v59  ;;  %v5381_v37 = vadd.f32 %v901_v32, %v9272_v15  ;;  %v5387_v22 = vadd.f32 %v903_v5, %v9276_v38  ;;  %v5390_v31 = vadd.f32 %v904_v8, %v9278_v56  ;;  %v5393_v39 = vadd.f32 %v905_v46, %v9280_v54  ;;  %v9286_v32 = vld [vmem:[#allocation74_spill] sm:$0xff]  ;;  %v9287_v20 = vld [vmem:[#allocation75_spill] sm:$0xff]  ;;  %v9289_v23 = vld [vmem:[#allocation77_spill] sm:$0xff] }
  0xa7   : > { %9267 = vst [vmem:[#allocation23_spill] sm:$0xff] %v5369_v9  ;;  %9269 = vst [vmem:[#allocation24_spill] sm:$0xff] %v5372_v19  ;;  %v5396_v7 = vadd.f32 %v906_v43, %v9282_v52  ;;  %v5399_v61 = vadd.f32 %v907_v55, %v9284_v57  ;;  %v977_v36 = vmul.f32 %v3026_v13, %v9286_v32  ;;  %v9290_v27 = vld [vmem:[#allocation78_spill] sm:$0xff]  ;;  %v9291_v33 = vld [vmem:[#allocation79_spill] sm:$0xff] }
  0xa8   : > { %9271 = vst [vmem:[#allocation25_spill] sm:$0xff] %v5378_v17  ;;  %9273 = vst [vmem:[#allocation26_spill] sm:$0xff] %v5381_v37  ;;  %v978_v63 = vmul.f32 %v3026_v13, %v9287_v20  ;;  %v979_v51 = vmul.f32 %v3026_v13, %v9288_v44  ;;  %v980_v1 = vmul.f32 %v3026_v13, %v9289_v23  ;;  %v9292_v0 = vld [vmem:[#allocation80_spill] sm:$0xff]  ;;  %v9293_v8 = vld [vmem:[#allocation81_spill] sm:$0xff] }
  0xa9   : > { %9275 = vst [vmem:[#allocation27_spill] sm:$0xff] %v5384_v47  ;;  %9277 = vst [vmem:[#allocation28_spill] sm:$0xff] %v5387_v22  ;;  %v981_v35 = vmul.f32 %v3026_v13, %v9290_v27  ;;  %v982_v48 = vmul.f32 %v3026_v13, %v9291_v33  ;;  %v983_v5 = vmul.f32 %v3026_v13, %v9292_v0  ;;  %v9294_v43 = vld [vmem:[#allocation82_spill] sm:$0xff]  ;;  %v9295_v3 = vld [vmem:[#allocation83_spill] sm:$0xff] }
  0xaa   : > { %9279 = vst [vmem:[#allocation29_spill] sm:$0xff] %v5390_v31  ;;  %9281 = vst [vmem:[#allocation30_spill] sm:$0xff] %v5393_v39  ;;  %v984_v46 = vmul.f32 %v3026_v13, %v9293_v8  ;;  %v985_v55 = vmul.f32 %v3026_v13, %v9294_v43  ;;  %v986_v16 = vmul.f32 %v3026_v13, %v9295_v3  ;;  %v9296_v58 = vld [vmem:[#allocation84_spill] sm:$0xff]  ;;  %v9297_v15 = vld [vmem:[#allocation85_spill] sm:$0xff] }
  0xab   : > { %9283 = vst [vmem:[#allocation31_spill] sm:$0xff] %v5396_v7  ;;  %9285 = vst [vmem:[#allocation32_spill] sm:$0xff] %v5399_v61  ;;  %v987_v25 = vmul.f32 %v3026_v13, %v9296_v58  ;;  %v988_v62 = vmul.f32 %v3026_v13, %v9297_v15  ;;  %v9298_v38 = vld [vmem:[#allocation86_spill] sm:$0xff]  ;;  %v9299_v54 = vld [vmem:[#allocation87_spill] sm:$0xff]  ;;  %v996_v15 = vmul.f32 %v3026_v13, %v9307_v41 }
  0xac   : > { %v989_v56 = vmul.f32 %v3026_v13, %v9298_v38  ;;  %v990_v52 = vmul.f32 %v3026_v13, %v9299_v54  ;;  %v9300_v57 = vld [vmem:[#allocation88_spill] sm:$0xff]  ;;  %v9301_v20 = vld [vmem:[#allocation89_spill] sm:$0xff]  ;;  %v5421_v27 = vld [vmem:[%s3826_s7 + $0x18a] sm:$0xff]  ;;  %v997_v38 = vmul.f32 %v3026_v13, %v9308_v14 }
  0xad   : > { %v991_v32 = vmul.f32 %v3026_v13, %v9300_v57  ;;  %v992_v44 = vmul.f32 %v3026_v13, %v9301_v20  ;;  %v5418_v23 = vld [vmem:[%s3826_s7 + $0x182] sm:$0xff]  ;;  %9303 = vst [vmem:[#allocation34_spill] sm:$0xff] %v5421_v27  ;;  %v9305_v8 = vld [vmem:[#allocation91_spill] sm:$0xff]  ;;  %v9306_v3 = vld [vmem:[#allocation92_spill] sm:$0xff] }
  0xae   : > { %9302 = vst [vmem:[#allocation33_spill] sm:$0xff] %v5418_v23  ;;  %v9304_v33 = vld [vmem:[#allocation90_spill] sm:$0xff]  ;;  %v994_v43 = vmul.f32 %v3026_v13, %v9305_v8  ;;  %v995_v58 = vmul.f32 %v3026_v13, %v9306_v3  ;;  %v9309_v61 = vld [vmem:[#allocation95_spill] sm:$0xff]  ;;  %v9310_v7 = vld [vmem:[#allocation96_spill] sm:$0xff]  ;;  %v1007_v14 = vmul.f32 %v3026_v13, %v5418_v23 }
  0xaf   : > { %v993_v0 = vmul.f32 %v3026_v13, %v9304_v33  ;;  %v998_v54 = vmul.f32 %v3026_v13, %v9309_v61  ;;  %v999_v57 = vmul.f32 %v3026_v13, %v9310_v7  ;;  %v9311_v39 = vld [vmem:[#allocation97_spill] sm:$0xff]  ;;  %v9312_v31 = vld [vmem:[#allocation98_spill] sm:$0xff]  ;;  %v9313_v47 = vld [vmem:[#allocation99_spill] sm:$0xff]  ;;  %v1008_v61 = vmul.f32 %v3026_v13, %v5421_v27 }
  0xb0   : > { %v1000_v20 = vmul.f32 %v3026_v13, %v9311_v39  ;;  %v1001_v22 = vmul.f32 %v3026_v13, %v9312_v31  ;;  %v1002_v37 = vmul.f32 %v3026_v13, %v9313_v47  ;;  %v9314_v17 = vld [vmem:[#allocation100_spill] sm:$0xff]  ;;  %v9315_v19 = vld [vmem:[#allocation101_spill] sm:$0xff]  ;;  %v9316_v9 = vld [vmem:[#allocation102_spill] sm:$0xff]  ;;  %v5440_v7 = vadd.f32 %v977_v36, %v5303_v53 }
  0xb1   : > { %v1003_v33 = vmul.f32 %v3026_v13, %v9314_v17  ;;  %v1004_v8 = vmul.f32 %v3026_v13, %v9315_v19  ;;  %v1005_v3 = vmul.f32 %v3026_v13, %v9316_v9  ;;  %v9317_v59 = vld [vmem:[#allocation103_spill] sm:$0xff]  ;;  %v5443_v39 = vadd.f32 %v978_v63, %v5306_v6  ;;  %v9362_v23 = vld [vmem:[#allocation124_spill] sm:$0xff] }
  0xb2   : > { %v1006_v41 = vmul.f32 %v3026_v13, %v9317_v59  ;;  %v5446_v47 = vadd.f32 %v979_v51, %v5309_v28  ;;  %v5449_v17 = vadd.f32 %v980_v1, %v5312_v10  ;;  %v5452_v9 = vadd.f32 %v981_v35, %v5315_v26  ;;  %v9330_v35 = vld [vmem:[#allocation28_spill] sm:$0xff]  ;;  %v9361_v27 = vld [vmem:[#allocation123_spill] sm:$0xff] }
  0xb3   : > { %v5455_v59 = vadd.f32 %v982_v48, %v5318_v34  ;;  %v5458_v19 = vadd.f32 %v983_v5, %v5321_v2  ;;  %v5461_v53 = vadd.f32 %v984_v46, %v5324_v60  ;;  %v5464_v6 = vadd.f32 %v985_v55, %v5327_v40  ;;  %v9332_v5 = vld [vmem:[#allocation29_spill] sm:$0xff]  ;;  %v9334_v55 = vld [vmem:[#allocation30_spill] sm:$0xff] }
  0xb4   : > { %v5467_v28 = vadd.f32 %v986_v16, %v5330_v30  ;;  %v5470_v10 = vadd.f32 %v987_v25, %v5333_v4  ;;  %v5473_v26 = vadd.f32 %v988_v62, %v5336_v45  ;;  %v5476_v34 = vadd.f32 %v989_v56, %v5339_v24  ;;  %v9336_v25 = vld [vmem:[#allocation31_spill] sm:$0xff] }
  0xb5   : > { %v5479_v2 = vadd.f32 %v990_v52, %v5342_v50  ;;  %v5482_v60 = vadd.f32 %v991_v32, %v5345_v11  ;;  %v5485_v40 = vadd.f32 %v992_v44, %v5348_v29  ;;  %v5488_v30 = vadd.f32 %v993_v0, %v5351_v12  ;;  %v9318_v11 = vld [vmem:[#allocation22_spill] sm:$0xff]  ;;  %v9320_v29 = vld [vmem:[#allocation23_spill] sm:$0xff]  ;;  %v9322_v12 = vld [vmem:[#allocation24_spill] sm:$0xff] }
  0xb6   : > { %v5491_v4 = vadd.f32 %v994_v43, %v5354_v21  ;;  %v5494_v45 = vadd.f32 %v995_v58, %v5357_v18  ;;  %v5497_v24 = vadd.f32 %v996_v15, %v5360_v49  ;;  %v5500_v50 = vadd.f32 %v997_v38, %v5363_v42  ;;  %v3059_v21 = vld [vmem:[%s8628_s1 + $0x8] ss:$0 sm:$0xff]  ;;  %v9324_v18 = vld [vmem:[#allocation25_spill] sm:$0xff]  ;;  %v9328_v42 = vld [vmem:[#allocation27_spill] sm:$0xff] }
  0xb7   : > { %v5503_v13 = vadd.f32 %v998_v54, %v9318_v11  ;;  %v5506_v31 = vadd.f32 %v999_v57, %v9320_v29  ;;  %v5509_v36 = vadd.f32 %v1000_v20, %v9322_v12  ;;  %v5515_v63 = vadd.f32 %v1001_v22, %v9324_v18  ;;  %v9326_v49 = vld [vmem:[#allocation26_spill] sm:$0xff]  ;;  %v9338_v22 = vld [vmem:[#allocation32_spill] sm:$0xff]  ;;  %v9341_v32 = vld [vmem:[#allocation105_spill] sm:$0xff] }
  0xb8   : > { %v5518_v51 = vadd.f32 %v1002_v37, %v9326_v49  ;;  %v5521_v1 = vadd.f32 %v1003_v33, %v9328_v42  ;;  %v5524_v48 = vadd.f32 %v1004_v8, %v9330_v35  ;;  %v5527_v46 = vadd.f32 %v1005_v3, %v9332_v5  ;;  %v9340_v37 = vld [vmem:[#allocation104_spill] sm:$0xff]  ;;  %v9342_v0 = vld [vmem:[#allocation106_spill] sm:$0xff]  ;;  %v9343_v58 = vld [vmem:[#allocation107_spill] sm:$0xff] }
  0xb9   : > { %9319 = vst [vmem:[#allocation35_spill] sm:$0xff] %v5503_v13  ;;  %9321 = vst [vmem:[#allocation8_spill] sm:$0xff] %v5506_v31  ;;  %v5530_v16 = vadd.f32 %v1006_v41, %v9334_v55  ;;  %v5533_v62 = vadd.f32 %v1007_v14, %v9336_v25  ;;  %v5536_v56 = vadd.f32 %v1008_v61, %v9338_v22  ;;  %v9344_v38 = vld [vmem:[#allocation108_spill] sm:$0xff]  ;;  %v9345_v57 = vld [vmem:[#allocation109_spill] sm:$0xff] }
  0xba   : > { %9323 = vst [vmem:[#allocation12_spill] sm:$0xff] %v5509_v36  ;;  %9325 = vst [vmem:[#allocation164_spill] sm:$0xff] %v5515_v63  ;;  %v1078_v52 = vmul.f32 %v3059_v21, %v9340_v37  ;;  %v1079_v44 = vmul.f32 %v3059_v21, %v9341_v32  ;;  %v1080_v43 = vmul.f32 %v3059_v21, %v9342_v0  ;;  %v9346_v33 = vld [vmem:[#allocation110_spill] sm:$0xff]  ;;  %v9347_v3 = vld [vmem:[#allocation111_spill] sm:$0xff] }
  0xbb   : > { %9327 = vst [vmem:[#allocation165_spill] sm:$0xff] %v5518_v51  ;;  %9329 = vst [vmem:[#allocation43_spill] sm:$0xff] %v5521_v1  ;;  %v1081_v15 = vmul.f32 %v3059_v21, %v9343_v58  ;;  %v1082_v54 = vmul.f32 %v3059_v21, %v9344_v38  ;;  %v1083_v20 = vmul.f32 %v3059_v21, %v9345_v57  ;;  %v9348_v14 = vld [vmem:[#allocation112_spill] sm:$0xff]  ;;  %v9349_v11 = vld [vmem:[#allocation113_spill] sm:$0xff] }
  0xbc   : > { %9331 = vst [vmem:[#allocation44_spill] sm:$0xff] %v5524_v48  ;;  %9333 = vst [vmem:[#allocation48_spill] sm:$0xff] %v5527_v46  ;;  %v1084_v8 = vmul.f32 %v3059_v21, %v9346_v33  ;;  %v1085_v41 = vmul.f32 %v3059_v21, %v9347_v3  ;;  %v1086_v61 = vmul.f32 %v3059_v21, %v9348_v14  ;;  %v9350_v12 = vld [vmem:[#allocation114_spill] sm:$0xff]  ;;  %v9351_v49 = vld [vmem:[#allocation115_spill] sm:$0xff] }
  0xbd   : > { %9335 = vst [vmem:[#allocation49_spill] sm:$0xff] %v5530_v16  ;;  %9337 = vst [vmem:[#allocation50_spill] sm:$0xff] %v5533_v62  ;;  %v1087_v29 = vmul.f32 %v3059_v21, %v9349_v11  ;;  %v1088_v18 = vmul.f32 %v3059_v21, %v9350_v12  ;;  %v1089_v42 = vmul.f32 %v3059_v21, %v9351_v49  ;;  %v9352_v35 = vld [vmem:[#allocation116_spill] sm:$0xff]  ;;  %v9353_v55 = vld [vmem:[#allocation117_spill] sm:$0xff] }
  0xbe   : > { %9339 = vst [vmem:[#allocation51_spill] sm:$0xff] %v5536_v56  ;;  %v1090_v5 = vmul.f32 %v3059_v21, %v9352_v35  ;;  %v1091_v25 = vmul.f32 %v3059_v21, %v9353_v55  ;;  %v9354_v22 = vld [vmem:[#allocation118_spill] sm:$0xff]  ;;  %v9355_v32 = vld [vmem:[#allocation119_spill] sm:$0xff]  ;;  %v9358_v57 = vld [vmem:[#allocation120_spill] sm:$0xff]  ;;  %v1097_v49 = vmul.f32 %v3059_v21, %v9361_v27  ;;  %v1098_v35 = vmul.f32 %v3059_v21, %v9362_v23 }
  0xbf   : > { %v1092_v37 = vmul.f32 %v3059_v21, %v9354_v22  ;;  %v1093_v0 = vmul.f32 %v3059_v21, %v9355_v32  ;;  %v5555_v58 = vld [vmem:[%s3826_s7 + $0x183] sm:$0xff]  ;;  %v5558_v38 = vld [vmem:[%s3826_s7 + $0x18b] sm:$0xff]  ;;  %v1094_v33 = vmul.f32 %v3059_v21, %v9358_v57  ;;  %v9366_v46 = vld [vmem:[#allocation128_spill] sm:$0xff] }
  0xc0   : > { %9356 = vst [vmem:[#allocation55_spill] sm:$0xff] %v5555_v58  ;;  %9357 = vst [vmem:[#allocation56_spill] sm:$0xff] %v5558_v38  ;;  %v9359_v3 = vld [vmem:[#allocation121_spill] sm:$0xff]  ;;  %v9360_v11 = vld [vmem:[#allocation122_spill] sm:$0xff]  ;;  %v1102_v48 = vmul.f32 %v3059_v21, %v9366_v46  ;;  %v1108_v23 = vmul.f32 %v3059_v21, %v5555_v58 }
  0xc1   : > { %v1095_v14 = vmul.f32 %v3059_v21, %v9359_v3  ;;  %v1096_v12 = vmul.f32 %v3059_v21, %v9360_v11  ;;  %v9363_v56 = vld [vmem:[#allocation125_spill] sm:$0xff]  ;;  %v9364_v62 = vld [vmem:[#allocation126_spill] sm:$0xff]  ;;  %v9365_v16 = vld [vmem:[#allocation127_spill] sm:$0xff] }
  0xc2   : > { %v1099_v55 = vmul.f32 %v3059_v21, %v9363_v56  ;;  %v1100_v22 = vmul.f32 %v3059_v21, %v9364_v62  ;;  %v1101_v32 = vmul.f32 %v3059_v21, %v9365_v16  ;;  %v9367_v1 = vld [vmem:[#allocation129_spill] sm:$0xff]  ;;  %v9368_v63 = vld [vmem:[#allocation130_spill] sm:$0xff]  ;;  %v9369_v36 = vld [vmem:[#allocation131_spill] sm:$0xff]  ;;  %v1109_v56 = vmul.f32 %v3059_v21, %v5558_v38 }
  0xc3   : > { %v1103_v51 = vmul.f32 %v3059_v21, %v9367_v1  ;;  %v1104_v57 = vmul.f32 %v3059_v21, %v9368_v63  ;;  %v1105_v3 = vmul.f32 %v3059_v21, %v9369_v36  ;;  %v9370_v31 = vld [vmem:[#allocation132_spill] sm:$0xff]  ;;  %v9371_v13 = vld [vmem:[#allocation133_spill] sm:$0xff]  ;;  %v5577_v62 = vadd.f32 %v1078_v52, %v5440_v7  ;;  %v9416_v58 = vld [vmem:[#allocation154_spill] sm:$0xff] }
  0xc4   : > { %v1106_v11 = vmul.f32 %v3059_v21, %v9370_v31  ;;  %v1107_v27 = vmul.f32 %v3059_v21, %v9371_v13  ;;  %v5580_v16 = vadd.f32 %v1079_v44, %v5443_v39  ;;  %v5583_v1 = vadd.f32 %v1080_v43, %v5446_v47  ;;  %v9415_v38 = vld [vmem:[#allocation153_spill] sm:$0xff] }
  0xc5   : > { %v5586_v63 = vadd.f32 %v1081_v15, %v5449_v17  ;;  %v5589_v31 = vadd.f32 %v1082_v54, %v5452_v9  ;;  %v5592_v13 = vadd.f32 %v1083_v20, %v5455_v59  ;;  %v5595_v36 = vadd.f32 %v1084_v8, %v5458_v19  ;;  %v9384_v54 = vld [vmem:[#allocation44_spill] sm:$0xff] }
  0xc6   : > { %v5598_v7 = vadd.f32 %v1085_v41, %v5461_v53  ;;  %v5601_v39 = vadd.f32 %v1086_v61, %v5464_v6  ;;  %v5604_v47 = vadd.f32 %v1087_v29, %v5467_v28  ;;  %v5607_v17 = vadd.f32 %v1088_v18, %v5470_v10  ;;  %v9386_v8 = vld [vmem:[#allocation48_spill] sm:$0xff]  ;;  %v9388_v61 = vld [vmem:[#allocation49_spill] sm:$0xff]  ;;  %v9390_v18 = vld [vmem:[#allocation50_spill] sm:$0xff] }
  0xc7   : > { %v5610_v9 = vadd.f32 %v1089_v42, %v5473_v26  ;;  %v5613_v59 = vadd.f32 %v1090_v5, %v5476_v34  ;;  %v5616_v19 = vadd.f32 %v1091_v25, %v5479_v2  ;;  %v5619_v53 = vadd.f32 %v1092_v37, %v5482_v60  ;;  %v9372_v60 = vld [vmem:[#allocation35_spill] sm:$0xff] }
  0xc8   : > { %v5622_v6 = vadd.f32 %v1093_v0, %v5485_v40  ;;  %v5625_v28 = vadd.f32 %v1094_v33, %v5488_v30  ;;  %v5628_v10 = vadd.f32 %v1095_v14, %v5491_v4  ;;  %v5631_v26 = vadd.f32 %v1096_v12, %v5494_v45  ;;  %v9374_v40 = vld [vmem:[#allocation8_spill] sm:$0xff]  ;;  %v3092_v4 = vld [vmem:[%s8628_s1 + $0x9] ss:$0 sm:$0xff]  ;;  %v9395_v37 = vld [vmem:[#allocation135_spill] sm:$0xff] }
  0xc9   : > { %v5634_v34 = vadd.f32 %v1097_v49, %v5497_v24  ;;  %v5637_v2 = vadd.f32 %v1098_v35, %v5500_v50  ;;  %v5640_v21 = vadd.f32 %v1099_v55, %v9372_v60  ;;  %v5643_v46 = vadd.f32 %v1100_v22, %v9374_v40  ;;  %v9376_v30 = vld [vmem:[#allocation12_spill] sm:$0xff]  ;;  %v9380_v24 = vld [vmem:[#allocation165_spill] sm:$0xff]  ;;  %v9382_v50 = vld [vmem:[#allocation43_spill] sm:$0xff] }
  0xca   : > { %v5646_v52 = vadd.f32 %v1101_v32, %v9376_v30  ;;  %v9378_v45 = vld [vmem:[#allocation164_spill] sm:$0xff]  ;;  %v5655_v43 = vadd.f32 %v1103_v51, %v9380_v24  ;;  %v5658_v15 = vadd.f32 %v1104_v57, %v9382_v50  ;;  %v5661_v20 = vadd.f32 %v1105_v3, %v9384_v54  ;;  %v9394_v51 = vld [vmem:[#allocation134_spill] sm:$0xff]  ;;  %v9397_v12 = vld [vmem:[#allocation137_spill] sm:$0xff] }
  0xcb   : > { %9373 = vst [vmem:[#allocation36_spill] sm:$0xff] %v5640_v21  ;;  %9375 = vst [vmem:[#allocation37_spill] sm:$0xff] %v5643_v46  ;;  %v5652_v44 = vadd.f32 %v1102_v48, %v9378_v45  ;;  %v5664_v41 = vadd.f32 %v1106_v11, %v9386_v8  ;;  %v5667_v29 = vadd.f32 %v1107_v27, %v9388_v61  ;;  %v9392_v48 = vld [vmem:[#allocation51_spill] sm:$0xff]  ;;  %v9396_v33 = vld [vmem:[#allocation136_spill] sm:$0xff] }
  0xcc   : > { %9377 = vst [vmem:[#allocation38_spill] sm:$0xff] %v5646_v52  ;;  %9381 = vst [vmem:[#allocation40_spill] sm:$0xff] %v5655_v43  ;;  %v5670_v42 = vadd.f32 %v1108_v23, %v9390_v18  ;;  %v5673_v5 = vadd.f32 %v1109_v56, %v9392_v48  ;;  %v1179_v25 = vmul.f32 %v3092_v4, %v9394_v51  ;;  %v9398_v35 = vld [vmem:[#allocation138_spill] sm:$0xff]  ;;  %v9399_v22 = vld [vmem:[#allocation139_spill] sm:$0xff] }
  0xcd   : > { %9379 = vst [vmem:[#allocation39_spill] sm:$0xff] %v5652_v44  ;;  %9383 = vst [vmem:[#allocation41_spill] sm:$0xff] %v5658_v15  ;;  %v1180_v0 = vmul.f32 %v3092_v4, %v9395_v37  ;;  %v1181_v14 = vmul.f32 %v3092_v4, %v9396_v33  ;;  %v1182_v49 = vmul.f32 %v3092_v4, %v9397_v12  ;;  %v9400_v57 = vld [vmem:[#allocation140_spill] sm:$0xff]  ;;  %v9401_v11 = vld [vmem:[#allocation141_spill] sm:$0xff] }
  0xce   : > { %9385 = vst [vmem:[#allocation42_spill] sm:$0xff] %v5661_v20  ;;  %9387 = vst [vmem:[#allocation45_spill] sm:$0xff] %v5664_v41  ;;  %v1183_v55 = vmul.f32 %v3092_v4, %v9398_v35  ;;  %v1184_v32 = vmul.f32 %v3092_v4, %v9399_v22  ;;  %v1185_v3 = vmul.f32 %v3092_v4, %v9400_v57  ;;  %v9402_v23 = vld [vmem:[#allocation142_spill] sm:$0xff]  ;;  %v9403_v60 = vld [vmem:[#allocation143_spill] sm:$0xff] }
  0xcf   : > { %9389 = vst [vmem:[#allocation46_spill] sm:$0xff] %v5667_v29  ;;  %9391 = vst [vmem:[#allocation47_spill] sm:$0xff] %v5670_v42  ;;  %v1186_v27 = vmul.f32 %v3092_v4, %v9401_v11  ;;  %v1187_v56 = vmul.f32 %v3092_v4, %v9402_v23  ;;  %v1188_v40 = vmul.f32 %v3092_v4, %v9403_v60  ;;  %v9404_v30 = vld [vmem:[#allocation144_spill] sm:$0xff]  ;;  %v9405_v24 = vld [vmem:[#allocation145_spill] sm:$0xff] }
  0xd0   : > { %9393 = vst [vmem:[#allocation52_spill] sm:$0xff] %v5673_v5  ;;  %v1189_v45 = vmul.f32 %v3092_v4, %v9404_v30  ;;  %v1190_v50 = vmul.f32 %v3092_v4, %v9405_v24  ;;  %v9406_v54 = vld [vmem:[#allocation146_spill] sm:$0xff]  ;;  %v9407_v61 = vld [vmem:[#allocation147_spill] sm:$0xff]  ;;  %v9408_v48 = vld [vmem:[#allocation148_spill] sm:$0xff]  ;;  %v1198_v24 = vmul.f32 %v3092_v4, %v9415_v38 }
  0xd1   : > { %v1191_v8 = vmul.f32 %v3092_v4, %v9406_v54  ;;  %v1192_v18 = vmul.f32 %v3092_v4, %v9407_v61  ;;  %v1193_v51 = vmul.f32 %v3092_v4, %v9408_v48  ;;  %v9409_v37 = vld [vmem:[#allocation149_spill] sm:$0xff]  ;;  %v5695_v35 = vld [vmem:[%s3826_s7 + $0x18c] sm:$0xff]  ;;  %v9414_v60 = vld [vmem:[#allocation152_spill] sm:$0xff]  ;;  %v1199_v54 = vmul.f32 %v3092_v4, %v9416_v58 }
  0xd2   : > { %v1194_v33 = vmul.f32 %v3092_v4, %v9409_v37  ;;  %v5692_v12 = vld [vmem:[%s3826_s7 + $0x184] sm:$0xff]  ;;  %9411 = vst [vmem:[#allocation54_spill] sm:$0xff] %v5695_v35  ;;  %v9413_v11 = vld [vmem:[#allocation151_spill] sm:$0xff]  ;;  %v1197_v30 = vmul.f32 %v3092_v4, %v9414_v60  ;;  %v9418_v42 = vld [vmem:[#allocation156_spill] sm:$0xff] }
  0xd3   : > { %9410 = vst [vmem:[#allocation53_spill] sm:$0xff] %v5692_v12  ;;  %v9412_v22 = vld [vmem:[#allocation150_spill] sm:$0xff]  ;;  %v1196_v23 = vmul.f32 %v3092_v4, %v9413_v11  ;;  %v9417_v5 = vld [vmem:[#allocation155_spill] sm:$0xff]  ;;  %v1201_v48 = vmul.f32 %v3092_v4, %v9418_v42  ;;  %v9419_v29 = vld [vmem:[#allocation157_spill] sm:$0xff]  ;;  %v1209_v58 = vmul.f32 %v3092_v4, %v5692_v12  ;;  %v5714_v42 = vadd.f32 %v1179_v25, %v5577_v62 }
  0xd4   : > { %v1195_v57 = vmul.f32 %v3092_v4, %v9412_v22  ;;  %v1200_v61 = vmul.f32 %v3092_v4, %v9417_v5  ;;  %v1202_v37 = vmul.f32 %v3092_v4, %v9419_v29  ;;  %v9420_v41 = vld [vmem:[#allocation158_spill] sm:$0xff]  ;;  %v9421_v15 = vld [vmem:[#allocation159_spill] sm:$0xff]  ;;  %v9422_v44 = vld [vmem:[#allocation160_spill] sm:$0xff]  ;;  %v1210_v5 = vmul.f32 %v3092_v4, %v5695_v35 }
  0xd5   : > { %v1203_v20 = vmul.f32 %v3092_v4, %v9420_v41  ;;  %v1204_v43 = vmul.f32 %v3092_v4, %v9421_v15  ;;  %v1205_v22 = vmul.f32 %v3092_v4, %v9422_v44  ;;  %v9423_v52 = vld [vmem:[#allocation161_spill] sm:$0xff]  ;;  %v9424_v46 = vld [vmem:[#allocation162_spill] sm:$0xff]  ;;  %v9425_v21 = vld [vmem:[#allocation163_spill] sm:$0xff]  ;;  %v5717_v29 = vadd.f32 %v1180_v0, %v5580_v16 }
  0xd6   : > { %v1206_v11 = vmul.f32 %v3092_v4, %v9423_v52  ;;  %v1207_v60 = vmul.f32 %v3092_v4, %v9424_v46  ;;  %v1208_v38 = vmul.f32 %v3092_v4, %v9425_v21  ;;  %v5720_v15 = vadd.f32 %v1181_v14, %v5583_v1  ;;  %v3094_v4 = vld [vmem:[%s3826_s7 + $0x38] sm:$0xff]  ;;  %v5787_v25 = vld [vmem:[%s3826_s7 + $0x60] sm:$0xff]  ;;  %v5790_v0 = vld [vmem:[%s3826_s7 + $0x68] sm:$0xff] }
  0xd7   : > { %v5723_v52 = vadd.f32 %v1182_v49, %v5586_v63  ;;  %v5726_v21 = vadd.f32 %v1183_v55, %v5589_v31  ;;  %v5729_v46 = vadd.f32 %v1184_v32, %v5592_v13  ;;  %v5732_v62 = vadd.f32 %v1185_v3, %v5595_v36  ;;  %9428 = vst [vmem:[#allocation59_spill] sm:$0xff] %v5787_v25  ;;  %v5793_v14 = vld [vmem:[%s3826_s7 + $0x78] sm:$0xff]  ;;  %v9433_v32 = vld [vmem:[#allocation38_spill] sm:$0xff]  ;;  %v5808_v3 = vld [vmem:[%s3826_s7 + $0x80] sm:$0xff] }
  0xd8   : > { %v5735_v16 = vadd.f32 %v1186_v27, %v5598_v7  ;;  %v5738_v1 = vadd.f32 %v1187_v56, %v5601_v39  ;;  %v5741_v63 = vadd.f32 %v1188_v40, %v5604_v47  ;;  %v5744_v31 = vadd.f32 %v1189_v45, %v5607_v17  ;;  %v5764_v17 = vld [vmem:[%s8628_s1 + $0xa] ss:$0 sm:$0xff]  ;;  %9429 = vst [vmem:[#allocation60_spill] sm:$0xff] %v5790_v0  ;;  %v5811_v27 = vld [vmem:[%s3826_s7 + $0x90] sm:$0xff]  ;;  %v5814_v56 = vld [vmem:[%s3826_s7 + $0x98] sm:$0xff] }
  0xd9   : > { %v5747_v13 = vadd.f32 %v1190_v50, %v5610_v9  ;;  %v5750_v36 = vadd.f32 %v1191_v8, %v5613_v59  ;;  %v5753_v7 = vadd.f32 %v1192_v18, %v5616_v19  ;;  %v5756_v39 = vadd.f32 %v1193_v51, %v5619_v53  ;;  %v3093_v9 = vld [vmem:[%s3826_s7 + $0x30] sm:$0xff]  ;;  %v5769_v59 = vld [vmem:[%s3826_s7 + $0x48] sm:$0xff]  ;;  %9430 = vst [vmem:[#allocation61_spill] sm:$0xff] %v5793_v14  ;;  %v9439_v45 = vld [vmem:[#allocation40_spill] sm:$0xff] }
  0xda   : > { %v5759_v47 = vadd.f32 %v1194_v33, %v5622_v6  ;;  %9426 = vst [vmem:[#allocation57_spill] sm:$0xff] %v5769_v59  ;;  %v5772_v19 = vld [vmem:[%s3826_s7 + $0x50] sm:$0xff]  ;;  %v5775_v53 = vadd.f32 %v1195_v57, %v5625_v28  ;;  %v5778_v6 = vadd.f32 %v1196_v23, %v5628_v10  ;;  %v5781_v44 = vadd.f32 %v1197_v30, %v5631_v26  ;;  %v9431_v10 = vld [vmem:[#allocation36_spill] sm:$0xff]  ;;  %v9432_v26 = vld [vmem:[#allocation37_spill] sm:$0xff] }
  0xdb   : > { %9427 = vst [vmem:[#allocation58_spill] sm:$0xff] %v5772_v19  ;;  %v5784_v41 = vadd.f32 %v1198_v24, %v5634_v34  ;;  %v5796_v28 = vadd.f32 %v1199_v54, %v5637_v2  ;;  %v5799_v49 = vadd.f32 %v1200_v61, %v9431_v10  ;;  %v5802_v55 = vadd.f32 %v1201_v48, %v9432_v26  ;;  %v9437_v2 = vld [vmem:[#allocation39_spill] sm:$0xff]  ;;  %v9441_v8 = vld [vmem:[#allocation41_spill] sm:$0xff]  ;;  %v9443_v51 = vld [vmem:[#allocation42_spill] sm:$0xff] }
  0xdc   : > { %v5805_v34 = vadd.f32 %v1202_v37, %v9433_v32  ;;  %9434 = vst [vmem:[#allocation62_spill] sm:$0xff] %v5808_v3  ;;  %9435 = vst [vmem:[#allocation63_spill] sm:$0xff] %v5811_v27  ;;  %v5817_v40 = vadd.f32 %v1203_v20, %v9437_v2  ;;  %v5820_v50 = vadd.f32 %v1204_v43, %v9439_v45  ;;  %v5829_v57 = vld [vmem:[%s3826_s7 + $0xa8] sm:$0xff]  ;;  %v5832_v23 = vld [vmem:[%s3826_s7 + $0xb0] sm:$0xff] }
  0xdd   : > { %9436 = vst [vmem:[#allocation64_spill] sm:$0xff] %v5814_v56  ;;  %v5823_v18 = vadd.f32 %v1205_v22, %v9441_v8  ;;  %v5826_v33 = vadd.f32 %v1206_v11, %v9443_v51  ;;  %9445 = vst [vmem:[#allocation69_spill] sm:$0xff] %v5829_v57  ;;  %v5835_v30 = vld [vmem:[%s3826_s7 + $0xc0] sm:$0xff]  ;;  %v9450_v54 = vld [vmem:[#allocation46_spill] sm:$0xff]  ;;  %v1283_v2 = vmul.f32 %v5764_v17, %v5769_v59 }
  0xde   : > { %9438 = vst [vmem:[#allocation65_spill] sm:$0xff] %v5817_v40  ;;  %9440 = vst [vmem:[#allocation66_spill] sm:$0xff] %v5820_v50  ;;  %v9448_v24 = vld [vmem:[#allocation45_spill] sm:$0xff]  ;;  %v5841_v43 = vadd.f32 %v1208_v38, %v9450_v54  ;;  %v9452_v61 = vld [vmem:[#allocation47_spill] sm:$0xff]  ;;  %v1284_v45 = vmul.f32 %v5764_v17, %v5772_v19  ;;  %v1287_v54 = vmul.f32 %v5764_v17, %v5793_v14 }
  0xdf   : > { %9442 = vst [vmem:[#allocation67_spill] sm:$0xff] %v5823_v18  ;;  %9444 = vst [vmem:[#allocation68_spill] sm:$0xff] %v5826_v33  ;;  %v5838_v20 = vadd.f32 %v1207_v60, %v9448_v24  ;;  %v5844_v48 = vadd.f32 %v1209_v58, %v9452_v61  ;;  %v9454_v37 = vld [vmem:[#allocation52_spill] sm:$0xff]  ;;  %v5850_v11 = vld [vmem:[%s3826_s7 + $0xc8] sm:$0xff]  ;;  %v1281_v58 = vmul.f32 %v5764_v17, %v3093_v9 }
  0xe0   : > { %9446 = vst [vmem:[#allocation70_spill] sm:$0xff] %v5832_v23  ;;  %9447 = vst [vmem:[#allocation71_spill] sm:$0xff] %v5835_v30  ;;  %v5847_v22 = vadd.f32 %v1210_v5, %v9454_v37  ;;  %v5853_v10 = vld [vmem:[%s3826_s7 + $0xd8] sm:$0xff]  ;;  %v5856_v26 = vld [vmem:[%s3826_s7 + $0xe0] sm:$0xff]  ;;  %v1282_v5 = vmul.f32 %v5764_v17, %v3094_v4  ;;  %v1285_v9 = vmul.f32 %v5764_v17, %v5787_v25 }
  0xe1   : > { %9449 = vst [vmem:[#allocation72_spill] sm:$0xff] %v5838_v20  ;;  %9451 = vst [vmem:[#allocation73_spill] sm:$0xff] %v5841_v43  ;;  %v5859_v60 = vld [vmem:[%s3826_s7 + $0xf0] sm:$0xff]  ;;  %v5862_v32 = vld [vmem:[%s3826_s7 + $0xf8] sm:$0xff]  ;;  %v1286_v4 = vmul.f32 %v5764_v17, %v5790_v0  ;;  %v1288_v61 = vmul.f32 %v5764_v17, %v5808_v3  ;;  %v1289_v25 = vmul.f32 %v5764_v17, %v5811_v27 }
  0xe2   : > { %9453 = vst [vmem:[#allocation7_spill] sm:$0xff] %v5844_v48  ;;  %9455 = vst [vmem:[#allocation9_spill] sm:$0xff] %v5847_v22  ;;  %v5865_v38 = vld [vmem:[%s3826_s7 + $0x108] sm:$0xff]  ;;  %v5874_v8 = vld [vmem:[%s3826_s7 + $0x110] sm:$0xff]  ;;  %v1290_v0 = vmul.f32 %v5764_v17, %v5814_v56  ;;  %v1291_v14 = vmul.f32 %v5764_v17, %v5829_v57  ;;  %v1292_v35 = vmul.f32 %v5764_v17, %v5832_v23 }
  0xe3   : > { %9456 = vst [vmem:[#allocation10_spill] sm:$0xff] %v5850_v11  ;;  %9457 = vst [vmem:[#allocation11_spill] sm:$0xff] %v5853_v10  ;;  %v5877_v51 = vld [vmem:[%s3826_s7 + $0x120] sm:$0xff]  ;;  %v5880_v24 = vld [vmem:[%s3826_s7 + $0x128] sm:$0xff]  ;;  %v1293_v48 = vmul.f32 %v5764_v17, %v5835_v30  ;;  %v1294_v27 = vmul.f32 %v5764_v17, %v5850_v11  ;;  %v1295_v56 = vmul.f32 %v5764_v17, %v5853_v10 }
  0xe4   : > { %9458 = vst [vmem:[#allocation13_spill] sm:$0xff] %v5856_v26  ;;  %9459 = vst [vmem:[#allocation14_spill] sm:$0xff] %v5859_v60  ;;  %v5891_v37 = vld [vmem:[%s3826_s7 + $0x138] sm:$0xff]  ;;  %v5894_v19 = vld [vmem:[%s3826_s7 + $0x140] sm:$0xff]  ;;  %v1296_v57 = vmul.f32 %v5764_v17, %v5856_v26  ;;  %v1297_v20 = vmul.f32 %v5764_v17, %v5859_v60  ;;  %v1298_v33 = vmul.f32 %v5764_v17, %v5862_v32 }
  0xe5   : > { %9460 = vst [vmem:[#allocation15_spill] sm:$0xff] %v5862_v32  ;;  %9461 = vst [vmem:[#allocation16_spill] sm:$0xff] %v5865_v38  ;;  %v5897_v59 = vld [vmem:[%s3826_s7 + $0x150] sm:$0xff]  ;;  %v5908_v3 = vld [vmem:[%s3826_s7 + $0x158] sm:$0xff]  ;;  %v1299_v30 = vmul.f32 %v5764_v17, %v5865_v38  ;;  %v1300_v11 = vmul.f32 %v5764_v17, %v5874_v8  ;;  %v1301_v10 = vmul.f32 %v5764_v17, %v5877_v51 }
  0xe6   : > { %9462 = vst [vmem:[#allocation17_spill] sm:$0xff] %v5874_v8  ;;  %9463 = vst [vmem:[#allocation18_spill] sm:$0xff] %v5877_v51  ;;  %v5911_v12 = vld [vmem:[%s3826_s7 + $0x168] sm:$0xff]  ;;  %v5914_v22 = vld [vmem:[%s3826_s7 + $0x170] sm:$0xff]  ;;  %v1302_v26 = vmul.f32 %v5764_v17, %v5880_v24  ;;  %v1303_v18 = vmul.f32 %v5764_v17, %v5891_v37  ;;  %v1304_v60 = vmul.f32 %v5764_v17, %v5894_v19 }
  0xe7   : > { %9464 = vst [vmem:[#allocation19_spill] sm:$0xff] %v5880_v24  ;;  %9465 = vst [vmem:[#allocation74_spill] sm:$0xff] %v5891_v37  ;;  %v5925_v43 = vld [vmem:[%s3826_s7 + $0x198] sm:$0xff]  ;;  %v5928_v23 = vld [vmem:[%s3826_s7 + $0x1a0] sm:$0xff]  ;;  %v1305_v32 = vmul.f32 %v5764_v17, %v5897_v59  ;;  %v1306_v38 = vmul.f32 %v5764_v17, %v5908_v3  ;;  %v1307_v8 = vmul.f32 %v5764_v17, %v5911_v12 }
  0xe8   : > { %9466 = vst [vmem:[#allocation75_spill] sm:$0xff] %v5894_v19  ;;  %9467 = vst [vmem:[#allocation76_spill] sm:$0xff] %v5897_v59  ;;  %v1308_v51 = vmul.f32 %v5764_v17, %v5914_v22  ;;  %v9473_v50 = vld [vmem:[#allocation6_spill] sm:$0xff]  ;;  %v9474_v40 = vld [vmem:[#allocation5_spill] sm:$0xff]  ;;  %v1311_v19 = vmul.f32 %v5764_v17, %v5925_v43  ;;  %v1312_v59 = vmul.f32 %v5764_v17, %v5928_v23 }
  0xe9   : > { %9468 = vst [vmem:[#allocation77_spill] sm:$0xff] %v5908_v3  ;;  %9469 = vst [vmem:[#allocation78_spill] sm:$0xff] %v5911_v12  ;;  %v1309_v24 = vmul.f32 %v5764_v17, %v9473_v50  ;;  %v1310_v37 = vmul.f32 %v5764_v17, %v9474_v40  ;;  %v5963_v3 = vadd.f32 %v1281_v58, %v5714_v42  ;;  %v9494_v58 = vld [vmem:[#allocation72_spill] sm:$0xff] }
  0xea   : > { %9470 = vst [vmem:[#allocation79_spill] sm:$0xff] %v5914_v22  ;;  %9471 = vst [vmem:[#allocation80_spill] sm:$0xff] %v5925_v43  ;;  %v5966_v12 = vadd.f32 %v1282_v5, %v5717_v29  ;;  %v5969_v22 = vadd.f32 %v1283_v2, %v5720_v15  ;;  %v5972_v50 = vadd.f32 %v1284_v45, %v5723_v52  ;;  %v9496_v5 = vld [vmem:[#allocation73_spill] sm:$0xff]  ;;  %v9498_v2 = vld [vmem:[#allocation7_spill] sm:$0xff] }
  0xeb   : > { %9472 = vst [vmem:[#allocation81_spill] sm:$0xff] %v5928_v23  ;;  %v5975_v40 = vadd.f32 %v1285_v9, %v5726_v21  ;;  %v5978_v17 = vadd.f32 %v1286_v4, %v5729_v46  ;;  %v5981_v42 = vadd.f32 %v1287_v54, %v5732_v62  ;;  %v5984_v29 = vadd.f32 %v1288_v61, %v5735_v16  ;;  %v6099_v9 = vld [vmem:[%s3826_s7 + $0xc9] sm:$0xff]  ;;  %v6102_v4 = vld [vmem:[%s3826_s7 + $0xd9] sm:$0xff]  ;;  %v6105_v54 = vld [vmem:[%s3826_s7 + $0xe1] sm:$0xff] }
  0xec   : > { %v5987_v15 = vadd.f32 %v1289_v25, %v5738_v1  ;;  %v5990_v52 = vadd.f32 %v1290_v0, %v5741_v63  ;;  %v5993_v21 = vadd.f32 %v1291_v14, %v5744_v31  ;;  %v5996_v46 = vadd.f32 %v1292_v35, %v5747_v13  ;;  %v6013_v31 = vld [vmem:[%s8628_s1 + $0xb] ss:$0 sm:$0xff]  ;;  %v3126_v35 = vld [vmem:[%s3826_s7 + $0x31] sm:$0xff]  ;;  %v3127_v13 = vld [vmem:[%s3826_s7 + $0x39] sm:$0xff]  ;;  %9502 = vst [vmem:[#allocation101_spill] sm:$0xff] %v6099_v9 }
  0xed   : > { %v5999_v62 = vadd.f32 %v1293_v48, %v5750_v36  ;;  %v6002_v16 = vadd.f32 %v1294_v27, %v5753_v7  ;;  %v6005_v1 = vadd.f32 %v1295_v56, %v5756_v39  ;;  %v6008_v63 = vadd.f32 %v1296_v57, %v5759_v47  ;;  %v6018_v36 = vld [vmem:[%s3826_s7 + $0x49] sm:$0xff]  ;;  %v6021_v7 = vld [vmem:[%s3826_s7 + $0x51] sm:$0xff]  ;;  %v6036_v14 = vld [vmem:[%s3826_s7 + $0x61] sm:$0xff]  ;;  %9503 = vst [vmem:[#allocation102_spill] sm:$0xff] %v6102_v4 }
  0xee   : > { %9475 = vst [vmem:[#allocation82_spill] sm:$0xff] %v6018_v36  ;;  %9476 = vst [vmem:[#allocation83_spill] sm:$0xff] %v6021_v7  ;;  %v6024_v39 = vadd.f32 %v1297_v20, %v5775_v53  ;;  %v6027_v47 = vadd.f32 %v1298_v33, %v5778_v6  ;;  %v6030_v25 = vadd.f32 %v1299_v30, %v5781_v44  ;;  %v6039_v27 = vld [vmem:[%s3826_s7 + $0x69] sm:$0xff]  ;;  %v6042_v56 = vld [vmem:[%s3826_s7 + $0x79] sm:$0xff] }
  0xef   : > { %v6033_v0 = vadd.f32 %v1300_v11, %v5784_v41  ;;  %9477 = vst [vmem:[#allocation84_spill] sm:$0xff] %v6036_v14  ;;  %9478 = vst [vmem:[#allocation85_spill] sm:$0xff] %v6039_v27  ;;  %v6045_v53 = vadd.f32 %v1301_v10, %v5796_v28  ;;  %v6048_v6 = vadd.f32 %v1302_v26, %v5799_v49  ;;  %v6057_v33 = vld [vmem:[%s3826_s7 + $0x81] sm:$0xff]  ;;  %v6060_v57 = vld [vmem:[%s3826_s7 + $0x91] sm:$0xff] }
  0xf0   : > { %9479 = vst [vmem:[#allocation86_spill] sm:$0xff] %v6042_v56  ;;  %v6051_v44 = vadd.f32 %v1303_v18, %v5802_v55  ;;  %v6054_v41 = vadd.f32 %v1304_v60, %v5805_v34  ;;  %9480 = vst [vmem:[#allocation87_spill] sm:$0xff] %v6057_v33  ;;  %v6063_v30 = vld [vmem:[%s3826_s7 + $0x99] sm:$0xff]  ;;  %v9485_v20 = vld [vmem:[#allocation66_spill] sm:$0xff]  ;;  %v6093_v45 = vadd.f32 %v1311_v19, %v9498_v2 }
  0xf1   : > { %9481 = vst [vmem:[#allocation88_spill] sm:$0xff] %v6060_v57  ;;  %9482 = vst [vmem:[#allocation89_spill] sm:$0xff] %v6063_v30  ;;  %v9483_v28 = vld [vmem:[#allocation65_spill] sm:$0xff]  ;;  %v6069_v55 = vadd.f32 %v1306_v38, %v9485_v20  ;;  %v9487_v18 = vld [vmem:[#allocation67_spill] sm:$0xff]  ;;  %v6090_v38 = vadd.f32 %v1310_v37, %v9496_v5  ;;  %v1382_v19 = vmul.f32 %v6013_v31, %v3126_v35 }
  0xf2   : > { %v6066_v49 = vadd.f32 %v1305_v32, %v9483_v28  ;;  %v6072_v34 = vadd.f32 %v1307_v8, %v9487_v18  ;;  %v9489_v48 = vld [vmem:[#allocation68_spill] sm:$0xff]  ;;  %v6078_v10 = vld [vmem:[%s3826_s7 + $0xa9] sm:$0xff]  ;;  %v6084_v60 = vld [vmem:[%s3826_s7 + $0xc1] sm:$0xff]  ;;  %v6087_v32 = vadd.f32 %v1309_v24, %v9494_v58  ;;  %9499 = vst [vmem:[#allocation99_spill] sm:$0xff] %v6093_v45  ;;  %v1384_v28 = vmul.f32 %v6013_v31, %v6018_v36 }
  0xf3   : > { %9486 = vst [vmem:[#allocation91_spill] sm:$0xff] %v6069_v55  ;;  %v6075_v11 = vadd.f32 %v1308_v51, %v9489_v48  ;;  %9491 = vst [vmem:[#allocation94_spill] sm:$0xff] %v6078_v10  ;;  %v6081_v26 = vld [vmem:[%s3826_s7 + $0xb1] sm:$0xff]  ;;  %v9500_v8 = vld [vmem:[#allocation9_spill] sm:$0xff]  ;;  %v1385_v20 = vmul.f32 %v6013_v31, %v6021_v7  ;;  %v1386_v35 = vmul.f32 %v6013_v31, %v6036_v14 }
  0xf4   : > { %9484 = vst [vmem:[#allocation90_spill] sm:$0xff] %v6066_v49  ;;  %9488 = vst [vmem:[#allocation92_spill] sm:$0xff] %v6072_v34  ;;  %v6096_v51 = vadd.f32 %v1312_v59, %v9500_v8  ;;  %v6108_v24 = vld [vmem:[%s3826_s7 + $0xf1] sm:$0xff]  ;;  %v6111_v61 = vld [vmem:[%s3826_s7 + $0xf9] sm:$0xff]  ;;  %v1383_v59 = vmul.f32 %v6013_v31, %v3127_v13  ;;  %v1387_v13 = vmul.f32 %v6013_v31, %v6039_v27 }
  0xf5   : > { %9490 = vst [vmem:[#allocation93_spill] sm:$0xff] %v6075_v11  ;;  %9492 = vst [vmem:[#allocation95_spill] sm:$0xff] %v6081_v26  ;;  %v6114_v37 = vld [vmem:[%s3826_s7 + $0x109] sm:$0xff]  ;;  %v6123_v18 = vld [vmem:[%s3826_s7 + $0x111] sm:$0xff]  ;;  %v1388_v5 = vmul.f32 %v6013_v31, %v6042_v56  ;;  %v1389_v2 = vmul.f32 %v6013_v31, %v6057_v33  ;;  %v1390_v14 = vmul.f32 %v6013_v31, %v6060_v57 }
  0xf6   : > { %9493 = vst [vmem:[#allocation96_spill] sm:$0xff] %v6084_v60  ;;  %9495 = vst [vmem:[#allocation97_spill] sm:$0xff] %v6087_v32  ;;  %v6126_v48 = vld [vmem:[%s3826_s7 + $0x121] sm:$0xff]  ;;  %v6129_v58 = vld [vmem:[%s3826_s7 + $0x129] sm:$0xff]  ;;  %v1391_v27 = vmul.f32 %v6013_v31, %v6063_v30  ;;  %v1392_v56 = vmul.f32 %v6013_v31, %v6078_v10  ;;  %v1393_v23 = vmul.f32 %v6013_v31, %v6081_v26 }
  0xf7   : > { %9497 = vst [vmem:[#allocation98_spill] sm:$0xff] %v6090_v38  ;;  %9501 = vst [vmem:[#allocation100_spill] sm:$0xff] %v6096_v51  ;;  %v6140_v8 = vld [vmem:[%s3826_s7 + $0x139] sm:$0xff]  ;;  %v6143_v7 = vld [vmem:[%s3826_s7 + $0x141] sm:$0xff]  ;;  %v1394_v45 = vmul.f32 %v6013_v31, %v6084_v60  ;;  %v1395_v57 = vmul.f32 %v6013_v31, %v6099_v9  ;;  %v1396_v30 = vmul.f32 %v6013_v31, %v6102_v4 }
  0xf8   : > { %9504 = vst [vmem:[#allocation103_spill] sm:$0xff] %v6105_v54  ;;  %9505 = vst [vmem:[#allocation22_spill] sm:$0xff] %v6108_v24  ;;  %v6146_v36 = vld [vmem:[%s3826_s7 + $0x151] sm:$0xff]  ;;  %v6157_v33 = vld [vmem:[%s3826_s7 + $0x159] sm:$0xff]  ;;  %v1397_v10 = vmul.f32 %v6013_v31, %v6105_v54  ;;  %v1398_v32 = vmul.f32 %v6013_v31, %v6108_v24  ;;  %v1399_v11 = vmul.f32 %v6013_v31, %v6111_v61 }
  0xf9   : > { %9506 = vst [vmem:[#allocation23_spill] sm:$0xff] %v6111_v61  ;;  %9507 = vst [vmem:[#allocation24_spill] sm:$0xff] %v6114_v37  ;;  %v6160_v43 = vld [vmem:[%s3826_s7 + $0x169] sm:$0xff]  ;;  %v6163_v51 = vld [vmem:[%s3826_s7 + $0x171] sm:$0xff]  ;;  %v1400_v60 = vmul.f32 %v6013_v31, %v6114_v37  ;;  %v1401_v9 = vmul.f32 %v6013_v31, %v6123_v18  ;;  %v1402_v4 = vmul.f32 %v6013_v31, %v6126_v48 }
  0xfa   : > { %9508 = vst [vmem:[#allocation25_spill] sm:$0xff] %v6123_v18  ;;  %9509 = vst [vmem:[#allocation26_spill] sm:$0xff] %v6126_v48  ;;  %v6174_v38 = vld [vmem:[%s3826_s7 + $0x199] sm:$0xff]  ;;  %v6177_v26 = vld [vmem:[%s3826_s7 + $0x1a1] sm:$0xff]  ;;  %v1403_v54 = vmul.f32 %v6013_v31, %v6129_v58  ;;  %v1404_v34 = vmul.f32 %v6013_v31, %v6140_v8  ;;  %v1405_v24 = vmul.f32 %v6013_v31, %v6143_v7 }
  0xfb   : > { %9510 = vst [vmem:[#allocation27_spill] sm:$0xff] %v6129_v58  ;;  %9511 = vst [vmem:[#allocation28_spill] sm:$0xff] %v6140_v8  ;;  %v1406_v61 = vmul.f32 %v6013_v31, %v6146_v36  ;;  %v1407_v37 = vmul.f32 %v6013_v31, %v6157_v33  ;;  %v1408_v18 = vmul.f32 %v6013_v31, %v6160_v43  ;;  %v9519_v55 = vld [vmem:[#allocation20_spill] sm:$0xff]  ;;  %v9520_v49 = vld [vmem:[#allocation21_spill] sm:$0xff] }
  0xfc   : > { %9512 = vst [vmem:[#allocation29_spill] sm:$0xff] %v6143_v7  ;;  %9513 = vst [vmem:[#allocation30_spill] sm:$0xff] %v6146_v36  ;;  %v1409_v48 = vmul.f32 %v6013_v31, %v6163_v51  ;;  %v1410_v58 = vmul.f32 %v6013_v31, %v9519_v55  ;;  %v1411_v8 = vmul.f32 %v6013_v31, %v9520_v49 }
  0xfd   : > { %9514 = vst [vmem:[#allocation31_spill] sm:$0xff] %v6157_v33  ;;  %9515 = vst [vmem:[#allocation32_spill] sm:$0xff] %v6160_v43  ;;  %v1412_v7 = vmul.f32 %v6013_v31, %v6174_v38  ;;  %v1413_v36 = vmul.f32 %v6013_v31, %v6177_v26  ;;  %v6212_v33 = vadd.f32 %v1382_v19, %v5963_v3  ;;  %v9540_v19 = vld [vmem:[#allocation97_spill] sm:$0xff] }
  0xfe   : > { %9516 = vst [vmem:[#allocation104_spill] sm:$0xff] %v6163_v51  ;;  %9517 = vst [vmem:[#allocation105_spill] sm:$0xff] %v6174_v38  ;;  %v6215_v43 = vadd.f32 %v1383_v59, %v5966_v12  ;;  %v6218_v51 = vadd.f32 %v1384_v28, %v5969_v22  ;;  %v6221_v55 = vadd.f32 %v1385_v20, %v5972_v50  ;;  %v9542_v59 = vld [vmem:[#allocation98_spill] sm:$0xff]  ;;  %v9544_v28 = vld [vmem:[#allocation99_spill] sm:$0xff] }
  0xff   : > { %9518 = vst [vmem:[#allocation106_spill] sm:$0xff] %v6177_v26  ;;  %v6224_v49 = vadd.f32 %v1386_v35, %v5975_v40  ;;  %v6227_v31 = vadd.f32 %v1387_v13, %v5978_v17  ;;  %v6230_v3 = vadd.f32 %v1388_v5, %v5981_v42  ;;  %v6233_v12 = vadd.f32 %v1389_v2, %v5984_v29  ;;  %v6348_v35 = vld [vmem:[%s3826_s7 + $0xca] sm:$0xff]  ;;  %v6351_v13 = vld [vmem:[%s3826_s7 + $0xda] sm:$0xff]  ;;  %v6354_v5 = vld [vmem:[%s3826_s7 + $0xe2] sm:$0xff] }
 0x100   : > { %v6236_v22 = vadd.f32 %v1390_v14, %v5987_v15  ;;  %v6239_v50 = vadd.f32 %v1391_v27, %v5990_v52  ;;  %v6242_v40 = vadd.f32 %v1392_v56, %v5993_v21  ;;  %v6245_v17 = vadd.f32 %v1393_v23, %v5996_v46  ;;  %v6262_v21 = vld [vmem:[%s8628_s1 + $0xc] ss:$0 sm:$0xff]  ;;  %v3159_v23 = vld [vmem:[%s3826_s7 + $0x32] sm:$0xff]  ;;  %v3160_v46 = vld [vmem:[%s3826_s7 + $0x3a] sm:$0xff]  ;;  %9548 = vst [vmem:[#allocation126_spill] sm:$0xff] %v6348_v35 }
 0x101   : > { %v6248_v42 = vadd.f32 %v1394_v45, %v5999_v62  ;;  %v6251_v29 = vadd.f32 %v1395_v57, %v6002_v16  ;;  %v6254_v15 = vadd.f32 %v1396_v30, %v6005_v1  ;;  %v6257_v52 = vadd.f32 %v1397_v10, %v6008_v63  ;;  %v6267_v62 = vld [vmem:[%s3826_s7 + $0x4a] sm:$0xff]  ;;  %v6270_v16 = vld [vmem:[%s3826_s7 + $0x52] sm:$0xff]  ;;  %v6285_v56 = vld [vmem:[%s3826_s7 + $0x62] sm:$0xff]  ;;  %9549 = vst [vmem:[#allocation127_spill] sm:$0xff] %v6351_v13 }
 0x102   : > { %9521 = vst [vmem:[#allocation107_spill] sm:$0xff] %v6267_v62  ;;  %9522 = vst [vmem:[#allocation108_spill] sm:$0xff] %v6270_v16  ;;  %v6273_v1 = vadd.f32 %v1398_v32, %v6024_v39  ;;  %v6276_v63 = vadd.f32 %v1399_v11, %v6027_v47  ;;  %v6279_v14 = vadd.f32 %v1400_v60, %v6030_v25  ;;  %v6288_v57 = vld [vmem:[%s3826_s7 + $0x6a] sm:$0xff]  ;;  %v6291_v30 = vld [vmem:[%s3826_s7 + $0x7a] sm:$0xff] }
 0x103   : > { %v6282_v27 = vadd.f32 %v1401_v9, %v6033_v0  ;;  %9523 = vst [vmem:[#allocation109_spill] sm:$0xff] %v6285_v56  ;;  %9524 = vst [vmem:[#allocation110_spill] sm:$0xff] %v6288_v57  ;;  %v6294_v39 = vadd.f32 %v1402_v4, %v6045_v53  ;;  %v6297_v47 = vadd.f32 %v1403_v54, %v6048_v6  ;;  %v6306_v11 = vld [vmem:[%s3826_s7 + $0x82] sm:$0xff]  ;;  %v6309_v10 = vld [vmem:[%s3826_s7 + $0x92] sm:$0xff] }
 0x104   : > { %9525 = vst [vmem:[#allocation111_spill] sm:$0xff] %v6291_v30  ;;  %v6300_v25 = vadd.f32 %v1404_v34, %v6051_v44  ;;  %v6303_v0 = vadd.f32 %v1405_v24, %v6054_v41  ;;  %9526 = vst [vmem:[#allocation112_spill] sm:$0xff] %v6306_v11  ;;  %v6312_v60 = vld [vmem:[%s3826_s7 + $0x9a] sm:$0xff]  ;;  %v9529_v53 = vld [vmem:[#allocation90_spill] sm:$0xff]  ;;  %v6342_v20 = vadd.f32 %v1412_v7, %v9544_v28 }
 0x105   : > { %9527 = vst [vmem:[#allocation113_spill] sm:$0xff] %v6309_v10  ;;  %9528 = vst [vmem:[#allocation114_spill] sm:$0xff] %v6312_v60  ;;  %v6315_v6 = vadd.f32 %v1406_v61, %v9529_v53  ;;  %v9531_v32 = vld [vmem:[#allocation91_spill] sm:$0xff]  ;;  %v9533_v34 = vld [vmem:[#allocation92_spill] sm:$0xff]  ;;  %v6336_v61 = vadd.f32 %v1410_v58, %v9540_v19  ;;  %v1483_v7 = vmul.f32 %v6262_v21, %v3159_v23 }
 0x106   : > { %v6318_v44 = vadd.f32 %v1407_v37, %v9531_v32  ;;  %v6321_v41 = vadd.f32 %v1408_v18, %v9533_v34  ;;  %v9535_v45 = vld [vmem:[#allocation93_spill] sm:$0xff]  ;;  %v6327_v4 = vld [vmem:[%s3826_s7 + $0xaa] sm:$0xff]  ;;  %v6330_v54 = vld [vmem:[%s3826_s7 + $0xb2] sm:$0xff]  ;;  %v6339_v37 = vadd.f32 %v1411_v8, %v9542_v59  ;;  %9545 = vst [vmem:[#allocation124_spill] sm:$0xff] %v6342_v20  ;;  %v1485_v53 = vmul.f32 %v6262_v21, %v6267_v62 }
 0x107   : > { %9530 = vst [vmem:[#allocation115_spill] sm:$0xff] %v6315_v6  ;;  %v6324_v9 = vadd.f32 %v1409_v48, %v9535_v45  ;;  %9537 = vst [vmem:[#allocation119_spill] sm:$0xff] %v6327_v4  ;;  %v6333_v24 = vld [vmem:[%s3826_s7 + $0xc2] sm:$0xff]  ;;  %v9546_v18 = vld [vmem:[#allocation100_spill] sm:$0xff]  ;;  %v1486_v32 = vmul.f32 %v6262_v21, %v6270_v16  ;;  %v1487_v23 = vmul.f32 %v6262_v21, %v6285_v56 }
 0x108   : > { %9532 = vst [vmem:[#allocation116_spill] sm:$0xff] %v6318_v44  ;;  %9534 = vst [vmem:[#allocation117_spill] sm:$0xff] %v6321_v41  ;;  %v6345_v48 = vadd.f32 %v1413_v36, %v9546_v18  ;;  %v6357_v58 = vld [vmem:[%s3826_s7 + $0xf2] sm:$0xff]  ;;  %v6360_v2 = vld [vmem:[%s3826_s7 + $0xfa] sm:$0xff]  ;;  %v1484_v36 = vmul.f32 %v6262_v21, %v3160_v46  ;;  %v1488_v46 = vmul.f32 %v6262_v21, %v6288_v57 }
 0x109   : > { %9536 = vst [vmem:[#allocation118_spill] sm:$0xff] %v6324_v9  ;;  %9538 = vst [vmem:[#allocation120_spill] sm:$0xff] %v6330_v54  ;;  %v6363_v8 = vld [vmem:[%s3826_s7 + $0x10a] sm:$0xff]  ;;  %v6372_v34 = vld [vmem:[%s3826_s7 + $0x112] sm:$0xff]  ;;  %v1489_v59 = vmul.f32 %v6262_v21, %v6291_v30  ;;  %v1490_v28 = vmul.f32 %v6262_v21, %v6306_v11  ;;  %v1491_v56 = vmul.f32 %v6262_v21, %v6309_v10 }
 0x10a   : > { %9539 = vst [vmem:[#allocation121_spill] sm:$0xff] %v6333_v24  ;;  %9541 = vst [vmem:[#allocation122_spill] sm:$0xff] %v6336_v61  ;;  %v6375_v45 = vld [vmem:[%s3826_s7 + $0x122] sm:$0xff]  ;;  %v6378_v19 = vld [vmem:[%s3826_s7 + $0x12a] sm:$0xff]  ;;  %v1492_v57 = vmul.f32 %v6262_v21, %v6312_v60  ;;  %v1493_v30 = vmul.f32 %v6262_v21, %v6327_v4  ;;  %v1494_v26 = vmul.f32 %v6262_v21, %v6330_v54 }
 0x10b   : > { %9543 = vst [vmem:[#allocation123_spill] sm:$0xff] %v6339_v37  ;;  %9547 = vst [vmem:[#allocation125_spill] sm:$0xff] %v6345_v48  ;;  %v6389_v18 = vld [vmem:[%s3826_s7 + $0x13a] sm:$0xff]  ;;  %v6392_v16 = vld [vmem:[%s3826_s7 + $0x142] sm:$0xff]  ;;  %v1495_v20 = vmul.f32 %v6262_v21, %v6333_v24  ;;  %v1496_v10 = vmul.f32 %v6262_v21, %v6348_v35  ;;  %v1497_v60 = vmul.f32 %v6262_v21, %v6351_v13 }
 0x10c   : > { %9550 = vst [vmem:[#allocation128_spill] sm:$0xff] %v6354_v5  ;;  %9551 = vst [vmem:[#allocation129_spill] sm:$0xff] %v6357_v58  ;;  %v6395_v62 = vld [vmem:[%s3826_s7 + $0x152] sm:$0xff]  ;;  %v6406_v11 = vld [vmem:[%s3826_s7 + $0x15a] sm:$0xff]  ;;  %v1498_v4 = vmul.f32 %v6262_v21, %v6354_v5  ;;  %v1499_v61 = vmul.f32 %v6262_v21, %v6357_v58  ;;  %v1500_v9 = vmul.f32 %v6262_v21, %v6360_v2 }
 0x10d   : > { %9552 = vst [vmem:[#allocation130_spill] sm:$0xff] %v6360_v2  ;;  %9553 = vst [vmem:[#allocation131_spill] sm:$0xff] %v6363_v8  ;;  %v6409_v38 = vld [vmem:[%s3826_s7 + $0x16a] sm:$0xff]  ;;  %v6412_v48 = vld [vmem:[%s3826_s7 + $0x172] sm:$0xff]  ;;  %v1501_v24 = vmul.f32 %v6262_v21, %v6363_v8  ;;  %v1502_v35 = vmul.f32 %v6262_v21, %v6372_v34  ;;  %v1503_v13 = vmul.f32 %v6262_v21, %v6375_v45 }
 0x10e   : > { %9554 = vst [vmem:[#allocation132_spill] sm:$0xff] %v6372_v34  ;;  %9555 = vst [vmem:[#allocation133_spill] sm:$0xff] %v6375_v45  ;;  %v6423_v37 = vld [vmem:[%s3826_s7 + $0x19a] sm:$0xff]  ;;  %v6426_v54 = vld [vmem:[%s3826_s7 + $0x1a2] sm:$0xff]  ;;  %v1504_v5 = vmul.f32 %v6262_v21, %v6378_v19  ;;  %v1505_v41 = vmul.f32 %v6262_v21, %v6389_v18  ;;  %v1506_v58 = vmul.f32 %v6262_v21, %v6392_v16 }
 0x10f   : > { %9556 = vst [vmem:[#allocation35_spill] sm:$0xff] %v6378_v19  ;;  %9557 = vst [vmem:[#allocation8_spill] sm:$0xff] %v6389_v18  ;;  %v1507_v2 = vmul.f32 %v6262_v21, %v6395_v62  ;;  %v1508_v8 = vmul.f32 %v6262_v21, %v6406_v11  ;;  %v1509_v34 = vmul.f32 %v6262_v21, %v6409_v38  ;;  %v9565_v44 = vld [vmem:[#allocation33_spill] sm:$0xff]  ;;  %v9566_v6 = vld [vmem:[#allocation34_spill] sm:$0xff] }
 0x110   : > { %9558 = vst [vmem:[#allocation12_spill] sm:$0xff] %v6392_v16  ;;  %9559 = vst [vmem:[#allocation164_spill] sm:$0xff] %v6395_v62  ;;  %v1510_v45 = vmul.f32 %v6262_v21, %v6412_v48  ;;  %v1511_v19 = vmul.f32 %v6262_v21, %v9565_v44  ;;  %v1512_v18 = vmul.f32 %v6262_v21, %v9566_v6 }
 0x111   : > { %9560 = vst [vmem:[#allocation165_spill] sm:$0xff] %v6406_v11  ;;  %9561 = vst [vmem:[#allocation43_spill] sm:$0xff] %v6409_v38  ;;  %v1513_v16 = vmul.f32 %v6262_v21, %v6423_v37  ;;  %v1514_v62 = vmul.f32 %v6262_v21, %v6426_v54  ;;  %v6461_v11 = vadd.f32 %v1483_v7, %v6212_v33  ;;  %v9586_v7 = vld [vmem:[#allocation122_spill] sm:$0xff] }
 0x112   : > { %9562 = vst [vmem:[#allocation44_spill] sm:$0xff] %v6412_v48  ;;  %9563 = vst [vmem:[#allocation48_spill] sm:$0xff] %v6423_v37  ;;  %v6464_v38 = vadd.f32 %v1484_v36, %v6215_v43  ;;  %v6467_v48 = vadd.f32 %v1485_v53, %v6218_v51  ;;  %v6470_v44 = vadd.f32 %v1486_v32, %v6221_v55  ;;  %v9588_v36 = vld [vmem:[#allocation123_spill] sm:$0xff]  ;;  %v9590_v53 = vld [vmem:[#allocation124_spill] sm:$0xff] }
 0x113   : > { %9564 = vst [vmem:[#allocation49_spill] sm:$0xff] %v6426_v54  ;;  %v6473_v6 = vadd.f32 %v1487_v23, %v6224_v49  ;;  %v6476_v21 = vadd.f32 %v1488_v46, %v6227_v31  ;;  %v6479_v33 = vadd.f32 %v1489_v59, %v6230_v3  ;;  %v6482_v43 = vadd.f32 %v1490_v28, %v6233_v12  ;;  %v6597_v23 = vld [vmem:[%s3826_s7 + $0xcb] sm:$0xff]  ;;  %v6600_v46 = vld [vmem:[%s3826_s7 + $0xdb] sm:$0xff]  ;;  %v6603_v59 = vld [vmem:[%s3826_s7 + $0xe3] sm:$0xff] }
 0x114   : > { %v6485_v51 = vadd.f32 %v1491_v56, %v6236_v22  ;;  %v6488_v55 = vadd.f32 %v1492_v57, %v6239_v50  ;;  %v6491_v49 = vadd.f32 %v1493_v30, %v6242_v40  ;;  %v6494_v31 = vadd.f32 %v1494_v26, %v6245_v17  ;;  %v6511_v40 = vld [vmem:[%s8628_s1 + $0xd] ss:$0 sm:$0xff]  ;;  %v3192_v26 = vld [vmem:[%s3826_s7 + $0x33] sm:$0xff]  ;;  %v3193_v17 = vld [vmem:[%s3826_s7 + $0x3b] sm:$0xff]  ;;  %9594 = vst [vmem:[#allocation151_spill] sm:$0xff] %v6597_v23 }
 0x115   : > { %v6497_v3 = vadd.f32 %v1495_v20, %v6248_v42  ;;  %v6500_v12 = vadd.f32 %v1496_v10, %v6251_v29  ;;  %v6503_v22 = vadd.f32 %v1497_v60, %v6254_v15  ;;  %v6506_v50 = vadd.f32 %v1498_v4, %v6257_v52  ;;  %v6516_v42 = vld [vmem:[%s3826_s7 + $0x4b] sm:$0xff]  ;;  %v6519_v29 = vld [vmem:[%s3826_s7 + $0x53] sm:$0xff]  ;;  %v6534_v30 = vld [vmem:[%s3826_s7 + $0x63] sm:$0xff]  ;;  %9595 = vst [vmem:[#allocation152_spill] sm:$0xff] %v6600_v46 }
 0x116   : > { %9567 = vst [vmem:[#allocation50_spill] sm:$0xff] %v6516_v42  ;;  %9568 = vst [vmem:[#allocation51_spill] sm:$0xff] %v6519_v29  ;;  %v6522_v15 = vadd.f32 %v1499_v61, %v6273_v1  ;;  %v6525_v52 = vadd.f32 %v1500_v9, %v6276_v63  ;;  %v6528_v56 = vadd.f32 %v1501_v24, %v6279_v14  ;;  %v6537_v10 = vld [vmem:[%s3826_s7 + $0x6b] sm:$0xff]  ;;  %v6540_v60 = vld [vmem:[%s3826_s7 + $0x7b] sm:$0xff] }
 0x117   : > { %v6531_v57 = vadd.f32 %v1502_v35, %v6282_v27  ;;  %9569 = vst [vmem:[#allocation134_spill] sm:$0xff] %v6534_v30  ;;  %9570 = vst [vmem:[#allocation135_spill] sm:$0xff] %v6537_v10  ;;  %v6543_v1 = vadd.f32 %v1503_v13, %v6294_v39  ;;  %v6546_v63 = vadd.f32 %v1504_v5, %v6297_v47  ;;  %v6555_v9 = vld [vmem:[%s3826_s7 + $0x83] sm:$0xff]  ;;  %v6558_v4 = vld [vmem:[%s3826_s7 + $0x93] sm:$0xff] }
 0x118   : > { %9571 = vst [vmem:[#allocation136_spill] sm:$0xff] %v6540_v60  ;;  %v6549_v14 = vadd.f32 %v1505_v41, %v6300_v25  ;;  %v6552_v27 = vadd.f32 %v1506_v58, %v6303_v0  ;;  %9572 = vst [vmem:[#allocation137_spill] sm:$0xff] %v6555_v9  ;;  %v6561_v24 = vld [vmem:[%s3826_s7 + $0x9b] sm:$0xff]  ;;  %v9575_v39 = vld [vmem:[#allocation115_spill] sm:$0xff]  ;;  %v6591_v32 = vadd.f32 %v1513_v16, %v9590_v53 }
 0x119   : > { %9573 = vst [vmem:[#allocation138_spill] sm:$0xff] %v6558_v4  ;;  %9574 = vst [vmem:[#allocation139_spill] sm:$0xff] %v6561_v24  ;;  %v6564_v47 = vadd.f32 %v1507_v2, %v9575_v39  ;;  %v9577_v61 = vld [vmem:[#allocation116_spill] sm:$0xff]  ;;  %v9579_v41 = vld [vmem:[#allocation117_spill] sm:$0xff]  ;;  %v6585_v2 = vadd.f32 %v1511_v19, %v9586_v7  ;;  %v1584_v16 = vmul.f32 %v6511_v40, %v3192_v26 }
 0x11a   : > { %v6567_v25 = vadd.f32 %v1508_v8, %v9577_v61  ;;  %v6570_v0 = vadd.f32 %v1509_v34, %v9579_v41  ;;  %v9581_v20 = vld [vmem:[#allocation118_spill] sm:$0xff]  ;;  %v6579_v5 = vld [vmem:[%s3826_s7 + $0xb3] sm:$0xff]  ;;  %v6588_v8 = vadd.f32 %v1512_v18, %v9588_v36  ;;  %9591 = vst [vmem:[#allocation149_spill] sm:$0xff] %v6591_v32  ;;  %v9592_v34 = vld [vmem:[#allocation125_spill] sm:$0xff]  ;;  %v1586_v39 = vmul.f32 %v6511_v40, %v6516_v42 }
 0x11b   : > { %9576 = vst [vmem:[#allocation140_spill] sm:$0xff] %v6564_v47  ;;  %v6573_v35 = vadd.f32 %v1510_v45, %v9581_v20  ;;  %v6576_v13 = vld [vmem:[%s3826_s7 + $0xab] sm:$0xff]  ;;  %9584 = vst [vmem:[#allocation145_spill] sm:$0xff] %v6579_v5  ;;  %v6582_v58 = vld [vmem:[%s3826_s7 + $0xc3] sm:$0xff]  ;;  %v6594_v45 = vadd.f32 %v1514_v62, %v9592_v34  ;;  %v1585_v62 = vmul.f32 %v6511_v40, %v3193_v17 }
 0x11c   : > { %9578 = vst [vmem:[#allocation141_spill] sm:$0xff] %v6567_v25  ;;  %9580 = vst [vmem:[#allocation142_spill] sm:$0xff] %v6570_v0  ;;  %v6606_v19 = vld [vmem:[%s3826_s7 + $0xf3] sm:$0xff]  ;;  %v6609_v28 = vld [vmem:[%s3826_s7 + $0xfb] sm:$0xff]  ;;  %v1587_v61 = vmul.f32 %v6511_v40, %v6519_v29  ;;  %v1588_v26 = vmul.f32 %v6511_v40, %v6534_v30  ;;  %v1589_v17 = vmul.f32 %v6511_v40, %v6537_v10 }
 0x11d   : > { %9582 = vst [vmem:[#allocation143_spill] sm:$0xff] %v6573_v35  ;;  %9583 = vst [vmem:[#allocation144_spill] sm:$0xff] %v6576_v13  ;;  %v6612_v18 = vld [vmem:[%s3826_s7 + $0x10b] sm:$0xff]  ;;  %v6621_v41 = vld [vmem:[%s3826_s7 + $0x113] sm:$0xff]  ;;  %v1590_v36 = vmul.f32 %v6511_v40, %v6540_v60  ;;  %v1591_v53 = vmul.f32 %v6511_v40, %v6555_v9  ;;  %v1592_v30 = vmul.f32 %v6511_v40, %v6558_v4 }
 0x11e   : > { %9585 = vst [vmem:[#allocation146_spill] sm:$0xff] %v6582_v58  ;;  %9587 = vst [vmem:[#allocation147_spill] sm:$0xff] %v6585_v2  ;;  %v6624_v20 = vld [vmem:[%s3826_s7 + $0x123] sm:$0xff]  ;;  %v6627_v7 = vld [vmem:[%s3826_s7 + $0x12b] sm:$0xff]  ;;  %v1593_v10 = vmul.f32 %v6511_v40, %v6561_v24  ;;  %v1594_v60 = vmul.f32 %v6511_v40, %v6576_v13  ;;  %v1595_v54 = vmul.f32 %v6511_v40, %v6579_v5 }
 0x11f   : > { %9589 = vst [vmem:[#allocation148_spill] sm:$0xff] %v6588_v8  ;;  %9593 = vst [vmem:[#allocation150_spill] sm:$0xff] %v6594_v45  ;;  %v6638_v34 = vld [vmem:[%s3826_s7 + $0x13b] sm:$0xff]  ;;  %v6641_v29 = vld [vmem:[%s3826_s7 + $0x143] sm:$0xff]  ;;  %v1596_v32 = vmul.f32 %v6511_v40, %v6582_v58  ;;  %v1597_v4 = vmul.f32 %v6511_v40, %v6597_v23  ;;  %v1598_v24 = vmul.f32 %v6511_v40, %v6600_v46 }
 0x120   : > { %9596 = vst [vmem:[#allocation153_spill] sm:$0xff] %v6603_v59  ;;  %9597 = vst [vmem:[#allocation154_spill] sm:$0xff] %v6606_v19  ;;  %v6644_v42 = vld [vmem:[%s3826_s7 + $0x153] sm:$0xff]  ;;  %v6655_v9 = vld [vmem:[%s3826_s7 + $0x15b] sm:$0xff]  ;;  %v1599_v13 = vmul.f32 %v6511_v40, %v6603_v59  ;;  %v1600_v2 = vmul.f32 %v6511_v40, %v6606_v19  ;;  %v1601_v35 = vmul.f32 %v6511_v40, %v6609_v28 }
 0x121   : > { %9598 = vst [vmem:[#allocation155_spill] sm:$0xff] %v6609_v28  ;;  %9599 = vst [vmem:[#allocation156_spill] sm:$0xff] %v6612_v18  ;;  %v6658_v37 = vld [vmem:[%s3826_s7 + $0x16b] sm:$0xff]  ;;  %v6661_v45 = vld [vmem:[%s3826_s7 + $0x173] sm:$0xff]  ;;  %v1602_v58 = vmul.f32 %v6511_v40, %v6612_v18  ;;  %v1603_v23 = vmul.f32 %v6511_v40, %v6621_v41  ;;  %v1604_v46 = vmul.f32 %v6511_v40, %v6624_v20 }
 0x122   : > { %9600 = vst [vmem:[#allocation157_spill] sm:$0xff] %v6621_v41  ;;  %9601 = vst [vmem:[#allocation158_spill] sm:$0xff] %v6624_v20  ;;  %v6672_v8 = vld [vmem:[%s3826_s7 + $0x19b] sm:$0xff]  ;;  %v6675_v5 = vld [vmem:[%s3826_s7 + $0x1a3] sm:$0xff]  ;;  %v1605_v59 = vmul.f32 %v6511_v40, %v6627_v7  ;;  %v1606_v0 = vmul.f32 %v6511_v40, %v6638_v34  ;;  %v1607_v19 = vmul.f32 %v6511_v40, %v6641_v29 }
 0x123   : > { %9602 = vst [vmem:[#allocation159_spill] sm:$0xff] %v6627_v7  ;;  %9603 = vst [vmem:[#allocation160_spill] sm:$0xff] %v6638_v34  ;;  %v1608_v28 = vmul.f32 %v6511_v40, %v6644_v42  ;;  %v1609_v18 = vmul.f32 %v6511_v40, %v6655_v9  ;;  %v1610_v41 = vmul.f32 %v6511_v40, %v6658_v37  ;;  %v9611_v25 = vld [vmem:[#allocation55_spill] sm:$0xff]  ;;  %v9612_v47 = vld [vmem:[#allocation56_spill] sm:$0xff] }
 0x124   : > { %9604 = vst [vmem:[#allocation161_spill] sm:$0xff] %v6641_v29  ;;  %9605 = vst [vmem:[#allocation162_spill] sm:$0xff] %v6644_v42  ;;  %v1611_v20 = vmul.f32 %v6511_v40, %v6661_v45  ;;  %v1612_v7 = vmul.f32 %v6511_v40, %v9611_v25  ;;  %v1613_v34 = vmul.f32 %v6511_v40, %v9612_v47 }
 0x125   : > { %9606 = vst [vmem:[#allocation163_spill] sm:$0xff] %v6655_v9  ;;  %9607 = vst [vmem:[#allocation36_spill] sm:$0xff] %v6658_v37  ;;  %v1614_v29 = vmul.f32 %v6511_v40, %v6672_v8  ;;  %v1615_v42 = vmul.f32 %v6511_v40, %v6675_v5  ;;  %v6710_v9 = vadd.f32 %v1584_v16, %v6461_v11  ;;  %v9632_v16 = vld [vmem:[#allocation147_spill] sm:$0xff] }
 0x126   : > { %9608 = vst [vmem:[#allocation37_spill] sm:$0xff] %v6661_v45  ;;  %9609 = vst [vmem:[#allocation38_spill] sm:$0xff] %v6672_v8  ;;  %v6713_v37 = vadd.f32 %v1585_v62, %v6464_v38  ;;  %v6716_v45 = vadd.f32 %v1586_v39, %v6467_v48  ;;  %v6719_v25 = vadd.f32 %v1587_v61, %v6470_v44  ;;  %v9634_v62 = vld [vmem:[#allocation148_spill] sm:$0xff]  ;;  %v9636_v39 = vld [vmem:[#allocation149_spill] sm:$0xff] }
 0x127   : > { %9610 = vst [vmem:[#allocation39_spill] sm:$0xff] %v6675_v5  ;;  %v6722_v47 = vadd.f32 %v1588_v26, %v6473_v6  ;;  %v6725_v40 = vadd.f32 %v1589_v17, %v6476_v21  ;;  %v6728_v11 = vadd.f32 %v1590_v36, %v6479_v33  ;;  %v6731_v38 = vadd.f32 %v1591_v53, %v6482_v43  ;;  %v6846_v26 = vld [vmem:[%s3826_s7 + $0xcc] sm:$0xff]  ;;  %v6849_v17 = vld [vmem:[%s3826_s7 + $0xdc] sm:$0xff]  ;;  %v6852_v36 = vld [vmem:[%s3826_s7 + $0xe4] sm:$0xff] }
 0x128   : > { %v6734_v48 = vadd.f32 %v1592_v30, %v6485_v51  ;;  %v6737_v44 = vadd.f32 %v1593_v10, %v6488_v55  ;;  %v6740_v6 = vadd.f32 %v1594_v60, %v6491_v49  ;;  %v6743_v21 = vadd.f32 %v1595_v54, %v6494_v31  ;;  %v6760_v49 = vld [vmem:[%s8628_s1 + $0xe] ss:$0 sm:$0xff]  ;;  %v3225_v54 = vld [vmem:[%s3826_s7 + $0x34] sm:$0xff]  ;;  %v3226_v31 = vld [vmem:[%s3826_s7 + $0x3c] sm:$0xff]  ;;  %9640 = vst [vmem:[#allocation90_spill] sm:$0xff] %v6846_v26 }
 0x129   : > { %v6746_v33 = vadd.f32 %v1596_v32, %v6497_v3  ;;  %v6749_v43 = vadd.f32 %v1597_v4, %v6500_v12  ;;  %v6752_v51 = vadd.f32 %v1598_v24, %v6503_v22  ;;  %v6755_v55 = vadd.f32 %v1599_v13, %v6506_v50  ;;  %v6765_v3 = vld [vmem:[%s3826_s7 + $0x4c] sm:$0xff]  ;;  %v6768_v12 = vld [vmem:[%s3826_s7 + $0x54] sm:$0xff]  ;;  %v6783_v60 = vld [vmem:[%s3826_s7 + $0x64] sm:$0xff]  ;;  %9641 = vst [vmem:[#allocation91_spill] sm:$0xff] %v6849_v17 }
 0x12a   : > { %9613 = vst [vmem:[#allocation40_spill] sm:$0xff] %v6765_v3  ;;  %9614 = vst [vmem:[#allocation41_spill] sm:$0xff] %v6768_v12  ;;  %v6771_v22 = vadd.f32 %v1600_v2, %v6522_v15  ;;  %v6774_v50 = vadd.f32 %v1601_v35, %v6525_v52  ;;  %v6777_v30 = vadd.f32 %v1602_v58, %v6528_v56  ;;  %v6786_v4 = vld [vmem:[%s3826_s7 + $0x6c] sm:$0xff]  ;;  %v6789_v24 = vld [vmem:[%s3826_s7 + $0x7c] sm:$0xff] }
 0x12b   : > { %v6780_v10 = vadd.f32 %v1603_v23, %v6531_v57  ;;  %9615 = vst [vmem:[#allocation42_spill] sm:$0xff] %v6783_v60  ;;  %9616 = vst [vmem:[#allocation45_spill] sm:$0xff] %v6786_v4  ;;  %v6792_v15 = vadd.f32 %v1604_v46, %v6543_v1  ;;  %v6795_v52 = vadd.f32 %v1605_v59, %v6546_v63  ;;  %v6804_v35 = vld [vmem:[%s3826_s7 + $0x84] sm:$0xff]  ;;  %v6807_v13 = vld [vmem:[%s3826_s7 + $0x94] sm:$0xff] }
 0x12c   : > { %9617 = vst [vmem:[#allocation46_spill] sm:$0xff] %v6789_v24  ;;  %v6798_v56 = vadd.f32 %v1606_v0, %v6549_v14  ;;  %v6801_v57 = vadd.f32 %v1607_v19, %v6552_v27  ;;  %9618 = vst [vmem:[#allocation47_spill] sm:$0xff] %v6804_v35  ;;  %v6810_v58 = vld [vmem:[%s3826_s7 + $0x9c] sm:$0xff]  ;;  %v9625_v0 = vld [vmem:[#allocation142_spill] sm:$0xff]  ;;  %v6840_v61 = vadd.f32 %v1614_v29, %v9636_v39 }
 0x12d   : > { %9619 = vst [vmem:[#allocation52_spill] sm:$0xff] %v6807_v13  ;;  %9620 = vst [vmem:[#allocation6_spill] sm:$0xff] %v6810_v58  ;;  %v9621_v1 = vld [vmem:[#allocation140_spill] sm:$0xff]  ;;  %v9623_v2 = vld [vmem:[#allocation141_spill] sm:$0xff]  ;;  %v6819_v27 = vadd.f32 %v1610_v41, %v9625_v0  ;;  %v1685_v29 = vmul.f32 %v6760_v49, %v3225_v54  ;;  %v1689_v54 = vmul.f32 %v6760_v49, %v6783_v60 }
 0x12e   : > { %v6813_v63 = vadd.f32 %v1608_v28, %v9621_v1  ;;  %v6816_v14 = vadd.f32 %v1609_v18, %v9623_v2  ;;  %v9627_v32 = vld [vmem:[#allocation143_spill] sm:$0xff]  ;;  %v6831_v19 = vld [vmem:[%s3826_s7 + $0xc4] sm:$0xff]  ;;  %v6834_v28 = vadd.f32 %v1612_v7, %v9632_v16  ;;  %v6837_v18 = vadd.f32 %v1613_v34, %v9634_v62  ;;  %9637 = vst [vmem:[#allocation20_spill] sm:$0xff] %v6840_v61  ;;  %v6858_v53 = vld [vmem:[%s3826_s7 + $0xfc] sm:$0xff] }
 0x12f   : > { %9626 = vst [vmem:[#allocation66_spill] sm:$0xff] %v6819_v27  ;;  %v6822_v23 = vadd.f32 %v1611_v20, %v9627_v32  ;;  %v6825_v46 = vld [vmem:[%s3826_s7 + $0xac] sm:$0xff]  ;;  %v6828_v59 = vld [vmem:[%s3826_s7 + $0xb4] sm:$0xff]  ;;  %9631 = vst [vmem:[#allocation73_spill] sm:$0xff] %v6831_v19  ;;  %v1687_v1 = vmul.f32 %v6760_v49, %v6765_v3  ;;  %v1688_v2 = vmul.f32 %v6760_v49, %v6768_v12 }
 0x130   : > { %9622 = vst [vmem:[#allocation5_spill] sm:$0xff] %v6813_v63  ;;  %9624 = vst [vmem:[#allocation65_spill] sm:$0xff] %v6816_v14  ;;  %v9638_v41 = vld [vmem:[#allocation150_spill] sm:$0xff]  ;;  %v6855_v7 = vld [vmem:[%s3826_s7 + $0xf4] sm:$0xff]  ;;  %v1691_v62 = vmul.f32 %v6760_v49, %v6789_v24  ;;  %v1692_v39 = vmul.f32 %v6760_v49, %v6804_v35  ;;  %v1693_v60 = vmul.f32 %v6760_v49, %v6807_v13 }
 0x131   : > { %9628 = vst [vmem:[#allocation67_spill] sm:$0xff] %v6822_v23  ;;  %9629 = vst [vmem:[#allocation68_spill] sm:$0xff] %v6825_v46  ;;  %v6843_v20 = vadd.f32 %v1615_v42, %v9638_v41  ;;  %v6861_v34 = vld [vmem:[%s3826_s7 + $0x10c] sm:$0xff]  ;;  %v1686_v42 = vmul.f32 %v6760_v49, %v3226_v31  ;;  %v6870_v0 = vld [vmem:[%s3826_s7 + $0x114] sm:$0xff]  ;;  %v1690_v31 = vmul.f32 %v6760_v49, %v6786_v4 }
 0x132   : > { %9630 = vst [vmem:[#allocation72_spill] sm:$0xff] %v6828_v59  ;;  %9633 = vst [vmem:[#allocation7_spill] sm:$0xff] %v6834_v28  ;;  %v6873_v32 = vld [vmem:[%s3826_s7 + $0x124] sm:$0xff]  ;;  %v6876_v16 = vld [vmem:[%s3826_s7 + $0x12c] sm:$0xff]  ;;  %v1694_v4 = vmul.f32 %v6760_v49, %v6810_v58  ;;  %v1695_v24 = vmul.f32 %v6760_v49, %v6825_v46  ;;  %v1696_v5 = vmul.f32 %v6760_v49, %v6828_v59 }
 0x133   : > { %9635 = vst [vmem:[#allocation9_spill] sm:$0xff] %v6837_v18  ;;  %9639 = vst [vmem:[#allocation21_spill] sm:$0xff] %v6843_v20  ;;  %v6887_v41 = vld [vmem:[%s3826_s7 + $0x13c] sm:$0xff]  ;;  %v6890_v12 = vld [vmem:[%s3826_s7 + $0x144] sm:$0xff]  ;;  %v1697_v61 = vmul.f32 %v6760_v49, %v6831_v19  ;;  %v1698_v13 = vmul.f32 %v6760_v49, %v6846_v26  ;;  %v1699_v58 = vmul.f32 %v6760_v49, %v6849_v17 }
 0x134   : > { %9642 = vst [vmem:[#allocation92_spill] sm:$0xff] %v6852_v36  ;;  %9643 = vst [vmem:[#allocation93_spill] sm:$0xff] %v6855_v7  ;;  %v6893_v3 = vld [vmem:[%s3826_s7 + $0x154] sm:$0xff]  ;;  %v6904_v35 = vld [vmem:[%s3826_s7 + $0x15c] sm:$0xff]  ;;  %v1700_v46 = vmul.f32 %v6760_v49, %v6852_v36  ;;  %v1701_v28 = vmul.f32 %v6760_v49, %v6855_v7  ;;  %v1702_v23 = vmul.f32 %v6760_v49, %v6858_v53 }
 0x135   : > { %9644 = vst [vmem:[#allocation97_spill] sm:$0xff] %v6858_v53  ;;  %9645 = vst [vmem:[#allocation98_spill] sm:$0xff] %v6861_v34  ;;  %v6907_v8 = vld [vmem:[%s3826_s7 + $0x16c] sm:$0xff]  ;;  %v6910_v20 = vld [vmem:[%s3826_s7 + $0x174] sm:$0xff]  ;;  %v1703_v19 = vmul.f32 %v6760_v49, %v6861_v34  ;;  %v1704_v26 = vmul.f32 %v6760_v49, %v6870_v0  ;;  %v1705_v17 = vmul.f32 %v6760_v49, %v6873_v32 }
 0x136   : > { %9646 = vst [vmem:[#allocation99_spill] sm:$0xff] %v6870_v0  ;;  %9647 = vst [vmem:[#allocation100_spill] sm:$0xff] %v6873_v32  ;;  %v6921_v18 = vld [vmem:[%s3826_s7 + $0x19c] sm:$0xff]  ;;  %v6924_v59 = vld [vmem:[%s3826_s7 + $0x1a4] sm:$0xff]  ;;  %v1706_v36 = vmul.f32 %v6760_v49, %v6876_v16  ;;  %v1707_v27 = vmul.f32 %v6760_v49, %v6887_v41  ;;  %v1708_v7 = vmul.f32 %v6760_v49, %v6890_v12 }
 0x137   : > { %9648 = vst [vmem:[#allocation33_spill] sm:$0xff] %v6876_v16  ;;  %9649 = vst [vmem:[#allocation34_spill] sm:$0xff] %v6887_v41  ;;  %v1709_v53 = vmul.f32 %v6760_v49, %v6893_v3  ;;  %v1710_v34 = vmul.f32 %v6760_v49, %v6904_v35  ;;  %v1711_v0 = vmul.f32 %v6760_v49, %v6907_v8  ;;  %v9657_v14 = vld [vmem:[#allocation53_spill] sm:$0xff]  ;;  %v9658_v63 = vld [vmem:[#allocation54_spill] sm:$0xff] }
 0x138   : > { %9650 = vst [vmem:[#allocation115_spill] sm:$0xff] %v6890_v12  ;;  %9651 = vst [vmem:[#allocation116_spill] sm:$0xff] %v6893_v3  ;;  %v1712_v32 = vmul.f32 %v6760_v49, %v6910_v20  ;;  %v1713_v16 = vmul.f32 %v6760_v49, %v9657_v14  ;;  %v1714_v41 = vmul.f32 %v6760_v49, %v9658_v63 }
 0x139   : > { %9652 = vst [vmem:[#allocation117_spill] sm:$0xff] %v6904_v35  ;;  %9653 = vst [vmem:[#allocation118_spill] sm:$0xff] %v6907_v8  ;;  %v1715_v12 = vmul.f32 %v6760_v49, %v6921_v18  ;;  %v1716_v3 = vmul.f32 %v6760_v49, %v6924_v59  ;;  %v6959_v35 = vadd.f32 %v1685_v29, %v6710_v9  ;;  %v9682_v29 = vld [vmem:[#allocation61_spill] sm:$0xff] }
 0x13a   : > { %9654 = vst [vmem:[#allocation122_spill] sm:$0xff] %v6910_v20  ;;  %9655 = vst [vmem:[#allocation123_spill] sm:$0xff] %v6921_v18  ;;  %v6962_v8 = vadd.f32 %v1686_v42, %v6713_v37  ;;  %v6965_v20 = vadd.f32 %v1687_v1, %v6716_v45  ;;  %v6968_v14 = vadd.f32 %v1688_v2, %v6719_v25  ;;  %v9683_v1 = vld [vmem:[#allocation62_spill] sm:$0xff] }
 0x13b   : > { %9656 = vst [vmem:[#allocation124_spill] sm:$0xff] %v6924_v59  ;;  %v6971_v63 = vadd.f32 %v1689_v54, %v6722_v47  ;;  %v6974_v18 = vadd.f32 %v1690_v31, %v6725_v40  ;;  %v6977_v49 = vadd.f32 %v1691_v62, %v6728_v11  ;;  %v6980_v9 = vadd.f32 %v1692_v39, %v6731_v38  ;;  %v9687_v31 = vld [vmem:[#allocation70_spill] sm:$0xff]  ;;  %v9688_v39 = vld [vmem:[#allocation71_spill] sm:$0xff] }
 0x13c   : > { %v6983_v37 = vadd.f32 %v1693_v60, %v6734_v48  ;;  %v6986_v45 = vadd.f32 %v1694_v4, %v6737_v44  ;;  %v6989_v25 = vadd.f32 %v1695_v24, %v6740_v6  ;;  %v6992_v47 = vadd.f32 %v1696_v5, %v6743_v21  ;;  %v9666_v4 = vld [vmem:[#allocation66_spill] sm:$0xff]  ;;  %v9701_v59 = vld [vmem:[#allocation19_spill] sm:$0xff] }
 0x13d   : > { %v6995_v40 = vadd.f32 %v1697_v61, %v6746_v33  ;;  %v6998_v11 = vadd.f32 %v1698_v13, %v6749_v43  ;;  %v7001_v38 = vadd.f32 %v1699_v58, %v6752_v51  ;;  %v7004_v48 = vadd.f32 %v1700_v46, %v6755_v55  ;;  %v9676_v46 = vld [vmem:[#allocation21_spill] sm:$0xff] }
 0x13e   : > { %v7007_v44 = vadd.f32 %v1701_v28, %v6771_v22  ;;  %v7010_v6 = vadd.f32 %v1702_v23, %v6774_v50  ;;  %v7013_v5 = vadd.f32 %v1703_v19, %v6777_v30  ;;  %v7016_v21 = vadd.f32 %v1704_v26, %v6780_v10  ;;  %v3290_v22 = vld [vmem:[%s8628_s1 + $0xf] ss:$0 sm:$0xff]  ;;  %v9662_v50 = vld [vmem:[#allocation5_spill] sm:$0xff] }
 0x13f   : > { %v7019_v33 = vadd.f32 %v1705_v17, %v6792_v15  ;;  %v7022_v43 = vadd.f32 %v1706_v36, %v6795_v52  ;;  %v7025_v51 = vadd.f32 %v1707_v27, %v6798_v56  ;;  %v7028_v55 = vadd.f32 %v1708_v7, %v6801_v57  ;;  %v9664_v10 = vld [vmem:[#allocation65_spill] sm:$0xff]  ;;  %v9668_v15 = vld [vmem:[#allocation67_spill] sm:$0xff]  ;;  %v9674_v27 = vld [vmem:[#allocation20_spill] sm:$0xff] }
 0x140   : > { %v7034_v30 = vadd.f32 %v1709_v53, %v9662_v50  ;;  %v7037_v60 = vadd.f32 %v1710_v34, %v9664_v10  ;;  %v7040_v24 = vadd.f32 %v1711_v0, %v9666_v4  ;;  %v7043_v52 = vadd.f32 %v1712_v32, %v9668_v15  ;;  %v9670_v56 = vld [vmem:[#allocation7_spill] sm:$0xff]  ;;  %v9672_v57 = vld [vmem:[#allocation9_spill] sm:$0xff]  ;;  %v9679_v26 = vld [vmem:[#allocation58_spill] sm:$0xff] }
 0x141   : > { %9659 = vst [vmem:[#allocation125_spill] sm:$0xff] %v7022_v43  ;;  %9660 = vst [vmem:[#allocation55_spill] sm:$0xff] %v7025_v51  ;;  %v7046_v13 = vadd.f32 %v1713_v16, %v9670_v56  ;;  %v7049_v58 = vadd.f32 %v1714_v41, %v9672_v57  ;;  %v7052_v23 = vadd.f32 %v1715_v12, %v9674_v27  ;;  %v9678_v28 = vld [vmem:[#allocation57_spill] sm:$0xff]  ;;  %v9680_v36 = vld [vmem:[#allocation59_spill] sm:$0xff] }
 0x142   : > { %9661 = vst [vmem:[#allocation56_spill] sm:$0xff] %v7028_v55  ;;  %9663 = vst [vmem:[#allocation140_spill] sm:$0xff] %v7034_v30  ;;  %v7055_v19 = vadd.f32 %v1716_v3, %v9676_v46  ;;  %v1787_v61 = vmul.f32 %v3290_v22, %v9678_v28  ;;  %v1788_v17 = vmul.f32 %v3290_v22, %v9679_v26  ;;  %v9681_v53 = vld [vmem:[#allocation60_spill] sm:$0xff]  ;;  %v9684_v0 = vld [vmem:[#allocation63_spill] sm:$0xff] }
 0x143   : > { %9665 = vst [vmem:[#allocation141_spill] sm:$0xff] %v7037_v60  ;;  %9667 = vst [vmem:[#allocation142_spill] sm:$0xff] %v7040_v24  ;;  %v1789_v7 = vmul.f32 %v3290_v22, %v9680_v36  ;;  %v1790_v34 = vmul.f32 %v3290_v22, %v9681_v53  ;;  %v1791_v42 = vmul.f32 %v3290_v22, %v9682_v29  ;;  %v9685_v32 = vld [vmem:[#allocation64_spill] sm:$0xff]  ;;  %v9686_v3 = vld [vmem:[#allocation69_spill] sm:$0xff] }
 0x144   : > { %9669 = vst [vmem:[#allocation143_spill] sm:$0xff] %v7043_v52  ;;  %9671 = vst [vmem:[#allocation147_spill] sm:$0xff] %v7046_v13  ;;  %v1792_v2 = vmul.f32 %v3290_v22, %v9683_v1  ;;  %v1793_v12 = vmul.f32 %v3290_v22, %v9684_v0  ;;  %v1794_v16 = vmul.f32 %v3290_v22, %v9685_v32  ;;  %v9689_v50 = vld [vmem:[#allocation10_spill] sm:$0xff]  ;;  %v7070_v4 = vld [vmem:[%s3826_s7 + $0x180] sm:$0xff] }
 0x145   : > { %9673 = vst [vmem:[#allocation148_spill] sm:$0xff] %v7049_v58  ;;  %9675 = vst [vmem:[#allocation149_spill] sm:$0xff] %v7052_v23  ;;  %v1795_v54 = vmul.f32 %v3290_v22, %v9686_v3  ;;  %v1796_v62 = vmul.f32 %v3290_v22, %v9687_v31  ;;  %v1797_v41 = vmul.f32 %v3290_v22, %v9688_v39  ;;  %v7073_v15 = vld [vmem:[%s3826_s7 + $0x188] sm:$0xff]  ;;  %v9692_v56 = vld [vmem:[#allocation11_spill] sm:$0xff] }
 0x146   : > { %9677 = vst [vmem:[#allocation150_spill] sm:$0xff] %v7055_v19  ;;  %v1798_v10 = vmul.f32 %v3290_v22, %v9689_v50  ;;  %9690 = vst [vmem:[#allocation53_spill] sm:$0xff] %v7070_v4  ;;  %v1799_v57 = vmul.f32 %v3290_v22, %v9692_v56  ;;  %v9693_v27 = vld [vmem:[#allocation13_spill] sm:$0xff]  ;;  %v9694_v28 = vld [vmem:[#allocation14_spill] sm:$0xff]  ;;  %v1806_v19 = vmul.f32 %v3290_v22, %v9701_v59 }
 0x147   : > { %9691 = vst [vmem:[#allocation54_spill] sm:$0xff] %v7073_v15  ;;  %v1800_v46 = vmul.f32 %v3290_v22, %v9693_v27  ;;  %v1801_v26 = vmul.f32 %v3290_v22, %v9694_v28  ;;  %v9695_v36 = vld [vmem:[#allocation15_spill] sm:$0xff]  ;;  %v7083_v1 = vld [vmem:[%s3826_s7 + $0x1b8] sm:$0xff]  ;;  %v9699_v3 = vld [vmem:[#allocation17_spill] sm:$0xff] }
 0x148   : > { %v1802_v53 = vmul.f32 %v3290_v22, %v9695_v36  ;;  %v7080_v29 = vld [vmem:[%s3826_s7 + $0x1b0] sm:$0xff]  ;;  %9697 = vst [vmem:[#allocation65_spill] sm:$0xff] %v7083_v1  ;;  %v9698_v0 = vld [vmem:[#allocation16_spill] sm:$0xff]  ;;  %v1804_v31 = vmul.f32 %v3290_v22, %v9699_v3  ;;  %v9700_v39 = vld [vmem:[#allocation18_spill] sm:$0xff]  ;;  %v1814_v3 = vmul.f32 %v3290_v22, %v7073_v15 }
 0x149   : > { %9696 = vst [vmem:[#allocation5_spill] sm:$0xff] %v7080_v29  ;;  %v1803_v32 = vmul.f32 %v3290_v22, %v9698_v0  ;;  %v1805_v50 = vmul.f32 %v3290_v22, %v9700_v39  ;;  %v9702_v23 = vld [vmem:[#allocation74_spill] sm:$0xff]  ;;  %v9703_v58 = vld [vmem:[#allocation75_spill] sm:$0xff]  ;;  %v9704_v13 = vld [vmem:[#allocation76_spill] sm:$0xff]  ;;  %v1813_v0 = vmul.f32 %v3290_v22, %v7070_v4 }
 0x14a   : > { %v1807_v56 = vmul.f32 %v3290_v22, %v9702_v23  ;;  %v1808_v27 = vmul.f32 %v3290_v22, %v9703_v58  ;;  %v1809_v28 = vmul.f32 %v3290_v22, %v9704_v13  ;;  %v9705_v52 = vld [vmem:[#allocation77_spill] sm:$0xff]  ;;  %v9706_v24 = vld [vmem:[#allocation78_spill] sm:$0xff]  ;;  %v9707_v30 = vld [vmem:[#allocation79_spill] sm:$0xff]  ;;  %v1817_v23 = vmul.f32 %v3290_v22, %v7080_v29 }
 0x14b   : > { %v1810_v36 = vmul.f32 %v3290_v22, %v9705_v52  ;;  %v1811_v60 = vmul.f32 %v3290_v22, %v9706_v24  ;;  %v1812_v55 = vmul.f32 %v3290_v22, %v9707_v30  ;;  %v9708_v51 = vld [vmem:[#allocation80_spill] sm:$0xff]  ;;  %v9709_v43 = vld [vmem:[#allocation81_spill] sm:$0xff]  ;;  %v1818_v58 = vmul.f32 %v3290_v22, %v7083_v1  ;;  %v9754_v29 = vld [vmem:[#allocation26_spill] sm:$0xff] }
 0x14c   : > { %v1815_v39 = vmul.f32 %v3290_v22, %v9708_v51  ;;  %v1816_v59 = vmul.f32 %v3290_v22, %v9709_v43  ;;  %v7102_v13 = vadd.f32 %v1787_v61, %v6959_v35  ;;  %v7105_v52 = vadd.f32 %v1788_v17, %v6962_v8  ;;  %v9753_v1 = vld [vmem:[#allocation25_spill] sm:$0xff]  ;;  %v9755_v4 = vld [vmem:[#allocation27_spill] sm:$0xff] }
 0x14d   : > { %v7108_v30 = vadd.f32 %v1789_v7, %v6965_v20  ;;  %v7111_v24 = vadd.f32 %v1790_v34, %v6968_v14  ;;  %v7114_v51 = vadd.f32 %v1791_v42, %v6971_v63  ;;  %v7117_v43 = vadd.f32 %v1792_v2, %v6974_v18  ;;  %v9722_v2 = vld [vmem:[#allocation143_spill] sm:$0xff] }
 0x14e   : > { %v7120_v22 = vadd.f32 %v1793_v12, %v6977_v49  ;;  %v7123_v35 = vadd.f32 %v1794_v16, %v6980_v9  ;;  %v7126_v8 = vadd.f32 %v1795_v54, %v6983_v37  ;;  %v7129_v20 = vadd.f32 %v1796_v62, %v6986_v45  ;;  %v9724_v16 = vld [vmem:[#allocation147_spill] sm:$0xff]  ;;  %v9726_v62 = vld [vmem:[#allocation148_spill] sm:$0xff] }
 0x14f   : > { %v7132_v14 = vadd.f32 %v1797_v41, %v6989_v25  ;;  %v7135_v63 = vadd.f32 %v1798_v10, %v6992_v47  ;;  %v7138_v18 = vadd.f32 %v1799_v57, %v6995_v40  ;;  %v7141_v49 = vadd.f32 %v1800_v46, %v6998_v11  ;;  %v9728_v10 = vld [vmem:[#allocation149_spill] sm:$0xff]  ;;  %v9730_v57 = vld [vmem:[#allocation150_spill] sm:$0xff] }
 0x150   : > { %v7144_v9 = vadd.f32 %v1801_v26, %v7001_v38  ;;  %v7147_v37 = vadd.f32 %v1802_v53, %v7004_v48  ;;  %v7150_v45 = vadd.f32 %v1803_v32, %v7007_v44  ;;  %v7153_v25 = vadd.f32 %v1804_v31, %v7010_v6  ;;  %v9710_v38 = vld [vmem:[#allocation125_spill] sm:$0xff]  ;;  %v9712_v48 = vld [vmem:[#allocation55_spill] sm:$0xff]  ;;  %v9714_v44 = vld [vmem:[#allocation56_spill] sm:$0xff] }
 0x151   : > { %v7156_v47 = vadd.f32 %v1805_v50, %v7013_v5  ;;  %v7159_v40 = vadd.f32 %v1806_v19, %v7016_v21  ;;  %v7162_v11 = vadd.f32 %v1807_v56, %v7019_v33  ;;  %v7165_v61 = vadd.f32 %v1808_v27, %v9710_v38  ;;  %v3323_v6 = vld [vmem:[%s8628_s1 + $0x10] ss:$0 sm:$0xff]  ;;  %v9716_v5 = vld [vmem:[#allocation140_spill] sm:$0xff]  ;;  %v9718_v21 = vld [vmem:[#allocation141_spill] sm:$0xff] }
 0x152   : > { %v7168_v17 = vadd.f32 %v1809_v28, %v9712_v48  ;;  %v7171_v7 = vadd.f32 %v1810_v36, %v9714_v44  ;;  %v7177_v34 = vadd.f32 %v1811_v60, %v9716_v5  ;;  %v7180_v19 = vadd.f32 %v1812_v55, %v9718_v21  ;;  %v9720_v33 = vld [vmem:[#allocation142_spill] sm:$0xff]  ;;  %v9733_v53 = vld [vmem:[#allocation83_spill] sm:$0xff]  ;;  %v9734_v31 = vld [vmem:[#allocation84_spill] sm:$0xff] }
 0x153   : > { %9711 = vst [vmem:[#allocation66_spill] sm:$0xff] %v7165_v61  ;;  %v7183_v42 = vadd.f32 %v1813_v0, %v9720_v33  ;;  %v7186_v12 = vadd.f32 %v1814_v3, %v9722_v2  ;;  %v7189_v54 = vadd.f32 %v1815_v39, %v9724_v16  ;;  %v7192_v41 = vadd.f32 %v1816_v59, %v9726_v62  ;;  %v9732_v46 = vld [vmem:[#allocation82_spill] sm:$0xff]  ;;  %v9735_v56 = vld [vmem:[#allocation85_spill] sm:$0xff]  ;;  %v9737_v0 = vld [vmem:[#allocation87_spill] sm:$0xff] }
 0x154   : > { %9713 = vst [vmem:[#allocation67_spill] sm:$0xff] %v7168_v17  ;;  %9715 = vst [vmem:[#allocation7_spill] sm:$0xff] %v7171_v7  ;;  %v7195_v60 = vadd.f32 %v1817_v23, %v9728_v10  ;;  %v7198_v55 = vadd.f32 %v1818_v58, %v9730_v57  ;;  %v1888_v26 = vmul.f32 %v3323_v6, %v9732_v46  ;;  %v9736_v28 = vld [vmem:[#allocation86_spill] sm:$0xff]  ;;  %v9738_v39 = vld [vmem:[#allocation88_spill] sm:$0xff] }
 0x155   : > { %9717 = vst [vmem:[#allocation9_spill] sm:$0xff] %v7177_v34  ;;  %9719 = vst [vmem:[#allocation20_spill] sm:$0xff] %v7180_v19  ;;  %v1889_v32 = vmul.f32 %v3323_v6, %v9733_v53  ;;  %v1890_v50 = vmul.f32 %v3323_v6, %v9734_v31  ;;  %v1891_v27 = vmul.f32 %v3323_v6, %v9735_v56  ;;  %v9739_v23 = vld [vmem:[#allocation89_spill] sm:$0xff]  ;;  %v9740_v58 = vld [vmem:[#allocation94_spill] sm:$0xff] }
 0x156   : > { %9721 = vst [vmem:[#allocation21_spill] sm:$0xff] %v7183_v42  ;;  %9723 = vst [vmem:[#allocation57_spill] sm:$0xff] %v7186_v12  ;;  %v1892_v36 = vmul.f32 %v3323_v6, %v9736_v28  ;;  %v1893_v3 = vmul.f32 %v3323_v6, %v9737_v0  ;;  %v1894_v59 = vmul.f32 %v3323_v6, %v9738_v39  ;;  %v9741_v44 = vld [vmem:[#allocation95_spill] sm:$0xff]  ;;  %v9742_v21 = vld [vmem:[#allocation96_spill] sm:$0xff] }
 0x157   : > { %9725 = vst [vmem:[#allocation58_spill] sm:$0xff] %v7189_v54  ;;  %9727 = vst [vmem:[#allocation59_spill] sm:$0xff] %v7192_v41  ;;  %v1895_v38 = vmul.f32 %v3323_v6, %v9739_v23  ;;  %v1896_v48 = vmul.f32 %v3323_v6, %v9740_v58  ;;  %v1897_v5 = vmul.f32 %v3323_v6, %v9741_v44  ;;  %v9743_v2 = vld [vmem:[#allocation101_spill] sm:$0xff]  ;;  %v7216_v10 = vld [vmem:[%s3826_s7 + $0x189] sm:$0xff] }
 0x158   : > { %9729 = vst [vmem:[#allocation60_spill] sm:$0xff] %v7195_v60  ;;  %9731 = vst [vmem:[#allocation61_spill] sm:$0xff] %v7198_v55  ;;  %v1898_v33 = vmul.f32 %v3323_v6, %v9742_v21  ;;  %v1899_v16 = vmul.f32 %v3323_v6, %v9743_v2  ;;  %v7213_v62 = vld [vmem:[%s3826_s7 + $0x181] sm:$0xff]  ;;  %v9747_v53 = vld [vmem:[#allocation103_spill] sm:$0xff]  ;;  %v1905_v2 = vmul.f32 %v3323_v6, %v9753_v1 }
 0x159   : > { %9744 = vst [vmem:[#allocation62_spill] sm:$0xff] %v7213_v62  ;;  %9745 = vst [vmem:[#allocation63_spill] sm:$0xff] %v7216_v10  ;;  %v9746_v57 = vld [vmem:[#allocation102_spill] sm:$0xff]  ;;  %v1901_v31 = vmul.f32 %v3323_v6, %v9747_v53  ;;  %v9749_v0 = vld [vmem:[#allocation23_spill] sm:$0xff]  ;;  %v1906_v15 = vmul.f32 %v3323_v6, %v9754_v29  ;;  %v1907_v55 = vmul.f32 %v3323_v6, %v9755_v4 }
 0x15a   : > { %v1900_v46 = vmul.f32 %v3323_v6, %v9746_v57  ;;  %v9748_v56 = vld [vmem:[#allocation22_spill] sm:$0xff]  ;;  %v1903_v39 = vmul.f32 %v3323_v6, %v9749_v0  ;;  %v7223_v23 = vld [vmem:[%s3826_s7 + $0x1b1] sm:$0xff]  ;;  %v7226_v58 = vld [vmem:[%s3826_s7 + $0x1b9] sm:$0xff]  ;;  %v1915_v1 = vmul.f32 %v3323_v6, %v7216_v10 }
 0x15b   : > { %v1902_v28 = vmul.f32 %v3323_v6, %v9748_v56  ;;  %9750 = vst [vmem:[#allocation64_spill] sm:$0xff] %v7223_v23  ;;  %9751 = vst [vmem:[#allocation69_spill] sm:$0xff] %v7226_v58  ;;  %v9752_v44 = vld [vmem:[#allocation24_spill] sm:$0xff]  ;;  %v9757_v41 = vld [vmem:[#allocation29_spill] sm:$0xff] }
 0x15c   : > { %v1904_v21 = vmul.f32 %v3323_v6, %v9752_v44  ;;  %v9756_v60 = vld [vmem:[#allocation28_spill] sm:$0xff]  ;;  %v1909_v53 = vmul.f32 %v3323_v6, %v9757_v41  ;;  %v9758_v54 = vld [vmem:[#allocation30_spill] sm:$0xff]  ;;  %v9759_v12 = vld [vmem:[#allocation31_spill] sm:$0xff]  ;;  %v1914_v44 = vmul.f32 %v3323_v6, %v7213_v62  ;;  %v1919_v41 = vmul.f32 %v3323_v6, %v7226_v58 }
 0x15d   : > { %v1908_v57 = vmul.f32 %v3323_v6, %v9756_v60  ;;  %v1910_v56 = vmul.f32 %v3323_v6, %v9758_v54  ;;  %v1911_v0 = vmul.f32 %v3323_v6, %v9759_v12  ;;  %v9760_v42 = vld [vmem:[#allocation32_spill] sm:$0xff]  ;;  %v9762_v17 = vld [vmem:[#allocation105_spill] sm:$0xff]  ;;  %v9763_v61 = vld [vmem:[#allocation106_spill] sm:$0xff]  ;;  %v1918_v60 = vmul.f32 %v3323_v6, %v7223_v23 }
 0x15e   : > { %v1912_v19 = vmul.f32 %v3323_v6, %v9760_v42  ;;  %v9761_v34 = vld [vmem:[#allocation104_spill] sm:$0xff]  ;;  %v1916_v29 = vmul.f32 %v3323_v6, %v9762_v17  ;;  %v1917_v4 = vmul.f32 %v3323_v6, %v9763_v61  ;;  %v7245_v54 = vadd.f32 %v1888_v26, %v7102_v13  ;;  %v9808_v23 = vld [vmem:[#allocation133_spill] sm:$0xff]  ;;  %v9809_v62 = vld [vmem:[#allocation35_spill] sm:$0xff] }
 0x15f   : > { %v1913_v7 = vmul.f32 %v3323_v6, %v9761_v34  ;;  %v7248_v12 = vadd.f32 %v1889_v32, %v7105_v52  ;;  %v7251_v34 = vadd.f32 %v1890_v50, %v7108_v30  ;;  %v7254_v42 = vadd.f32 %v1891_v27, %v7111_v24  ;;  %v9807_v58 = vld [vmem:[#allocation132_spill] sm:$0xff] }
 0x160   : > { %v7257_v17 = vadd.f32 %v1892_v36, %v7114_v51  ;;  %v7260_v61 = vadd.f32 %v1893_v3, %v7117_v43  ;;  %v7263_v6 = vadd.f32 %v1894_v59, %v7120_v22  ;;  %v7266_v13 = vadd.f32 %v1895_v38, %v7123_v35  ;;  %v9776_v36 = vld [vmem:[#allocation57_spill] sm:$0xff]  ;;  %v9778_v59 = vld [vmem:[#allocation58_spill] sm:$0xff] }
 0x161   : > { %v7269_v52 = vadd.f32 %v1896_v48, %v7126_v8  ;;  %v7272_v30 = vadd.f32 %v1897_v5, %v7129_v20  ;;  %v7275_v24 = vadd.f32 %v1898_v33, %v7132_v14  ;;  %v7278_v51 = vadd.f32 %v1899_v16, %v7135_v63  ;;  %v9780_v48 = vld [vmem:[#allocation59_spill] sm:$0xff]  ;;  %v9782_v33 = vld [vmem:[#allocation60_spill] sm:$0xff]  ;;  %v9784_v16 = vld [vmem:[#allocation61_spill] sm:$0xff] }
 0x162   : > { %v7281_v43 = vadd.f32 %v1900_v46, %v7138_v18  ;;  %v7284_v22 = vadd.f32 %v1901_v31, %v7141_v49  ;;  %v7287_v35 = vadd.f32 %v1902_v28, %v7144_v9  ;;  %v7290_v8 = vadd.f32 %v1903_v39, %v7147_v37  ;;  %v9764_v9 = vld [vmem:[#allocation66_spill] sm:$0xff]  ;;  %v9766_v37 = vld [vmem:[#allocation67_spill] sm:$0xff]  ;;  %v9787_v28 = vld [vmem:[#allocation108_spill] sm:$0xff] }
 0x163   : > { %v7293_v20 = vadd.f32 %v1904_v21, %v7150_v45  ;;  %v7296_v14 = vadd.f32 %v1905_v2, %v7153_v25  ;;  %v7299_v63 = vadd.f32 %v1906_v15, %v7156_v47  ;;  %v7302_v18 = vadd.f32 %v1907_v55, %v7159_v40  ;;  %v9768_v45 = vld [vmem:[#allocation7_spill] sm:$0xff]  ;;  %v9770_v25 = vld [vmem:[#allocation9_spill] sm:$0xff]  ;;  %v9772_v40 = vld [vmem:[#allocation20_spill] sm:$0xff] }
 0x164   : > { %v7305_v49 = vadd.f32 %v1908_v57, %v7162_v11  ;;  %v7308_v26 = vadd.f32 %v1909_v53, %v9764_v9  ;;  %v7311_v32 = vadd.f32 %v1910_v56, %v9766_v37  ;;  %v7314_v50 = vadd.f32 %v1911_v0, %v9768_v45  ;;  %v3356_v15 = vld [vmem:[%s8628_s1 + $0x11] ss:$0 sm:$0xff]  ;;  %v9774_v11 = vld [vmem:[#allocation21_spill] sm:$0xff]  ;;  %v9789_v57 = vld [vmem:[#allocation110_spill] sm:$0xff] }
 0x165   : > { %v7320_v47 = vadd.f32 %v1912_v19, %v9770_v25  ;;  %v7323_v55 = vadd.f32 %v1913_v7, %v9772_v40  ;;  %v7326_v27 = vadd.f32 %v1914_v44, %v9774_v11  ;;  %v7329_v3 = vadd.f32 %v1915_v1, %v9776_v36  ;;  %v9786_v46 = vld [vmem:[#allocation107_spill] sm:$0xff]  ;;  %v9788_v21 = vld [vmem:[#allocation109_spill] sm:$0xff]  ;;  %v9791_v44 = vld [vmem:[#allocation112_spill] sm:$0xff] }
 0x166   : > { %9765 = vst [vmem:[#allocation70_spill] sm:$0xff] %v7308_v26  ;;  %9767 = vst [vmem:[#allocation71_spill] sm:$0xff] %v7311_v32  ;;  %v7332_v38 = vadd.f32 %v1916_v29, %v9778_v59  ;;  %v7335_v5 = vadd.f32 %v1917_v4, %v9780_v48  ;;  %v7338_v19 = vadd.f32 %v1918_v60, %v9782_v33  ;;  %v9790_v56 = vld [vmem:[#allocation111_spill] sm:$0xff]  ;;  %v9792_v29 = vld [vmem:[#allocation113_spill] sm:$0xff] }
 0x167   : > { %9769 = vst [vmem:[#allocation10_spill] sm:$0xff] %v7314_v50  ;;  %9771 = vst [vmem:[#allocation11_spill] sm:$0xff] %v7320_v47  ;;  %v7341_v7 = vadd.f32 %v1919_v41, %v9784_v16  ;;  %v1989_v31 = vmul.f32 %v3356_v15, %v9786_v46  ;;  %v1990_v39 = vmul.f32 %v3356_v15, %v9787_v28  ;;  %v9793_v60 = vld [vmem:[#allocation114_spill] sm:$0xff]  ;;  %v9794_v41 = vld [vmem:[#allocation119_spill] sm:$0xff] }
 0x168   : > { %9773 = vst [vmem:[#allocation13_spill] sm:$0xff] %v7323_v55  ;;  %9775 = vst [vmem:[#allocation14_spill] sm:$0xff] %v7326_v27  ;;  %v1991_v2 = vmul.f32 %v3356_v15, %v9788_v21  ;;  %v1992_v53 = vmul.f32 %v3356_v15, %v9789_v57  ;;  %v1993_v0 = vmul.f32 %v3356_v15, %v9790_v56  ;;  %v9795_v45 = vld [vmem:[#allocation120_spill] sm:$0xff]  ;;  %v9796_v40 = vld [vmem:[#allocation121_spill] sm:$0xff] }
 0x169   : > { %9777 = vst [vmem:[#allocation15_spill] sm:$0xff] %v7329_v3  ;;  %9779 = vst [vmem:[#allocation16_spill] sm:$0xff] %v7332_v38  ;;  %v1994_v1 = vmul.f32 %v3356_v15, %v9791_v44  ;;  %v1995_v4 = vmul.f32 %v3356_v15, %v9792_v29  ;;  %v1996_v9 = vmul.f32 %v3356_v15, %v9793_v60  ;;  %v9797_v36 = vld [vmem:[#allocation126_spill] sm:$0xff]  ;;  %v9800_v16 = vld [vmem:[#allocation127_spill] sm:$0xff] }
 0x16a   : > { %9781 = vst [vmem:[#allocation17_spill] sm:$0xff] %v7335_v5  ;;  %9783 = vst [vmem:[#allocation18_spill] sm:$0xff] %v7338_v19  ;;  %v1997_v37 = vmul.f32 %v3356_v15, %v9794_v41  ;;  %v1998_v25 = vmul.f32 %v3356_v15, %v9795_v45  ;;  %v1999_v11 = vmul.f32 %v3356_v15, %v9796_v40  ;;  %v7356_v48 = vld [vmem:[%s3826_s7 + $0x182] sm:$0xff]  ;;  %v7359_v33 = vld [vmem:[%s3826_s7 + $0x18a] sm:$0xff] }
 0x16b   : > { %9785 = vst [vmem:[#allocation19_spill] sm:$0xff] %v7341_v7  ;;  %v2000_v59 = vmul.f32 %v3356_v15, %v9797_v36  ;;  %9798 = vst [vmem:[#allocation74_spill] sm:$0xff] %v7356_v48  ;;  %v2001_v46 = vmul.f32 %v3356_v15, %v9800_v16  ;;  %v9801_v28 = vld [vmem:[#allocation128_spill] sm:$0xff]  ;;  %v9802_v57 = vld [vmem:[#allocation129_spill] sm:$0xff]  ;;  %v2006_v36 = vmul.f32 %v3356_v15, %v9807_v58 }
 0x16c   : > { %9799 = vst [vmem:[#allocation75_spill] sm:$0xff] %v7359_v33  ;;  %v2002_v21 = vmul.f32 %v3356_v15, %v9801_v28  ;;  %v2003_v56 = vmul.f32 %v3356_v15, %v9802_v57  ;;  %v9803_v44 = vld [vmem:[#allocation130_spill] sm:$0xff]  ;;  %v7366_v60 = vld [vmem:[%s3826_s7 + $0x1b2] sm:$0xff]  ;;  %v7369_v41 = vld [vmem:[%s3826_s7 + $0x1ba] sm:$0xff]  ;;  %v2007_v10 = vmul.f32 %v3356_v15, %v9808_v23  ;;  %v2008_v7 = vmul.f32 %v3356_v15, %v9809_v62 }
 0x16d   : > { %v2004_v29 = vmul.f32 %v3356_v15, %v9803_v44  ;;  %9804 = vst [vmem:[#allocation76_spill] sm:$0xff] %v7366_v60  ;;  %9805 = vst [vmem:[#allocation77_spill] sm:$0xff] %v7369_v41  ;;  %v9806_v45 = vld [vmem:[#allocation131_spill] sm:$0xff]  ;;  %v9810_v19 = vld [vmem:[#allocation8_spill] sm:$0xff]  ;;  %v2016_v58 = vmul.f32 %v3356_v15, %v7359_v33 }
 0x16e   : > { %v2005_v40 = vmul.f32 %v3356_v15, %v9806_v45  ;;  %v2009_v16 = vmul.f32 %v3356_v15, %v9810_v19  ;;  %v9811_v5 = vld [vmem:[#allocation12_spill] sm:$0xff]  ;;  %v9813_v3 = vld [vmem:[#allocation165_spill] sm:$0xff]  ;;  %v9814_v27 = vld [vmem:[#allocation43_spill] sm:$0xff]  ;;  %v2015_v45 = vmul.f32 %v3356_v15, %v7356_v48  ;;  %v2019_v19 = vmul.f32 %v3356_v15, %v7366_v60 }
 0x16f   : > { %v2010_v28 = vmul.f32 %v3356_v15, %v9811_v5  ;;  %v9812_v38 = vld [vmem:[#allocation164_spill] sm:$0xff]  ;;  %v2012_v44 = vmul.f32 %v3356_v15, %v9813_v3  ;;  %v2013_v55 = vmul.f32 %v3356_v15, %v9814_v27  ;;  %v9817_v26 = vld [vmem:[#allocation49_spill] sm:$0xff]  ;;  %v2020_v5 = vmul.f32 %v3356_v15, %v7369_v41  ;;  %v9862_v60 = vld [vmem:[#allocation158_spill] sm:$0xff] }
 0x170   : > { %v2011_v57 = vmul.f32 %v3356_v15, %v9812_v38  ;;  %v9815_v47 = vld [vmem:[#allocation44_spill] sm:$0xff]  ;;  %v2018_v62 = vmul.f32 %v3356_v15, %v9817_v26  ;;  %v7388_v38 = vadd.f32 %v1989_v31, %v7245_v54  ;;  %v7391_v3 = vadd.f32 %v1990_v39, %v7248_v12  ;;  %v9861_v41 = vld [vmem:[#allocation157_spill] sm:$0xff]  ;;  %v9863_v48 = vld [vmem:[#allocation159_spill] sm:$0xff] }
 0x171   : > { %v2014_v50 = vmul.f32 %v3356_v15, %v9815_v47  ;;  %v9816_v32 = vld [vmem:[#allocation48_spill] sm:$0xff]  ;;  %v7394_v47 = vadd.f32 %v1991_v2, %v7251_v34  ;;  %v7397_v27 = vadd.f32 %v1992_v53, %v7254_v42  ;;  %v7403_v26 = vadd.f32 %v1994_v1, %v7260_v61 }
 0x172   : > { %v2017_v23 = vmul.f32 %v3356_v15, %v9816_v32  ;;  %v7400_v32 = vadd.f32 %v1993_v0, %v7257_v17  ;;  %v7406_v15 = vadd.f32 %v1995_v4, %v7263_v6  ;;  %v7409_v54 = vadd.f32 %v1996_v9, %v7266_v13  ;;  %v9830_v0 = vld [vmem:[#allocation15_spill] sm:$0xff]  ;;  %v9832_v4 = vld [vmem:[#allocation16_spill] sm:$0xff] }
 0x173   : > { %v7412_v12 = vadd.f32 %v1997_v37, %v7269_v52  ;;  %v7415_v34 = vadd.f32 %v1998_v25, %v7272_v30  ;;  %v7418_v42 = vadd.f32 %v1999_v11, %v7275_v24  ;;  %v7421_v17 = vadd.f32 %v2000_v59, %v7278_v51  ;;  %v9834_v37 = vld [vmem:[#allocation17_spill] sm:$0xff]  ;;  %v9836_v11 = vld [vmem:[#allocation18_spill] sm:$0xff]  ;;  %v9838_v59 = vld [vmem:[#allocation19_spill] sm:$0xff] }
 0x174   : > { %v7424_v61 = vadd.f32 %v2001_v46, %v7281_v43  ;;  %v7427_v6 = vadd.f32 %v2002_v21, %v7284_v22  ;;  %v7430_v13 = vadd.f32 %v2003_v56, %v7287_v35  ;;  %v7433_v52 = vadd.f32 %v2004_v29, %v7290_v8  ;;  %v9818_v35 = vld [vmem:[#allocation70_spill] sm:$0xff]  ;;  %v9820_v8 = vld [vmem:[#allocation71_spill] sm:$0xff] }
 0x175   : > { %v7436_v30 = vadd.f32 %v2005_v40, %v7293_v20  ;;  %v7439_v24 = vadd.f32 %v2006_v36, %v7296_v14  ;;  %v7442_v51 = vadd.f32 %v2007_v10, %v7299_v63  ;;  %v7445_v43 = vadd.f32 %v2008_v7, %v7302_v18  ;;  %v9822_v20 = vld [vmem:[#allocation10_spill] sm:$0xff]  ;;  %v3389_v10 = vld [vmem:[%s8628_s1 + $0x12] ss:$0 sm:$0xff]  ;;  %v9826_v18 = vld [vmem:[#allocation13_spill] sm:$0xff] }
 0x176   : > { %v7448_v22 = vadd.f32 %v2009_v16, %v7305_v49  ;;  %v7451_v31 = vadd.f32 %v2010_v28, %v9818_v35  ;;  %v7454_v39 = vadd.f32 %v2011_v57, %v9820_v8  ;;  %v7457_v2 = vadd.f32 %v2012_v44, %v9822_v20  ;;  %v9824_v14 = vld [vmem:[#allocation11_spill] sm:$0xff]  ;;  %v9828_v49 = vld [vmem:[#allocation14_spill] sm:$0xff]  ;;  %v9844_v57 = vld [vmem:[#allocation136_spill] sm:$0xff] }
 0x177   : > { %v7463_v63 = vadd.f32 %v2013_v55, %v9824_v14  ;;  %v7466_v7 = vadd.f32 %v2014_v50, %v9826_v18  ;;  %v7469_v53 = vadd.f32 %v2015_v45, %v9828_v49  ;;  %v7472_v1 = vadd.f32 %v2016_v58, %v9830_v0  ;;  %v9840_v46 = vld [vmem:[#allocation50_spill] sm:$0xff]  ;;  %v9841_v56 = vld [vmem:[#allocation51_spill] sm:$0xff]  ;;  %v9845_v45 = vld [vmem:[#allocation137_spill] sm:$0xff] }
 0x178   : > { %9819 = vst [vmem:[#allocation78_spill] sm:$0xff] %v7451_v31  ;;  %9821 = vst [vmem:[#allocation79_spill] sm:$0xff] %v7454_v39  ;;  %v7475_v9 = vadd.f32 %v2017_v23, %v9832_v4  ;;  %v7478_v25 = vadd.f32 %v2018_v62, %v9834_v37  ;;  %v7481_v55 = vadd.f32 %v2019_v19, %v9836_v11  ;;  %v9842_v40 = vld [vmem:[#allocation134_spill] sm:$0xff]  ;;  %v9843_v16 = vld [vmem:[#allocation135_spill] sm:$0xff] }
 0x179   : > { %9823 = vst [vmem:[#allocation80_spill] sm:$0xff] %v7457_v2  ;;  %9825 = vst [vmem:[#allocation81_spill] sm:$0xff] %v7463_v63  ;;  %v7484_v50 = vadd.f32 %v2020_v5, %v9838_v59  ;;  %v2090_v21 = vmul.f32 %v3389_v10, %v9840_v46  ;;  %v2091_v29 = vmul.f32 %v3389_v10, %v9841_v56  ;;  %v9846_v23 = vld [vmem:[#allocation138_spill] sm:$0xff]  ;;  %v9847_v19 = vld [vmem:[#allocation139_spill] sm:$0xff] }
 0x17a   : > { %9827 = vst [vmem:[#allocation125_spill] sm:$0xff] %v7466_v7  ;;  %9829 = vst [vmem:[#allocation55_spill] sm:$0xff] %v7469_v53  ;;  %v2092_v36 = vmul.f32 %v3389_v10, %v9842_v40  ;;  %v2093_v28 = vmul.f32 %v3389_v10, %v9843_v16  ;;  %v2094_v44 = vmul.f32 %v3389_v10, %v9844_v57  ;;  %v9848_v5 = vld [vmem:[#allocation144_spill] sm:$0xff]  ;;  %v9849_v20 = vld [vmem:[#allocation145_spill] sm:$0xff] }
 0x17b   : > { %9831 = vst [vmem:[#allocation56_spill] sm:$0xff] %v7472_v1  ;;  %9833 = vst [vmem:[#allocation140_spill] sm:$0xff] %v7475_v9  ;;  %v2095_v58 = vmul.f32 %v3389_v10, %v9845_v45  ;;  %v2096_v62 = vmul.f32 %v3389_v10, %v9846_v23  ;;  %v2097_v35 = vmul.f32 %v3389_v10, %v9847_v19  ;;  %v9850_v18 = vld [vmem:[#allocation146_spill] sm:$0xff]  ;;  %v9851_v0 = vld [vmem:[#allocation151_spill] sm:$0xff] }
 0x17c   : > { %9835 = vst [vmem:[#allocation141_spill] sm:$0xff] %v7478_v25  ;;  %9837 = vst [vmem:[#allocation142_spill] sm:$0xff] %v7481_v55  ;;  %v2098_v8 = vmul.f32 %v3389_v10, %v9848_v5  ;;  %v2099_v14 = vmul.f32 %v3389_v10, %v9849_v20  ;;  %v2100_v49 = vmul.f32 %v3389_v10, %v9850_v18  ;;  %v7499_v37 = vld [vmem:[%s3826_s7 + $0x183] sm:$0xff]  ;;  %v7502_v11 = vld [vmem:[%s3826_s7 + $0x18b] sm:$0xff] }
 0x17d   : > { %9839 = vst [vmem:[#allocation143_spill] sm:$0xff] %v7484_v50  ;;  %v2101_v4 = vmul.f32 %v3389_v10, %v9851_v0  ;;  %9852 = vst [vmem:[#allocation147_spill] sm:$0xff] %v7499_v37  ;;  %v9854_v59 = vld [vmem:[#allocation152_spill] sm:$0xff]  ;;  %v9855_v56 = vld [vmem:[#allocation153_spill] sm:$0xff]  ;;  %v2107_v0 = vmul.f32 %v3389_v10, %v9861_v41  ;;  %v2108_v33 = vmul.f32 %v3389_v10, %v9862_v60 }
 0x17e   : > { %9853 = vst [vmem:[#allocation148_spill] sm:$0xff] %v7502_v11  ;;  %v2102_v46 = vmul.f32 %v3389_v10, %v9854_v59  ;;  %v2103_v40 = vmul.f32 %v3389_v10, %v9855_v56  ;;  %v9856_v16 = vld [vmem:[#allocation154_spill] sm:$0xff]  ;;  %v9857_v45 = vld [vmem:[#allocation155_spill] sm:$0xff]  ;;  %v7512_v5 = vld [vmem:[%s3826_s7 + $0x1bb] sm:$0xff]  ;;  %v2109_v50 = vmul.f32 %v3389_v10, %v9863_v48  ;;  %v2117_v41 = vmul.f32 %v3389_v10, %v7502_v11 }
 0x17f   : > { %v2104_v57 = vmul.f32 %v3389_v10, %v9856_v16  ;;  %v2105_v23 = vmul.f32 %v3389_v10, %v9857_v45  ;;  %v7509_v19 = vld [vmem:[%s3826_s7 + $0x1b3] sm:$0xff]  ;;  %9859 = vst [vmem:[#allocation150_spill] sm:$0xff] %v7512_v5  ;;  %v9865_v25 = vld [vmem:[#allocation161_spill] sm:$0xff]  ;;  %v9866_v9 = vld [vmem:[#allocation162_spill] sm:$0xff] }
 0x180   : > { %9858 = vst [vmem:[#allocation149_spill] sm:$0xff] %v7509_v19  ;;  %v9860_v20 = vld [vmem:[#allocation156_spill] sm:$0xff]  ;;  %v2111_v56 = vmul.f32 %v3389_v10, %v9865_v25  ;;  %v2112_v16 = vmul.f32 %v3389_v10, %v9866_v9  ;;  %v9867_v1 = vld [vmem:[#allocation163_spill] sm:$0xff]  ;;  %v9869_v63 = vld [vmem:[#allocation37_spill] sm:$0xff]  ;;  %v2121_v25 = vmul.f32 %v3389_v10, %v7512_v5  ;;  %v7531_v9 = vadd.f32 %v2090_v21, %v7388_v38 }
 0x181   : > { %v2106_v18 = vmul.f32 %v3389_v10, %v9860_v20  ;;  %v9864_v55 = vld [vmem:[#allocation160_spill] sm:$0xff]  ;;  %v2113_v45 = vmul.f32 %v3389_v10, %v9867_v1  ;;  %v2115_v2 = vmul.f32 %v3389_v10, %v9869_v63  ;;  %v2116_v20 = vmul.f32 %v3389_v10, %v7499_v37  ;;  %v9870_v39 = vld [vmem:[#allocation38_spill] sm:$0xff]  ;;  %v9871_v31 = vld [vmem:[#allocation39_spill] sm:$0xff] }
 0x182   : > { %v2110_v59 = vmul.f32 %v3389_v10, %v9864_v55  ;;  %v9868_v53 = vld [vmem:[#allocation36_spill] sm:$0xff]  ;;  %v2118_v60 = vmul.f32 %v3389_v10, %v9870_v39  ;;  %v2119_v48 = vmul.f32 %v3389_v10, %v9871_v31  ;;  %v2120_v55 = vmul.f32 %v3389_v10, %v7509_v19  ;;  %v9915_v5 = vld [vmem:[#allocation99_spill] sm:$0xff]  ;;  %v9917_v37 = vld [vmem:[#allocation33_spill] sm:$0xff] }
 0x183   : > { %v2114_v7 = vmul.f32 %v3389_v10, %v9868_v53  ;;  %v7534_v1 = vadd.f32 %v2091_v29, %v7391_v3  ;;  %v7537_v63 = vadd.f32 %v2092_v36, %v7394_v47  ;;  %v7540_v53 = vadd.f32 %v2093_v28, %v7397_v27  ;;  %v9916_v19 = vld [vmem:[#allocation100_spill] sm:$0xff] }
 0x184   : > { %v7543_v39 = vadd.f32 %v2094_v44, %v7400_v32  ;;  %v7546_v31 = vadd.f32 %v2095_v58, %v7403_v26  ;;  %v7549_v10 = vadd.f32 %v2096_v62, %v7406_v15  ;;  %v7552_v38 = vadd.f32 %v2097_v35, %v7409_v54  ;;  %v9884_v44 = vld [vmem:[#allocation56_spill] sm:$0xff] }
 0x185   : > { %v7555_v3 = vadd.f32 %v2098_v8, %v7412_v12  ;;  %v7558_v47 = vadd.f32 %v2099_v14, %v7415_v34  ;;  %v7561_v27 = vadd.f32 %v2100_v49, %v7418_v42  ;;  %v7564_v32 = vadd.f32 %v2101_v4, %v7421_v17  ;;  %v9886_v62 = vld [vmem:[#allocation140_spill] sm:$0xff]  ;;  %v9888_v8 = vld [vmem:[#allocation141_spill] sm:$0xff]  ;;  %v9890_v49 = vld [vmem:[#allocation142_spill] sm:$0xff] }
 0x186   : > { %v7567_v26 = vadd.f32 %v2102_v46, %v7424_v61  ;;  %v7570_v15 = vadd.f32 %v2103_v40, %v7427_v6  ;;  %v7573_v54 = vadd.f32 %v2104_v57, %v7430_v13  ;;  %v7576_v12 = vadd.f32 %v2105_v23, %v7433_v52  ;;  %v9872_v13 = vld [vmem:[#allocation78_spill] sm:$0xff]  ;;  %v9874_v52 = vld [vmem:[#allocation79_spill] sm:$0xff]  ;;  %v9894_v46 = vld [vmem:[#allocation40_spill] sm:$0xff] }
 0x187   : > { %v7579_v34 = vadd.f32 %v2106_v18, %v7436_v30  ;;  %v7582_v42 = vadd.f32 %v2107_v0, %v7439_v24  ;;  %v7585_v17 = vadd.f32 %v2108_v33, %v7442_v51  ;;  %v7588_v61 = vadd.f32 %v2109_v50, %v7445_v43  ;;  %v9876_v30 = vld [vmem:[#allocation80_spill] sm:$0xff]  ;;  %v3422_v33 = vld [vmem:[%s8628_s1 + $0x13] ss:$0 sm:$0xff]  ;;  %v9878_v24 = vld [vmem:[#allocation81_spill] sm:$0xff] }
 0x188   : > { %v7591_v6 = vadd.f32 %v2110_v59, %v7448_v22  ;;  %v7594_v21 = vadd.f32 %v2111_v56, %v9872_v13  ;;  %v7597_v29 = vadd.f32 %v2112_v16, %v9874_v52  ;;  %v7600_v36 = vadd.f32 %v2113_v45, %v9876_v30  ;;  %v9880_v43 = vld [vmem:[#allocation125_spill] sm:$0xff]  ;;  %v9882_v22 = vld [vmem:[#allocation55_spill] sm:$0xff]  ;;  %v9896_v18 = vld [vmem:[#allocation42_spill] sm:$0xff] }
 0x189   : > { %v7606_v51 = vadd.f32 %v2114_v7, %v9878_v24  ;;  %v7609_v50 = vadd.f32 %v2115_v2, %v9880_v43  ;;  %v7612_v28 = vadd.f32 %v2116_v20, %v9882_v22  ;;  %v7615_v58 = vadd.f32 %v2117_v41, %v9884_v44  ;;  %v9892_v4 = vld [vmem:[#allocation143_spill] sm:$0xff]  ;;  %v9895_v57 = vld [vmem:[#allocation41_spill] sm:$0xff]  ;;  %v9898_v16 = vld [vmem:[#allocation46_spill] sm:$0xff] }
 0x18a   : > { %9873 = vst [vmem:[#allocation82_spill] sm:$0xff] %v7594_v21  ;;  %9875 = vst [vmem:[#allocation83_spill] sm:$0xff] %v7597_v29  ;;  %v7618_v35 = vadd.f32 %v2118_v60, %v9886_v62  ;;  %v7621_v14 = vadd.f32 %v2119_v48, %v9888_v8  ;;  %v7624_v7 = vadd.f32 %v2120_v55, %v9890_v49  ;;  %v9897_v59 = vld [vmem:[#allocation45_spill] sm:$0xff]  ;;  %v9899_v20 = vld [vmem:[#allocation47_spill] sm:$0xff] }
 0x18b   : > { %9877 = vst [vmem:[#allocation84_spill] sm:$0xff] %v7600_v36  ;;  %9879 = vst [vmem:[#allocation85_spill] sm:$0xff] %v7606_v51  ;;  %v7627_v2 = vadd.f32 %v2121_v25, %v9892_v4  ;;  %v2191_v40 = vmul.f32 %v3422_v33, %v9894_v46  ;;  %v2192_v23 = vmul.f32 %v3422_v33, %v9895_v57  ;;  %v9900_v60 = vld [vmem:[#allocation52_spill] sm:$0xff]  ;;  %v9901_v55 = vld [vmem:[#allocation6_spill] sm:$0xff] }
 0x18c   : > { %9881 = vst [vmem:[#allocation86_spill] sm:$0xff] %v7609_v50  ;;  %9883 = vst [vmem:[#allocation87_spill] sm:$0xff] %v7612_v28  ;;  %v2193_v0 = vmul.f32 %v3422_v33, %v9896_v18  ;;  %v2194_v56 = vmul.f32 %v3422_v33, %v9897_v59  ;;  %v2195_v45 = vmul.f32 %v3422_v33, %v9898_v16  ;;  %v9902_v25 = vld [vmem:[#allocation68_spill] sm:$0xff]  ;;  %v9904_v43 = vld [vmem:[#allocation73_spill] sm:$0xff] }
 0x18d   : > { %9885 = vst [vmem:[#allocation88_spill] sm:$0xff] %v7615_v58  ;;  %9887 = vst [vmem:[#allocation89_spill] sm:$0xff] %v7618_v35  ;;  %v2196_v41 = vmul.f32 %v3422_v33, %v9899_v20  ;;  %v2197_v48 = vmul.f32 %v3422_v33, %v9900_v60  ;;  %v2198_v13 = vmul.f32 %v3422_v33, %v9901_v55  ;;  %v9903_v30 = vld [vmem:[#allocation72_spill] sm:$0xff]  ;;  %v9905_v44 = vld [vmem:[#allocation90_spill] sm:$0xff] }
 0x18e   : > { %9889 = vst [vmem:[#allocation94_spill] sm:$0xff] %v7621_v14  ;;  %9891 = vst [vmem:[#allocation95_spill] sm:$0xff] %v7624_v7  ;;  %v2199_v52 = vmul.f32 %v3422_v33, %v9902_v25  ;;  %v2200_v24 = vmul.f32 %v3422_v33, %v9903_v30  ;;  %v2201_v22 = vmul.f32 %v3422_v33, %v9904_v43  ;;  %v7642_v8 = vld [vmem:[%s3826_s7 + $0x184] sm:$0xff]  ;;  %v7645_v49 = vld [vmem:[%s3826_s7 + $0x18c] sm:$0xff] }
 0x18f   : > { %9893 = vst [vmem:[#allocation96_spill] sm:$0xff] %v7627_v2  ;;  %v2202_v62 = vmul.f32 %v3422_v33, %v9905_v44  ;;  %9906 = vst [vmem:[#allocation101_spill] sm:$0xff] %v7642_v8  ;;  %v9908_v4 = vld [vmem:[#allocation91_spill] sm:$0xff]  ;;  %v9909_v57 = vld [vmem:[#allocation92_spill] sm:$0xff]  ;;  %v2208_v44 = vmul.f32 %v3422_v33, %v9915_v5  ;;  %v2209_v11 = vmul.f32 %v3422_v33, %v9916_v19 }
 0x190   : > { %9907 = vst [vmem:[#allocation102_spill] sm:$0xff] %v7645_v49  ;;  %v2203_v46 = vmul.f32 %v3422_v33, %v9908_v4  ;;  %v2204_v18 = vmul.f32 %v3422_v33, %v9909_v57  ;;  %v9910_v59 = vld [vmem:[#allocation93_spill] sm:$0xff]  ;;  %v7652_v55 = vld [vmem:[%s3826_s7 + $0x1b4] sm:$0xff]  ;;  %v9914_v30 = vld [vmem:[#allocation98_spill] sm:$0xff]  ;;  %v2210_v2 = vmul.f32 %v3422_v33, %v9917_v37  ;;  %v2218_v5 = vmul.f32 %v3422_v33, %v7645_v49 }
 0x191   : > { %v2205_v16 = vmul.f32 %v3422_v33, %v9910_v59  ;;  %v9911_v20 = vld [vmem:[#allocation97_spill] sm:$0xff]  ;;  %9912 = vst [vmem:[#allocation103_spill] sm:$0xff] %v7652_v55  ;;  %v2207_v43 = vmul.f32 %v3422_v33, %v9914_v30  ;;  %v9918_v7 = vld [vmem:[#allocation34_spill] sm:$0xff]  ;;  %v9919_v14 = vld [vmem:[#allocation115_spill] sm:$0xff]  ;;  %v2217_v30 = vmul.f32 %v3422_v33, %v7642_v8 }
 0x192   : > { %v2206_v60 = vmul.f32 %v3422_v33, %v9911_v20  ;;  %v7655_v25 = vld [vmem:[%s3826_s7 + $0x1bc] sm:$0xff]  ;;  %v2211_v4 = vmul.f32 %v3422_v33, %v9918_v7  ;;  %v2212_v57 = vmul.f32 %v3422_v33, %v9919_v14  ;;  %v9922_v28 = vld [vmem:[#allocation118_spill] sm:$0xff]  ;;  %v9924_v29 = vld [vmem:[#allocation123_spill] sm:$0xff]  ;;  %v2221_v7 = vmul.f32 %v3422_v33, %v7652_v55 }
 0x193   : > { %9913 = vst [vmem:[#allocation22_spill] sm:$0xff] %v7655_v25  ;;  %v9920_v35 = vld [vmem:[#allocation116_spill] sm:$0xff]  ;;  %v9921_v58 = vld [vmem:[#allocation117_spill] sm:$0xff]  ;;  %v2215_v50 = vmul.f32 %v3422_v33, %v9922_v28  ;;  %v9923_v51 = vld [vmem:[#allocation122_spill] sm:$0xff]  ;;  %v2219_v19 = vmul.f32 %v3422_v33, %v9924_v29  ;;  %v2222_v14 = vmul.f32 %v3422_v33, %v7655_v25  ;;  %v7683_v28 = vadd.f32 %v2194_v56, %v7540_v53 }
 0x194   : > { %v2213_v59 = vmul.f32 %v3422_v33, %v9920_v35  ;;  %v2214_v20 = vmul.f32 %v3422_v33, %v9921_v58  ;;  %v2216_v36 = vmul.f32 %v3422_v33, %v9923_v51  ;;  %v9925_v21 = vld [vmem:[#allocation124_spill] sm:$0xff]  ;;  %v7674_v35 = vadd.f32 %v2191_v40, %v7531_v9  ;;  %v3445_v55 = vld [vmem:[%s3826_s7 + $0x168] sm:$0xff] }
 0x195   : > { %v2220_v37 = vmul.f32 %v3422_v33, %v9925_v21  ;;  %v7677_v58 = vadd.f32 %v2192_v23, %v7534_v1  ;;  %v7680_v51 = vadd.f32 %v2193_v0, %v7537_v63  ;;  %v7686_v21 = vadd.f32 %v2195_v45, %v7543_v39  ;;  %v3425_v33 = vld [vmem:[%s3826_s7 + $0x78] sm:$0xff]  ;;  %v3426_v23 = vld [vmem:[%s3826_s7 + $0x80] sm:$0xff]  ;;  %v3427_v0 = vld [vmem:[%s3826_s7 + $0x90] sm:$0xff] }
 0x196   : > { %v7689_v29 = vadd.f32 %v2196_v41, %v7546_v31  ;;  %v7692_v9 = vadd.f32 %v2197_v48, %v7549_v10  ;;  %v7695_v1 = vadd.f32 %v2198_v13, %v7552_v38  ;;  %v7698_v63 = vadd.f32 %v2199_v52, %v7555_v3  ;;  %v3428_v56 = vld [vmem:[%s3826_s7 + $0x98] sm:$0xff]  ;;  %v3431_v13 = vld [vmem:[%s3826_s7 + $0xc0] sm:$0xff] }
 0x197   : > { %v7701_v53 = vadd.f32 %v2200_v24, %v7558_v47  ;;  %v7704_v39 = vadd.f32 %v2201_v22, %v7561_v27  ;;  %v7707_v31 = vadd.f32 %v2202_v62, %v7564_v32  ;;  %v7710_v10 = vadd.f32 %v2203_v46, %v7567_v26  ;;  %v7724_v27 = vld [vmem:[%s8628_s1 + $0x14] ss:$0 sm:$0xff]  ;;  %v3423_v32 = vld [vmem:[%s3826_s7 + $0x60] sm:$0xff]  ;;  %v3424_v26 = vld [vmem:[%s3826_s7 + $0x68] sm:$0xff] }
 0x198   : > { %v7713_v38 = vadd.f32 %v2204_v18, %v7570_v15  ;;  %v7716_v3 = vadd.f32 %v2205_v16, %v7573_v54  ;;  %v7719_v47 = vadd.f32 %v2206_v60, %v7576_v12  ;;  %v7730_v15 = vadd.f32 %v2207_v43, %v7579_v34  ;;  %v9926_v34 = vld [vmem:[#allocation82_spill] sm:$0xff]  ;;  %v9931_v52 = vld [vmem:[#allocation85_spill] sm:$0xff]  ;;  %v9935_v62 = vld [vmem:[#allocation87_spill] sm:$0xff] }
 0x199   : > { %v7733_v54 = vadd.f32 %v2208_v44, %v7582_v42  ;;  %v7736_v12 = vadd.f32 %v2209_v11, %v7585_v17  ;;  %v7739_v40 = vadd.f32 %v2210_v2, %v7588_v61  ;;  %v7745_v45 = vadd.f32 %v2211_v4, %v7591_v6  ;;  %v9927_v42 = vld [vmem:[#allocation83_spill] sm:$0xff]  ;;  %v9929_v11 = vld [vmem:[#allocation84_spill] sm:$0xff]  ;;  %v3429_v61 = vld [vmem:[%s3826_s7 + $0xa8] sm:$0xff] }
 0x19a   : > { %v7748_v41 = vadd.f32 %v2212_v57, %v9926_v34  ;;  %v7751_v48 = vadd.f32 %v2213_v59, %v9927_v42  ;;  %v7754_v17 = vadd.f32 %v2214_v20, %v9929_v11  ;;  %v3430_v2 = vld [vmem:[%s3826_s7 + $0xb0] sm:$0xff]  ;;  %v7760_v6 = vadd.f32 %v2215_v50, %v9931_v52  ;;  %v9933_v24 = vld [vmem:[#allocation86_spill] sm:$0xff]  ;;  %v9937_v18 = vld [vmem:[#allocation88_spill] sm:$0xff] }
 0x19b   : > { %v7763_v22 = vadd.f32 %v2216_v36, %v9933_v24  ;;  %v7766_v46 = vadd.f32 %v2217_v30, %v9935_v62  ;;  %v7769_v16 = vadd.f32 %v2218_v5, %v9937_v18  ;;  %v3432_v60 = vld [vmem:[%s3826_s7 + $0xc8] sm:$0xff]  ;;  %v3433_v43 = vld [vmem:[%s3826_s7 + $0xd8] sm:$0xff]  ;;  %v3434_v44 = vld [vmem:[%s3826_s7 + $0xe0] sm:$0xff]  ;;  %v2293_v62 = vmul.f32 %v7724_v27, %v3423_v32 }
 0x19c   : > { %9928 = vst [vmem:[#allocation23_spill] sm:$0xff] %v7751_v48  ;;  %9930 = vst [vmem:[#allocation24_spill] sm:$0xff] %v7754_v17  ;;  %v9939_v4 = vld [vmem:[#allocation89_spill] sm:$0xff]  ;;  %v9941_v50 = vld [vmem:[#allocation94_spill] sm:$0xff]  ;;  %v2295_v18 = vmul.f32 %v7724_v27, %v3425_v33  ;;  %v2299_v25 = vmul.f32 %v7724_v27, %v3429_v61  ;;  %v2300_v32 = vmul.f32 %v7724_v27, %v3430_v2 }
 0x19d   : > { %9932 = vst [vmem:[#allocation25_spill] sm:$0xff] %v7760_v6  ;;  %9934 = vst [vmem:[#allocation26_spill] sm:$0xff] %v7763_v22  ;;  %v7775_v57 = vadd.f32 %v2219_v19, %v9939_v4  ;;  %v7778_v59 = vadd.f32 %v2220_v37, %v9941_v50  ;;  %v9943_v36 = vld [vmem:[#allocation95_spill] sm:$0xff]  ;;  %v9945_v30 = vld [vmem:[#allocation96_spill] sm:$0xff]  ;;  %v2294_v37 = vmul.f32 %v7724_v27, %v3424_v26 }
 0x19e   : > { %9936 = vst [vmem:[#allocation27_spill] sm:$0xff] %v7766_v46  ;;  %9938 = vst [vmem:[#allocation28_spill] sm:$0xff] %v7769_v16  ;;  %v7781_v20 = vadd.f32 %v2221_v7, %v9943_v36  ;;  %v7784_v34 = vadd.f32 %v2222_v14, %v9945_v30  ;;  %v3435_v5 = vld [vmem:[%s3826_s7 + $0xf0] sm:$0xff]  ;;  %v3436_v42 = vld [vmem:[%s3826_s7 + $0xf8] sm:$0xff]  ;;  %v2296_v7 = vmul.f32 %v7724_v27, %v3426_v23 }
 0x19f   : > { %9940 = vst [vmem:[#allocation29_spill] sm:$0xff] %v7775_v57  ;;  %9942 = vst [vmem:[#allocation30_spill] sm:$0xff] %v7778_v59  ;;  %v3437_v11 = vld [vmem:[%s3826_s7 + $0x108] sm:$0xff]  ;;  %v3438_v52 = vld [vmem:[%s3826_s7 + $0x110] sm:$0xff]  ;;  %v2297_v36 = vmul.f32 %v7724_v27, %v3427_v0  ;;  %v2298_v30 = vmul.f32 %v7724_v27, %v3428_v56  ;;  %v2301_v49 = vmul.f32 %v7724_v27, %v3431_v13 }
 0x1a0   : > { %9944 = vst [vmem:[#allocation31_spill] sm:$0xff] %v7781_v20  ;;  %9946 = vst [vmem:[#allocation32_spill] sm:$0xff] %v7784_v34  ;;  %v3439_v24 = vld [vmem:[%s3826_s7 + $0x120] sm:$0xff]  ;;  %v3440_v19 = vld [vmem:[%s3826_s7 + $0x128] sm:$0xff]  ;;  %v2302_v23 = vmul.f32 %v7724_v27, %v3432_v60  ;;  %v2303_v8 = vmul.f32 %v7724_v27, %v3433_v43  ;;  %v2304_v34 = vmul.f32 %v7724_v27, %v3434_v44 }
 0x1a1   : > { %v3441_v14 = vld [vmem:[%s3826_s7 + $0x138] sm:$0xff]  ;;  %v3442_v4 = vld [vmem:[%s3826_s7 + $0x140] sm:$0xff]  ;;  %v3443_v50 = vld [vmem:[%s3826_s7 + $0x150] sm:$0xff]  ;;  %v2305_v56 = vmul.f32 %v7724_v27, %v3435_v5  ;;  %v2306_v61 = vmul.f32 %v7724_v27, %v3436_v42  ;;  %v2307_v59 = vmul.f32 %v7724_v27, %v3437_v11  ;;  %v2308_v2 = vmul.f32 %v7724_v27, %v3438_v52 }
 0x1a2   : > { %v3444_v26 = vld [vmem:[%s3826_s7 + $0x158] sm:$0xff]  ;;  %v3446_v33 = vld [vmem:[%s3826_s7 + $0x170] sm:$0xff]  ;;  %v3450_v20 = vld [vmem:[%s3826_s7 + $0x1a0] sm:$0xff]  ;;  %v2309_v13 = vmul.f32 %v7724_v27, %v3439_v24  ;;  %v2310_v60 = vmul.f32 %v7724_v27, %v3440_v19  ;;  %v2311_v43 = vmul.f32 %v7724_v27, %v3441_v14  ;;  %v2312_v44 = vmul.f32 %v7724_v27, %v3442_v4 }
 0x1a3   : > { %v3449_v0 = vld [vmem:[%s3826_s7 + $0x198] sm:$0xff]  ;;  %v3453_v57 = vld [vmem:[%s3826_s7 + $0x1c8] sm:$0xff]  ;;  %v3454_v16 = vld [vmem:[%s3826_s7 + $0x1d0] sm:$0xff]  ;;  %v2313_v46 = vmul.f32 %v7724_v27, %v3443_v50  ;;  %v2314_v5 = vmul.f32 %v7724_v27, %v3444_v26  ;;  %v2315_v42 = vmul.f32 %v7724_v27, %v3445_v55  ;;  %v2316_v11 = vmul.f32 %v7724_v27, %v3446_v33 }
 0x1a4   : > { %v9947_v22 = vld [vmem:[#allocation53_spill] sm:$0xff]  ;;  %v9948_v6 = vld [vmem:[#allocation54_spill] sm:$0xff]  ;;  %v2319_v19 = vmul.f32 %v7724_v27, %v3449_v0  ;;  %v2320_v14 = vmul.f32 %v7724_v27, %v3450_v20  ;;  %v2323_v55 = vmul.f32 %v7724_v27, %v3453_v57  ;;  %v2324_v33 = vmul.f32 %v7724_v27, %v3454_v16  ;;  %v3460_v16 = vld [vmem:[%s3826_s7 + $0x91] sm:$0xff] }
 0x1a5   : > { %v2317_v52 = vmul.f32 %v7724_v27, %v9947_v22  ;;  %v2318_v24 = vmul.f32 %v7724_v27, %v9948_v6  ;;  %v9949_v17 = vld [vmem:[#allocation5_spill] sm:$0xff]  ;;  %v7839_v48 = vadd.f32 %v2293_v62, %v7674_v35  ;;  %v7842_v22 = vadd.f32 %v2294_v37, %v7677_v58  ;;  %v3463_v37 = vld [vmem:[%s3826_s7 + $0xb1] sm:$0xff]  ;;  %v3465_v0 = vld [vmem:[%s3826_s7 + $0xc9] sm:$0xff] }
 0x1a6   : > { %v2321_v4 = vmul.f32 %v7724_v27, %v9949_v17  ;;  %v9950_v50 = vld [vmem:[#allocation65_spill] sm:$0xff]  ;;  %v7845_v6 = vadd.f32 %v2295_v18, %v7680_v51  ;;  %v7848_v17 = vadd.f32 %v2296_v7, %v7683_v28  ;;  %v7851_v20 = vadd.f32 %v2297_v36, %v7686_v21  ;;  %v9959_v36 = vld [vmem:[#allocation27_spill] sm:$0xff] }
 0x1a7   : > { %v2322_v26 = vmul.f32 %v7724_v27, %v9950_v50  ;;  %v7854_v27 = vadd.f32 %v2298_v30, %v7689_v29  ;;  %v7857_v35 = vadd.f32 %v2299_v25, %v7692_v9  ;;  %v7860_v58 = vadd.f32 %v2300_v32, %v7695_v1  ;;  %v3461_v57 = vld [vmem:[%s3826_s7 + $0x99] sm:$0xff]  ;;  %v3464_v18 = vld [vmem:[%s3826_s7 + $0xc1] sm:$0xff] }
 0x1a8   : > { %v7863_v51 = vadd.f32 %v2301_v49, %v7698_v63  ;;  %v7866_v28 = vadd.f32 %v2302_v23, %v7701_v53  ;;  %v7869_v21 = vadd.f32 %v2303_v8, %v7704_v39  ;;  %v7872_v29 = vadd.f32 %v2304_v34, %v7707_v31  ;;  %v7889_v8 = vld [vmem:[%s8628_s1 + $0x15] ss:$0 sm:$0xff]  ;;  %v3456_v63 = vld [vmem:[%s3826_s7 + $0x61] sm:$0xff]  ;;  %v3457_v53 = vld [vmem:[%s3826_s7 + $0x69] sm:$0xff] }
 0x1a9   : > { %v7875_v25 = vadd.f32 %v2305_v56, %v7710_v10  ;;  %v7878_v9 = vadd.f32 %v2306_v61, %v7713_v38  ;;  %v7881_v49 = vadd.f32 %v2307_v59, %v7716_v3  ;;  %v7884_v1 = vadd.f32 %v2308_v2, %v7719_v47  ;;  %v3458_v39 = vld [vmem:[%s3826_s7 + $0x79] sm:$0xff]  ;;  %v3459_v47 = vld [vmem:[%s3826_s7 + $0x81] sm:$0xff] }
 0x1aa   : > { %v7895_v31 = vadd.f32 %v2309_v13, %v7730_v15  ;;  %v7898_v10 = vadd.f32 %v2310_v60, %v7733_v54  ;;  %v7901_v38 = vadd.f32 %v2311_v43, %v7736_v12  ;;  %v7904_v3 = vadd.f32 %v2312_v44, %v7739_v40  ;;  %v9951_v54 = vld [vmem:[#allocation23_spill] sm:$0xff]  ;;  %v9953_v12 = vld [vmem:[#allocation24_spill] sm:$0xff]  ;;  %v9955_v7 = vld [vmem:[#allocation25_spill] sm:$0xff] }
 0x1ab   : > { %v7910_v59 = vadd.f32 %v2313_v46, %v7745_v45  ;;  %v7913_v15 = vadd.f32 %v2314_v5, %v7748_v41  ;;  %v7916_v34 = vadd.f32 %v2315_v42, %v9951_v54  ;;  %v7919_v62 = vadd.f32 %v2316_v11, %v9953_v12  ;;  %v3462_v40 = vld [vmem:[%s3826_s7 + $0xa9] sm:$0xff]  ;;  %v9961_v32 = vld [vmem:[#allocation28_spill] sm:$0xff]  ;;  %v3467_v61 = vld [vmem:[%s3826_s7 + $0xe1] sm:$0xff] }
 0x1ac   : > { %v7925_v45 = vadd.f32 %v2317_v52, %v9955_v7  ;;  %v9957_v46 = vld [vmem:[#allocation26_spill] sm:$0xff]  ;;  %v7931_v30 = vadd.f32 %v2319_v19, %v9959_v36  ;;  %v7934_v23 = vadd.f32 %v2320_v14, %v9961_v32  ;;  %v3466_v56 = vld [vmem:[%s3826_s7 + $0xd9] sm:$0xff]  ;;  %v9967_v44 = vld [vmem:[#allocation31_spill] sm:$0xff]  ;;  %v2394_v54 = vmul.f32 %v7889_v8, %v3456_v63 }
 0x1ad   : > { %9952 = vst [vmem:[#allocation104_spill] sm:$0xff] %v7916_v34  ;;  %9954 = vst [vmem:[#allocation105_spill] sm:$0xff] %v7919_v62  ;;  %v7928_v41 = vadd.f32 %v2318_v24, %v9957_v46  ;;  %v9963_v2 = vld [vmem:[#allocation29_spill] sm:$0xff]  ;;  %v9965_v60 = vld [vmem:[#allocation30_spill] sm:$0xff]  ;;  %v7946_v5 = vadd.f32 %v2323_v55, %v9967_v44  ;;  %v2396_v12 = vmul.f32 %v7889_v8, %v3458_v39 }
 0x1ae   : > { %9956 = vst [vmem:[#allocation106_spill] sm:$0xff] %v7925_v45  ;;  %9960 = vst [vmem:[#allocation67_spill] sm:$0xff] %v7931_v30  ;;  %v7940_v13 = vadd.f32 %v2321_v4, %v9963_v2  ;;  %v7943_v43 = vadd.f32 %v2322_v26, %v9965_v60  ;;  %v9969_v42 = vld [vmem:[#allocation32_spill] sm:$0xff]  ;;  %v3470_v19 = vld [vmem:[%s3826_s7 + $0x109] sm:$0xff]  ;;  %v2395_v26 = vmul.f32 %v7889_v8, %v3457_v53 }
 0x1af   : > { %9958 = vst [vmem:[#allocation66_spill] sm:$0xff] %v7928_v41  ;;  %9962 = vst [vmem:[#allocation7_spill] sm:$0xff] %v7934_v23  ;;  %v7949_v11 = vadd.f32 %v2324_v33, %v9969_v42  ;;  %v3468_v52 = vld [vmem:[%s3826_s7 + $0xf1] sm:$0xff]  ;;  %v3469_v24 = vld [vmem:[%s3826_s7 + $0xf9] sm:$0xff]  ;;  %v2397_v55 = vmul.f32 %v7889_v8, %v3459_v47  ;;  %v2398_v36 = vmul.f32 %v7889_v8, %v3460_v16 }
 0x1b0   : > { %9964 = vst [vmem:[#allocation9_spill] sm:$0xff] %v7940_v13  ;;  %9966 = vst [vmem:[#allocation20_spill] sm:$0xff] %v7943_v43  ;;  %v3471_v14 = vld [vmem:[%s3826_s7 + $0x111] sm:$0xff]  ;;  %v3472_v50 = vld [vmem:[%s3826_s7 + $0x121] sm:$0xff]  ;;  %v2399_v32 = vmul.f32 %v7889_v8, %v3461_v57  ;;  %v2400_v2 = vmul.f32 %v7889_v8, %v3462_v40  ;;  %v2401_v63 = vmul.f32 %v7889_v8, %v3463_v37 }
 0x1b1   : > { %9968 = vst [vmem:[#allocation21_spill] sm:$0xff] %v7946_v5  ;;  %9970 = vst [vmem:[#allocation57_spill] sm:$0xff] %v7949_v11  ;;  %v3473_v4 = vld [vmem:[%s3826_s7 + $0x129] sm:$0xff]  ;;  %v3474_v33 = vld [vmem:[%s3826_s7 + $0x139] sm:$0xff]  ;;  %v2402_v44 = vmul.f32 %v7889_v8, %v3464_v18  ;;  %v2403_v47 = vmul.f32 %v7889_v8, %v3465_v0  ;;  %v2404_v42 = vmul.f32 %v7889_v8, %v3466_v56 }
 0x1b2   : > { %v3475_v7 = vld [vmem:[%s3826_s7 + $0x141] sm:$0xff]  ;;  %v3476_v46 = vld [vmem:[%s3826_s7 + $0x151] sm:$0xff]  ;;  %v3477_v53 = vld [vmem:[%s3826_s7 + $0x159] sm:$0xff]  ;;  %v2405_v11 = vmul.f32 %v7889_v8, %v3467_v61  ;;  %v2406_v57 = vmul.f32 %v7889_v8, %v3468_v52  ;;  %v2407_v40 = vmul.f32 %v7889_v8, %v3469_v24  ;;  %v2408_v43 = vmul.f32 %v7889_v8, %v3470_v19 }
 0x1b3   : > { %v3478_v60 = vld [vmem:[%s3826_s7 + $0x169] sm:$0xff]  ;;  %v3479_v39 = vld [vmem:[%s3826_s7 + $0x171] sm:$0xff]  ;;  %v3482_v16 = vld [vmem:[%s3826_s7 + $0x199] sm:$0xff]  ;;  %v2409_v37 = vmul.f32 %v7889_v8, %v3471_v14  ;;  %v2410_v18 = vmul.f32 %v7889_v8, %v3472_v50  ;;  %v2411_v0 = vmul.f32 %v7889_v8, %v3473_v4  ;;  %v2412_v56 = vmul.f32 %v7889_v8, %v3474_v33 }
 0x1b4   : > { %v3483_v5 = vld [vmem:[%s3826_s7 + $0x1a1] sm:$0xff]  ;;  %v3486_v13 = vld [vmem:[%s3826_s7 + $0x1c9] sm:$0xff]  ;;  %v3487_v23 = vld [vmem:[%s3826_s7 + $0x1d1] sm:$0xff]  ;;  %v2413_v61 = vmul.f32 %v7889_v8, %v3475_v7  ;;  %v2414_v30 = vmul.f32 %v7889_v8, %v3476_v46  ;;  %v2415_v52 = vmul.f32 %v7889_v8, %v3477_v53  ;;  %v2416_v24 = vmul.f32 %v7889_v8, %v3478_v60 }
 0x1b5   : > { %v2417_v19 = vmul.f32 %v7889_v8, %v3479_v39  ;;  %v9971_v41 = vld [vmem:[#allocation62_spill] sm:$0xff]  ;;  %v9972_v45 = vld [vmem:[#allocation63_spill] sm:$0xff]  ;;  %v2420_v4 = vmul.f32 %v7889_v8, %v3482_v16  ;;  %v2421_v33 = vmul.f32 %v7889_v8, %v3483_v5  ;;  %v9973_v62 = vld [vmem:[#allocation64_spill] sm:$0xff]  ;;  %v2424_v60 = vmul.f32 %v7889_v8, %v3486_v13 }
 0x1b6   : > { %v2418_v14 = vmul.f32 %v7889_v8, %v9971_v41  ;;  %v2419_v50 = vmul.f32 %v7889_v8, %v9972_v45  ;;  %v2422_v7 = vmul.f32 %v7889_v8, %v9973_v62  ;;  %v9974_v46 = vld [vmem:[#allocation69_spill] sm:$0xff]  ;;  %v2425_v39 = vmul.f32 %v7889_v8, %v3487_v23  ;;  %v3498_v16 = vld [vmem:[%s3826_s7 + $0xca] sm:$0xff] }
 0x1b7   : > { %v2423_v53 = vmul.f32 %v7889_v8, %v9974_v46  ;;  %v8004_v34 = vadd.f32 %v2394_v54, %v7839_v48  ;;  %v8007_v41 = vadd.f32 %v2395_v26, %v7842_v22  ;;  %v8010_v45 = vadd.f32 %v2396_v12, %v7845_v6  ;;  %v3491_v23 = vld [vmem:[%s3826_s7 + $0x7a] sm:$0xff]  ;;  %v3505_v46 = vld [vmem:[%s3826_s7 + $0x122] sm:$0xff] }
 0x1b8   : > { %v8013_v62 = vadd.f32 %v2397_v55, %v7848_v17  ;;  %v8016_v5 = vadd.f32 %v2398_v36, %v7851_v20  ;;  %v8019_v8 = vadd.f32 %v2399_v32, %v7854_v27  ;;  %v8022_v48 = vadd.f32 %v2400_v2, %v7857_v35  ;;  %v3494_v54 = vld [vmem:[%s3826_s7 + $0x9a] sm:$0xff]  ;;  %v3496_v36 = vld [vmem:[%s3826_s7 + $0xb2] sm:$0xff]  ;;  %v3497_v32 = vld [vmem:[%s3826_s7 + $0xc2] sm:$0xff] }
 0x1b9   : > { %v8025_v22 = vadd.f32 %v2401_v63, %v7860_v58  ;;  %v8028_v6 = vadd.f32 %v2402_v44, %v7863_v51  ;;  %v8031_v17 = vadd.f32 %v2403_v47, %v7866_v28  ;;  %v8034_v20 = vadd.f32 %v2404_v42, %v7869_v21  ;;  %v8054_v21 = vld [vmem:[%s8628_s1 + $0x16] ss:$0 sm:$0xff]  ;;  %v9979_v2 = vld [vmem:[#allocation106_spill] sm:$0xff] }
 0x1ba   : > { %v8037_v27 = vadd.f32 %v2405_v11, %v7872_v29  ;;  %v8040_v35 = vadd.f32 %v2406_v57, %v7875_v25  ;;  %v8043_v58 = vadd.f32 %v2407_v40, %v7878_v9  ;;  %v8046_v51 = vadd.f32 %v2408_v43, %v7881_v49  ;;  %v3489_v29 = vld [vmem:[%s3826_s7 + $0x62] sm:$0xff]  ;;  %v3490_v25 = vld [vmem:[%s3826_s7 + $0x6a] sm:$0xff]  ;;  %v3493_v11 = vld [vmem:[%s3826_s7 + $0x92] sm:$0xff] }
 0x1bb   : > { %v8049_v28 = vadd.f32 %v2409_v37, %v7884_v1  ;;  %v8060_v9 = vadd.f32 %v2410_v18, %v7895_v31  ;;  %v8063_v49 = vadd.f32 %v2411_v0, %v7898_v10  ;;  %v8066_v1 = vadd.f32 %v2412_v56, %v7901_v38  ;;  %v3492_v43 = vld [vmem:[%s3826_s7 + $0x82] sm:$0xff]  ;;  %v9975_v10 = vld [vmem:[#allocation104_spill] sm:$0xff]  ;;  %v9983_v63 = vld [vmem:[#allocation67_spill] sm:$0xff] }
 0x1bc   : > { %v8069_v13 = vadd.f32 %v2413_v61, %v7904_v3  ;;  %v8075_v26 = vadd.f32 %v2414_v30, %v7910_v59  ;;  %v8078_v31 = vadd.f32 %v2415_v52, %v7913_v15  ;;  %v8081_v12 = vadd.f32 %v2416_v24, %v9975_v10  ;;  %v9977_v38 = vld [vmem:[#allocation105_spill] sm:$0xff]  ;;  %v3495_v3 = vld [vmem:[%s3826_s7 + $0xaa] sm:$0xff]  ;;  %v9989_v0 = vld [vmem:[#allocation20_spill] sm:$0xff] }
 0x1bd   : > { %v8084_v55 = vadd.f32 %v2417_v19, %v9977_v38  ;;  %v8090_v59 = vadd.f32 %v2418_v14, %v9979_v2  ;;  %v9981_v30 = vld [vmem:[#allocation66_spill] sm:$0xff]  ;;  %v8096_v44 = vadd.f32 %v2420_v4, %v9983_v63  ;;  %v9985_v47 = vld [vmem:[#allocation7_spill] sm:$0xff]  ;;  %v3499_v57 = vld [vmem:[%s3826_s7 + $0xda] sm:$0xff]  ;;  %v8108_v56 = vadd.f32 %v2423_v53, %v9989_v0 }
 0x1be   : > { %9976 = vst [vmem:[#allocation58_spill] sm:$0xff] %v8081_v12  ;;  %v8093_v15 = vadd.f32 %v2419_v50, %v9981_v30  ;;  %v8099_v42 = vadd.f32 %v2421_v33, %v9985_v47  ;;  %v3500_v40 = vld [vmem:[%s3826_s7 + $0xe2] sm:$0xff]  ;;  %v3501_v14 = vld [vmem:[%s3826_s7 + $0xf2] sm:$0xff]  ;;  %v3502_v50 = vld [vmem:[%s3826_s7 + $0xfa] sm:$0xff]  ;;  %v2495_v10 = vmul.f32 %v8054_v21, %v3489_v29  ;;  %v2496_v53 = vmul.f32 %v8054_v21, %v3490_v25 }
 0x1bf   : > { %9978 = vst [vmem:[#allocation59_spill] sm:$0xff] %v8084_v55  ;;  %9980 = vst [vmem:[#allocation60_spill] sm:$0xff] %v8090_v59  ;;  %v9987_v37 = vld [vmem:[#allocation9_spill] sm:$0xff]  ;;  %v3503_v4 = vld [vmem:[%s3826_s7 + $0x10a] sm:$0xff]  ;;  %v2497_v38 = vmul.f32 %v8054_v21, %v3491_v23  ;;  %v2499_v63 = vmul.f32 %v8054_v21, %v3493_v11  ;;  %v2500_v47 = vmul.f32 %v8054_v21, %v3494_v54 }
 0x1c0   : > { %9982 = vst [vmem:[#allocation61_spill] sm:$0xff] %v8093_v15  ;;  %9984 = vst [vmem:[#allocation107_spill] sm:$0xff] %v8096_v44  ;;  %v8105_v18 = vadd.f32 %v2422_v7, %v9987_v37  ;;  %v9991_v61 = vld [vmem:[#allocation21_spill] sm:$0xff]  ;;  %v3504_v33 = vld [vmem:[%s3826_s7 + $0x112] sm:$0xff]  ;;  %v2501_v37 = vmul.f32 %v8054_v21, %v3495_v3  ;;  %v2502_v29 = vmul.f32 %v8054_v21, %v3496_v36 }
 0x1c1   : > { %9986 = vst [vmem:[#allocation108_spill] sm:$0xff] %v8099_v42  ;;  %9990 = vst [vmem:[#allocation110_spill] sm:$0xff] %v8108_v56  ;;  %v8111_v52 = vadd.f32 %v2424_v60, %v9991_v61  ;;  %v9993_v24 = vld [vmem:[#allocation57_spill] sm:$0xff]  ;;  %v3506_v7 = vld [vmem:[%s3826_s7 + $0x12a] sm:$0xff]  ;;  %v2498_v60 = vmul.f32 %v8054_v21, %v3492_v43  ;;  %v2503_v61 = vmul.f32 %v8054_v21, %v3497_v32 }
 0x1c2   : > { %9988 = vst [vmem:[#allocation109_spill] sm:$0xff] %v8105_v18  ;;  %v8114_v19 = vadd.f32 %v2425_v39, %v9993_v24  ;;  %v3507_v39 = vld [vmem:[%s3826_s7 + $0x13a] sm:$0xff]  ;;  %v3508_v2 = vld [vmem:[%s3826_s7 + $0x142] sm:$0xff]  ;;  %v3509_v30 = vld [vmem:[%s3826_s7 + $0x152] sm:$0xff]  ;;  %v2504_v43 = vmul.f32 %v8054_v21, %v3498_v16  ;;  %v2505_v24 = vmul.f32 %v8054_v21, %v3499_v57  ;;  %v2507_v54 = vmul.f32 %v8054_v21, %v3501_v14 }
 0x1c3   : > { %9992 = vst [vmem:[#allocation111_spill] sm:$0xff] %v8111_v52  ;;  %v3510_v25 = vld [vmem:[%s3826_s7 + $0x15a] sm:$0xff]  ;;  %v3511_v0 = vld [vmem:[%s3826_s7 + $0x16a] sm:$0xff]  ;;  %v3512_v23 = vld [vmem:[%s3826_s7 + $0x172] sm:$0xff]  ;;  %v2508_v3 = vmul.f32 %v8054_v21, %v3502_v50  ;;  %v2509_v56 = vmul.f32 %v8054_v21, %v3503_v4  ;;  %v2510_v36 = vmul.f32 %v8054_v21, %v3504_v33  ;;  %v2511_v32 = vmul.f32 %v8054_v21, %v3505_v46 }
 0x1c4   : > { %9994 = vst [vmem:[#allocation112_spill] sm:$0xff] %v8114_v19  ;;  %v2506_v19 = vmul.f32 %v8054_v21, %v3500_v40  ;;  %v3515_v11 = vld [vmem:[%s3826_s7 + $0x19a] sm:$0xff]  ;;  %v3516_v52 = vld [vmem:[%s3826_s7 + $0x1a2] sm:$0xff]  ;;  %v3519_v18 = vld [vmem:[%s3826_s7 + $0x1ca] sm:$0xff]  ;;  %v2512_v16 = vmul.f32 %v8054_v21, %v3506_v7  ;;  %v2513_v57 = vmul.f32 %v8054_v21, %v3507_v39  ;;  %v2514_v40 = vmul.f32 %v8054_v21, %v3508_v2 }
 0x1c5   : > { %v3520_v42 = vld [vmem:[%s3826_s7 + $0x1d2] sm:$0xff]  ;;  %v2515_v44 = vmul.f32 %v8054_v21, %v3509_v30  ;;  %v2516_v14 = vmul.f32 %v8054_v21, %v3510_v25  ;;  %v2517_v50 = vmul.f32 %v8054_v21, %v3511_v0  ;;  %v2518_v4 = vmul.f32 %v8054_v21, %v3512_v23  ;;  %v9995_v15 = vld [vmem:[#allocation74_spill] sm:$0xff]  ;;  %v9998_v30 = vld [vmem:[#allocation77_spill] sm:$0xff] }
 0x1c6   : > { %v2519_v33 = vmul.f32 %v8054_v21, %v9995_v15  ;;  %v9996_v59 = vld [vmem:[#allocation75_spill] sm:$0xff]  ;;  %v2521_v7 = vmul.f32 %v8054_v21, %v3515_v11  ;;  %v2522_v39 = vmul.f32 %v8054_v21, %v3516_v52  ;;  %v9997_v55 = vld [vmem:[#allocation76_spill] sm:$0xff]  ;;  %v2524_v25 = vmul.f32 %v8054_v21, %v9998_v30  ;;  %v3538_v30 = vld [vmem:[%s3826_s7 + $0x123] sm:$0xff] }
 0x1c7   : > { %v2520_v46 = vmul.f32 %v8054_v21, %v9996_v59  ;;  %v2523_v2 = vmul.f32 %v8054_v21, %v9997_v55  ;;  %v2525_v0 = vmul.f32 %v8054_v21, %v3519_v18  ;;  %v2526_v23 = vmul.f32 %v8054_v21, %v3520_v42  ;;  %v3524_v42 = vld [vmem:[%s3826_s7 + $0x7b] sm:$0xff]  ;;  %v3531_v11 = vld [vmem:[%s3826_s7 + $0xcb] sm:$0xff] }
 0x1c8   : > { %v8169_v12 = vadd.f32 %v2495_v10, %v8004_v34  ;;  %v8172_v15 = vadd.f32 %v2496_v53, %v8007_v41  ;;  %v8175_v59 = vadd.f32 %v2497_v38, %v8010_v45  ;;  %v8178_v55 = vadd.f32 %v2498_v60, %v8013_v62  ;;  %v3527_v10 = vld [vmem:[%s3826_s7 + $0x9b] sm:$0xff] }
 0x1c9   : > { %v8181_v52 = vadd.f32 %v2499_v63, %v8016_v5  ;;  %v8184_v21 = vadd.f32 %v2500_v47, %v8019_v8  ;;  %v8187_v34 = vadd.f32 %v2501_v37, %v8022_v48  ;;  %v8190_v41 = vadd.f32 %v2502_v29, %v8025_v22  ;;  %v3529_v63 = vld [vmem:[%s3826_s7 + $0xb3] sm:$0xff]  ;;  %v3530_v47 = vld [vmem:[%s3826_s7 + $0xc3] sm:$0xff] }
 0x1ca   : > { %v8193_v45 = vadd.f32 %v2503_v61, %v8028_v6  ;;  %v8196_v62 = vadd.f32 %v2504_v43, %v8031_v17  ;;  %v8199_v5 = vadd.f32 %v2505_v24, %v8034_v20  ;;  %v8202_v8 = vadd.f32 %v2506_v19, %v8037_v27  ;;  %v8219_v20 = vld [vmem:[%s8628_s1 + $0x17] ss:$0 sm:$0xff]  ;;  %v3522_v27 = vld [vmem:[%s3826_s7 + $0x63] sm:$0xff]  ;;  %v10003_v37 = vld [vmem:[#allocation60_spill] sm:$0xff] }
 0x1cb   : > { %v8205_v48 = vadd.f32 %v2507_v54, %v8040_v35  ;;  %v8208_v22 = vadd.f32 %v2508_v3, %v8043_v58  ;;  %v8211_v6 = vadd.f32 %v2509_v56, %v8046_v51  ;;  %v8214_v17 = vadd.f32 %v2510_v36, %v8049_v28  ;;  %v3523_v35 = vld [vmem:[%s3826_s7 + $0x6b] sm:$0xff]  ;;  %v3525_v56 = vld [vmem:[%s3826_s7 + $0x83] sm:$0xff]  ;;  %v3526_v19 = vld [vmem:[%s3826_s7 + $0x93] sm:$0xff] }
 0x1cc   : > { %v8225_v58 = vadd.f32 %v2511_v32, %v8060_v9  ;;  %v8228_v51 = vadd.f32 %v2512_v16, %v8063_v49  ;;  %v8231_v28 = vadd.f32 %v2513_v57, %v8066_v1  ;;  %v8234_v18 = vadd.f32 %v2514_v40, %v8069_v13  ;;  %v9999_v49 = vld [vmem:[#allocation58_spill] sm:$0xff]  ;;  %v10001_v1 = vld [vmem:[#allocation59_spill] sm:$0xff]  ;;  %v10009_v43 = vld [vmem:[#allocation108_spill] sm:$0xff] }
 0x1cd   : > { %v8240_v53 = vadd.f32 %v2515_v44, %v8075_v26  ;;  %v8243_v9 = vadd.f32 %v2516_v14, %v8078_v31  ;;  %v8246_v38 = vadd.f32 %v2517_v50, %v9999_v49  ;;  %v8249_v60 = vadd.f32 %v2518_v4, %v10001_v1  ;;  %v3528_v13 = vld [vmem:[%s3826_s7 + $0xab] sm:$0xff]  ;;  %v10005_v44 = vld [vmem:[#allocation61_spill] sm:$0xff]  ;;  %v10017_v50 = vld [vmem:[#allocation112_spill] sm:$0xff] }
 0x1ce   : > { %v8255_v26 = vadd.f32 %v2519_v33, %v10003_v37  ;;  %v8258_v31 = vadd.f32 %v2520_v46, %v10005_v44  ;;  %v10007_v29 = vld [vmem:[#allocation107_spill] sm:$0xff]  ;;  %v8264_v24 = vadd.f32 %v2522_v39, %v10009_v43  ;;  %v3532_v54 = vld [vmem:[%s3826_s7 + $0xdb] sm:$0xff]  ;;  %v3533_v3 = vld [vmem:[%s3826_s7 + $0xe3] sm:$0xff]  ;;  %v8279_v4 = vadd.f32 %v2526_v23, %v10017_v50 }
 0x1cf   : > { %10000 = vst [vmem:[#allocation113_spill] sm:$0xff] %v8246_v38  ;;  %10002 = vst [vmem:[#allocation114_spill] sm:$0xff] %v8249_v60  ;;  %v8261_v61 = vadd.f32 %v2521_v7, %v10007_v29  ;;  %v10011_v36 = vld [vmem:[#allocation109_spill] sm:$0xff]  ;;  %v10013_v16 = vld [vmem:[#allocation110_spill] sm:$0xff]  ;;  %v2596_v49 = vmul.f32 %v8219_v20, %v3522_v27  ;;  %v2598_v1 = vmul.f32 %v8219_v20, %v3524_v42 }
 0x1d0   : > { %10004 = vst [vmem:[#allocation119_spill] sm:$0xff] %v8255_v26  ;;  %10006 = vst [vmem:[#allocation120_spill] sm:$0xff] %v8258_v31  ;;  %v8270_v32 = vadd.f32 %v2523_v2, %v10011_v36  ;;  %v8273_v57 = vadd.f32 %v2524_v25, %v10013_v16  ;;  %v10015_v40 = vld [vmem:[#allocation111_spill] sm:$0xff]  ;;  %v3535_v46 = vld [vmem:[%s3826_s7 + $0xfb] sm:$0xff]  ;;  %v2597_v25 = vmul.f32 %v8219_v20, %v3523_v35 }
 0x1d1   : > { %10008 = vst [vmem:[#allocation121_spill] sm:$0xff] %v8261_v61  ;;  %10010 = vst [vmem:[#allocation126_spill] sm:$0xff] %v8264_v24  ;;  %v8276_v14 = vadd.f32 %v2525_v0, %v10015_v40  ;;  %v3534_v33 = vld [vmem:[%s3826_s7 + $0xf3] sm:$0xff]  ;;  %v3536_v7 = vld [vmem:[%s3826_s7 + $0x10b] sm:$0xff]  ;;  %v2599_v0 = vmul.f32 %v8219_v20, %v3525_v56  ;;  %v2600_v29 = vmul.f32 %v8219_v20, %v3526_v19 }
 0x1d2   : > { %10012 = vst [vmem:[#allocation127_spill] sm:$0xff] %v8270_v32  ;;  %10014 = vst [vmem:[#allocation128_spill] sm:$0xff] %v8273_v57  ;;  %v3537_v39 = vld [vmem:[%s3826_s7 + $0x113] sm:$0xff]  ;;  %v3539_v2 = vld [vmem:[%s3826_s7 + $0x12b] sm:$0xff]  ;;  %v2601_v43 = vmul.f32 %v8219_v20, %v3527_v10  ;;  %v2602_v36 = vmul.f32 %v8219_v20, %v3528_v13  ;;  %v2603_v27 = vmul.f32 %v8219_v20, %v3529_v63 }
 0x1d3   : > { %10016 = vst [vmem:[#allocation129_spill] sm:$0xff] %v8276_v14  ;;  %10018 = vst [vmem:[#allocation130_spill] sm:$0xff] %v8279_v4  ;;  %v3540_v23 = vld [vmem:[%s3826_s7 + $0x13b] sm:$0xff]  ;;  %v3541_v37 = vld [vmem:[%s3826_s7 + $0x143] sm:$0xff]  ;;  %v2604_v40 = vmul.f32 %v8219_v20, %v3530_v47  ;;  %v2605_v56 = vmul.f32 %v8219_v20, %v3531_v11  ;;  %v2606_v50 = vmul.f32 %v8219_v20, %v3532_v54 }
 0x1d4   : > { %v3542_v44 = vld [vmem:[%s3826_s7 + $0x153] sm:$0xff]  ;;  %v3543_v35 = vld [vmem:[%s3826_s7 + $0x15b] sm:$0xff]  ;;  %v3544_v16 = vld [vmem:[%s3826_s7 + $0x16b] sm:$0xff]  ;;  %v2607_v4 = vmul.f32 %v8219_v20, %v3533_v3  ;;  %v2608_v10 = vmul.f32 %v8219_v20, %v3534_v33  ;;  %v2609_v13 = vmul.f32 %v8219_v20, %v3535_v46  ;;  %v2610_v57 = vmul.f32 %v8219_v20, %v3536_v7 }
 0x1d5   : > { %v3545_v42 = vld [vmem:[%s3826_s7 + $0x173] sm:$0xff]  ;;  %v3548_v19 = vld [vmem:[%s3826_s7 + $0x19b] sm:$0xff]  ;;  %v3549_v14 = vld [vmem:[%s3826_s7 + $0x1a3] sm:$0xff]  ;;  %v2611_v63 = vmul.f32 %v8219_v20, %v3537_v39  ;;  %v2612_v47 = vmul.f32 %v8219_v20, %v3538_v30  ;;  %v2613_v11 = vmul.f32 %v8219_v20, %v3539_v2  ;;  %v2614_v54 = vmul.f32 %v8219_v20, %v3540_v23 }
 0x1d6   : > { %v3552_v32 = vld [vmem:[%s3826_s7 + $0x1cb] sm:$0xff]  ;;  %v3553_v24 = vld [vmem:[%s3826_s7 + $0x1d3] sm:$0xff]  ;;  %v2615_v3 = vmul.f32 %v8219_v20, %v3541_v37  ;;  %v2616_v61 = vmul.f32 %v8219_v20, %v3542_v44  ;;  %v2617_v33 = vmul.f32 %v8219_v20, %v3543_v35  ;;  %v2618_v46 = vmul.f32 %v8219_v20, %v3544_v16  ;;  %v10021_v60 = vld [vmem:[#allocation149_spill] sm:$0xff] }
 0x1d7   : > { %v2619_v7 = vmul.f32 %v8219_v20, %v3545_v42  ;;  %v10019_v31 = vld [vmem:[#allocation147_spill] sm:$0xff]  ;;  %v10020_v26 = vld [vmem:[#allocation148_spill] sm:$0xff]  ;;  %v2622_v2 = vmul.f32 %v8219_v20, %v3548_v19  ;;  %v2623_v23 = vmul.f32 %v8219_v20, %v3549_v14  ;;  %v2624_v37 = vmul.f32 %v8219_v20, %v10021_v60  ;;  %v10022_v44 = vld [vmem:[#allocation150_spill] sm:$0xff] }
 0x1d8   : > { %v2620_v39 = vmul.f32 %v8219_v20, %v10019_v31  ;;  %v2621_v30 = vmul.f32 %v8219_v20, %v10020_v26  ;;  %v2625_v35 = vmul.f32 %v8219_v20, %v10022_v44  ;;  %v2626_v16 = vmul.f32 %v8219_v20, %v3552_v32  ;;  %v3564_v19 = vld [vmem:[%s3826_s7 + $0xcc] sm:$0xff]  ;;  %v3571_v44 = vld [vmem:[%s3826_s7 + $0x124] sm:$0xff] }
 0x1d9   : > { %v2627_v42 = vmul.f32 %v8219_v20, %v3553_v24  ;;  %v8334_v38 = vadd.f32 %v2596_v49, %v8169_v12  ;;  %v8337_v31 = vadd.f32 %v2597_v25, %v8172_v15  ;;  %v8340_v26 = vadd.f32 %v2598_v1, %v8175_v59  ;;  %v3557_v24 = vld [vmem:[%s3826_s7 + $0x7c] sm:$0xff] }
 0x1da   : > { %v8343_v60 = vadd.f32 %v2599_v0, %v8178_v55  ;;  %v8346_v14 = vadd.f32 %v2600_v29, %v8181_v52  ;;  %v8349_v20 = vadd.f32 %v2601_v43, %v8184_v21  ;;  %v8352_v12 = vadd.f32 %v2602_v36, %v8187_v34  ;;  %v3560_v49 = vld [vmem:[%s3826_s7 + $0x9c] sm:$0xff]  ;;  %v3562_v29 = vld [vmem:[%s3826_s7 + $0xb4] sm:$0xff]  ;;  %v3563_v43 = vld [vmem:[%s3826_s7 + $0xc4] sm:$0xff] }
 0x1db   : > { %v8355_v15 = vadd.f32 %v2603_v27, %v8190_v41  ;;  %v8358_v59 = vadd.f32 %v2604_v40, %v8193_v45  ;;  %v8361_v55 = vadd.f32 %v2605_v56, %v8196_v62  ;;  %v8364_v52 = vadd.f32 %v2606_v50, %v8199_v5  ;;  %v8384_v5 = vld [vmem:[%s8628_s1 + $0x18] ss:$0 sm:$0xff]  ;;  %v10028_v36 = vld [vmem:[#allocation119_spill] sm:$0xff]  ;;  %v10032_v27 = vld [vmem:[#allocation121_spill] sm:$0xff] }
 0x1dc   : > { %v8367_v21 = vadd.f32 %v2607_v4, %v8202_v8  ;;  %v8370_v34 = vadd.f32 %v2608_v10, %v8205_v48  ;;  %v8373_v41 = vadd.f32 %v2609_v13, %v8208_v22  ;;  %v8376_v45 = vadd.f32 %v2610_v57, %v8211_v6  ;;  %v3555_v8 = vld [vmem:[%s3826_s7 + $0x64] sm:$0xff]  ;;  %v3556_v48 = vld [vmem:[%s3826_s7 + $0x6c] sm:$0xff]  ;;  %v3559_v4 = vld [vmem:[%s3826_s7 + $0x94] sm:$0xff] }
 0x1dd   : > { %v8379_v62 = vadd.f32 %v2611_v63, %v8214_v17  ;;  %v8390_v22 = vadd.f32 %v2612_v47, %v8225_v58  ;;  %v8393_v6 = vadd.f32 %v2613_v11, %v8228_v51  ;;  %v8396_v17 = vadd.f32 %v2614_v54, %v8231_v28  ;;  %v3558_v57 = vld [vmem:[%s3826_s7 + $0x84] sm:$0xff]  ;;  %v3565_v10 = vld [vmem:[%s3826_s7 + $0xdc] sm:$0xff]  ;;  %v10036_v63 = vld [vmem:[#allocation127_spill] sm:$0xff] }
 0x1de   : > { %v8399_v32 = vadd.f32 %v2615_v3, %v8234_v18  ;;  %v8405_v25 = vadd.f32 %v2616_v61, %v8240_v53  ;;  %v8408_v58 = vadd.f32 %v2617_v33, %v8243_v9  ;;  %v10024_v51 = vld [vmem:[#allocation113_spill] sm:$0xff]  ;;  %v10026_v28 = vld [vmem:[#allocation114_spill] sm:$0xff]  ;;  %v8420_v53 = vadd.f32 %v2620_v39, %v10028_v36  ;;  %v10030_v61 = vld [vmem:[#allocation120_spill] sm:$0xff] }
 0x1df   : > { %v8411_v1 = vadd.f32 %v2618_v46, %v10024_v51  ;;  %v8414_v0 = vadd.f32 %v2619_v7, %v10026_v28  ;;  %v3561_v18 = vld [vmem:[%s3826_s7 + $0xac] sm:$0xff]  ;;  %v8423_v9 = vadd.f32 %v2621_v30, %v10030_v61  ;;  %v8426_v40 = vadd.f32 %v2622_v2, %v10032_v27  ;;  %v3566_v13 = vld [vmem:[%s3826_s7 + $0xe4] sm:$0xff]  ;;  %v10038_v11 = vld [vmem:[#allocation128_spill] sm:$0xff] }
 0x1e0   : > { %10023 = vst [vmem:[#allocation131_spill] sm:$0xff] %v8408_v58  ;;  %10029 = vst [vmem:[#allocation35_spill] sm:$0xff] %v8420_v53  ;;  %v10034_v56 = vld [vmem:[#allocation126_spill] sm:$0xff]  ;;  %v8435_v47 = vadd.f32 %v2624_v37, %v10036_v63  ;;  %v8438_v54 = vadd.f32 %v2625_v35, %v10038_v11  ;;  %v10040_v3 = vld [vmem:[#allocation129_spill] sm:$0xff]  ;;  %v2697_v51 = vmul.f32 %v8384_v5, %v3555_v8 }
 0x1e1   : > { %10025 = vst [vmem:[#allocation132_spill] sm:$0xff] %v8411_v1  ;;  %10027 = vst [vmem:[#allocation133_spill] sm:$0xff] %v8414_v0  ;;  %v8429_v50 = vadd.f32 %v2623_v23, %v10034_v56  ;;  %v8441_v33 = vadd.f32 %v2626_v16, %v10040_v3  ;;  %v10042_v46 = vld [vmem:[#allocation130_spill] sm:$0xff]  ;;  %v3567_v39 = vld [vmem:[%s3826_s7 + $0xf4] sm:$0xff]  ;;  %v2698_v35 = vmul.f32 %v8384_v5, %v3556_v48 }
 0x1e2   : > { %10031 = vst [vmem:[#allocation8_spill] sm:$0xff] %v8423_v9  ;;  %10033 = vst [vmem:[#allocation12_spill] sm:$0xff] %v8426_v40  ;;  %v8444_v7 = vadd.f32 %v2627_v42, %v10042_v46  ;;  %v3568_v30 = vld [vmem:[%s3826_s7 + $0xfc] sm:$0xff]  ;;  %v3569_v2 = vld [vmem:[%s3826_s7 + $0x10c] sm:$0xff]  ;;  %v2699_v28 = vmul.f32 %v8384_v5, %v3557_v24  ;;  %v2700_v16 = vmul.f32 %v8384_v5, %v3558_v57 }
 0x1e3   : > { %10035 = vst [vmem:[#allocation164_spill] sm:$0xff] %v8429_v50  ;;  %10037 = vst [vmem:[#allocation165_spill] sm:$0xff] %v8435_v47  ;;  %v3570_v23 = vld [vmem:[%s3826_s7 + $0x114] sm:$0xff]  ;;  %v3572_v37 = vld [vmem:[%s3826_s7 + $0x12c] sm:$0xff]  ;;  %v2701_v27 = vmul.f32 %v8384_v5, %v3559_v4  ;;  %v2702_v56 = vmul.f32 %v8384_v5, %v3560_v49  ;;  %v2703_v63 = vmul.f32 %v8384_v5, %v3561_v18 }
 0x1e4   : > { %10039 = vst [vmem:[#allocation43_spill] sm:$0xff] %v8438_v54  ;;  %10041 = vst [vmem:[#allocation44_spill] sm:$0xff] %v8441_v33  ;;  %v3573_v42 = vld [vmem:[%s3826_s7 + $0x13c] sm:$0xff]  ;;  %v3574_v36 = vld [vmem:[%s3826_s7 + $0x144] sm:$0xff]  ;;  %v2704_v8 = vmul.f32 %v8384_v5, %v3562_v29  ;;  %v2705_v11 = vmul.f32 %v8384_v5, %v3563_v43  ;;  %v2706_v3 = vmul.f32 %v8384_v5, %v3564_v19 }
 0x1e5   : > { %10043 = vst [vmem:[#allocation48_spill] sm:$0xff] %v8444_v7  ;;  %v3575_v61 = vld [vmem:[%s3826_s7 + $0x154] sm:$0xff]  ;;  %v3576_v48 = vld [vmem:[%s3826_s7 + $0x15c] sm:$0xff]  ;;  %v3577_v24 = vld [vmem:[%s3826_s7 + $0x16c] sm:$0xff]  ;;  %v2707_v46 = vmul.f32 %v8384_v5, %v3565_v10  ;;  %v2708_v4 = vmul.f32 %v8384_v5, %v3566_v13  ;;  %v2709_v33 = vmul.f32 %v8384_v5, %v3567_v39  ;;  %v2710_v18 = vmul.f32 %v8384_v5, %v3568_v30 }
 0x1e6   : > { %v3578_v57 = vld [vmem:[%s3826_s7 + $0x174] sm:$0xff]  ;;  %v3581_v7 = vld [vmem:[%s3826_s7 + $0x19c] sm:$0xff]  ;;  %v3582_v49 = vld [vmem:[%s3826_s7 + $0x1a4] sm:$0xff]  ;;  %v2711_v29 = vmul.f32 %v8384_v5, %v3569_v2  ;;  %v2712_v54 = vmul.f32 %v8384_v5, %v3570_v23  ;;  %v2713_v19 = vmul.f32 %v8384_v5, %v3571_v44  ;;  %v2714_v10 = vmul.f32 %v8384_v5, %v3572_v37 }
 0x1e7   : > { %v3585_v43 = vld [vmem:[%s3826_s7 + $0x1cc] sm:$0xff]  ;;  %v3586_v47 = vld [vmem:[%s3826_s7 + $0x1d4] sm:$0xff]  ;;  %v2715_v13 = vmul.f32 %v8384_v5, %v3573_v42  ;;  %v2716_v50 = vmul.f32 %v8384_v5, %v3574_v36  ;;  %v2717_v39 = vmul.f32 %v8384_v5, %v3575_v61  ;;  %v2718_v30 = vmul.f32 %v8384_v5, %v3576_v48  ;;  %v10044_v40 = vld [vmem:[#allocation101_spill] sm:$0xff]  ;;  %s8516_s7 = scalar_lea.vmem [#allocation2], %s8479_s11 }
 0x1e8   : > { %v2719_v2 = vmul.f32 %v8384_v5, %v3577_v24  ;;  %v2720_v23 = vmul.f32 %v8384_v5, %v3578_v57  ;;  %v2721_v9 = vmul.f32 %v8384_v5, %v10044_v40  ;;  %v10045_v53 = vld [vmem:[#allocation102_spill] sm:$0xff]  ;;  %v2723_v37 = vmul.f32 %v8384_v5, %v3581_v7  ;;  %v10046_v0 = vld [vmem:[#allocation103_spill] sm:$0xff]  ;;  %s2808_s19 = sshll.u32 %s8516_s7, 4  ;;  %s8561_s19 = int_to_ptr.vmem [resolvable:$true] %s2808_s19 }
 0x1e9   : > { %v2722_v44 = vmul.f32 %v8384_v5, %v10045_v53  ;;  %v2724_v42 = vmul.f32 %v8384_v5, %v3582_v49  ;;  %v2725_v36 = vmul.f32 %v8384_v5, %v10046_v0  ;;  %v10047_v61 = vld [vmem:[#allocation22_spill] sm:$0xff]  ;;  %v2727_v24 = vmul.f32 %v8384_v5, %v3585_v43  ;;  %s3653_s27 = scalar_lea.vmem %s8561_s19, 4096  ;;  %p3660_p1 = scmp.lt.s32.totalorder %s8561_s19, %s3658_s29 }
 0x1ea   : > { %v2726_v48 = vmul.f32 %v8384_v5, %v10047_v61  ;;  %v2728_v57 = vmul.f32 %v8384_v5, %v3586_v47  ;;  %v2729_v40 = vadd.f32 %v2697_v51, %v8334_v38  ;;  %v2730_v1 = vadd.f32 %v2698_v35, %v8337_v31  ;;  %p3654_p12 = scmp.ne.s32.totalorder %s8561_s19, %s3653_s27  ;;  %p3661_p2 = scmp.lt.s32.totalorder %s3659_s30, %s3653_s27 }
 0x1eb   : > { %v2731_v53 = vadd.f32 %v2699_v28, %v8340_v26  ;;  %v2732_v7 = vadd.f32 %v2700_v16, %v8343_v60  ;;  %v2733_v49 = vadd.f32 %v2701_v27, %v8346_v14  ;;  %v2734_v0 = vadd.f32 %v2702_v56, %v8349_v20  ;;  %v10057_v35 = vld [vmem:[#allocation44_spill] sm:$0xff] }
 0x1ec   : > { %v2735_v58 = vadd.f32 %v2703_v63, %v8352_v12  ;;  %v2736_v61 = vadd.f32 %v2704_v8, %v8355_v15  ;;  %v2737_v43 = vadd.f32 %v2705_v11, %v8358_v59  ;;  %v2738_v5 = vadd.f32 %v2706_v3, %v8361_v55  ;;  %2761 = vst [vmem:[%s8516_s7] sm:$0xff] %v2729_v40  ;;  %v10058_v16 = vld [vmem:[#allocation48_spill] sm:$0xff]  ;;  %p3655_p13 = pnand %p3654_p12, %p3796_p4  ;;  %p3662_p3 = por %p3661_p2, %p3660_p1 }
 0x1ed   : > { %v2739_v38 = vadd.f32 %v2707_v46, %v8364_v52  ;;  %v2740_v31 = vadd.f32 %v2708_v4, %v8367_v21  ;;  %2762 = vst [vmem:[%s8516_s7 + $0x8] sm:$0xff] %v2730_v1  ;;  %2763 = vst [vmem:[%s8516_s7 + $0x10] sm:$0xff] %v2731_v53  ;;  %v2741_v26 = vadd.f32 %v2709_v33, %v8370_v34  ;;  %v10048_v21 = vld [vmem:[#allocation131_spill] sm:$0xff]  ;;  %v10053_v1 = vld [vmem:[#allocation12_spill] sm:$0xff] }
 0x1ee   : > { %2764 = vst [vmem:[%s8516_s7 + $0x18] sm:$0xff] %v2732_v7  ;;  %v2742_v60 = vadd.f32 %v2710_v18, %v8373_v41  ;;  %v2743_v14 = vadd.f32 %v2711_v29, %v8376_v45  ;;  %v2744_v20 = vadd.f32 %v2712_v54, %v8379_v62  ;;  %2765 = vst [vmem:[%s8516_s7 + $0x20] sm:$0xff] %v2733_v49  ;;  %v10049_v41 = vld [vmem:[#allocation132_spill] sm:$0xff]  ;;  %v10050_v62 = vld [vmem:[#allocation133_spill] sm:$0xff]  ;;  %p3656_p0 = pneg %p3655_p13 }
 0x1ef   : > { %2766 = vst [vmem:[%s8516_s7 + $0x28] sm:$0xff] %v2734_v0  ;;  %2767 = vst [vmem:[%s8516_s7 + $0x30] sm:$0xff] %v2735_v58  ;;  %v2745_v12 = vadd.f32 %v2713_v19, %v8390_v22  ;;  %v2746_v15 = vadd.f32 %v2714_v10, %v8393_v6  ;;  %v2747_v59 = vadd.f32 %v2715_v13, %v8396_v17  ;;  %v10051_v6 = vld [vmem:[#allocation35_spill] sm:$0xff] }
 0x1f0   : > { %2768 = vst [vmem:[%s8516_s7 + $0x38] sm:$0xff] %v2736_v61  ;;  %v2748_v55 = vadd.f32 %v2716_v50, %v8399_v32  ;;  %2769 = vst [vmem:[%s8516_s7 + $0x40] sm:$0xff] %v2737_v43  ;;  %v2749_v52 = vadd.f32 %v2717_v39, %v8405_v25  ;;  %v2750_v34 = vadd.f32 %v2718_v30, %v10048_v21  ;;  %v10052_v32 = vld [vmem:[#allocation8_spill] sm:$0xff]  ;;  %v10056_v33 = vld [vmem:[#allocation43_spill] sm:$0xff]  ;;  %p3663_p5 = pnand %p3662_p3, %p3656_p0 }
 0x1f1   : > { %2770 = vst [vmem:[%s8516_s7 + $0x48] sm:$0xff] %v2738_v5  ;;  %2771 = vst [vmem:[%s8516_s7 + $0x50] sm:$0xff] %v2739_v38  ;;  %v2751_v45 = vadd.f32 %v2719_v2, %v10049_v41  ;;  %v2752_v22 = vadd.f32 %v2720_v23, %v10050_v62  ;;  %v2753_v17 = vadd.f32 %v2721_v9, %v10051_v6  ;;  %v10054_v50 = vld [vmem:[#allocation164_spill] sm:$0xff]  ;;  %v10055_v9 = vld [vmem:[#allocation165_spill] sm:$0xff] }
 0x1f2   : > { %2772 = vst [vmem:[%s8516_s7 + $0x58] sm:$0xff] %v2740_v31  ;;  %2773 = vst [vmem:[%s8516_s7 + $0x60] sm:$0xff] %v2741_v26  ;;  %v2754_v58 = vadd.f32 %v2722_v44, %v10052_v32  ;;  %v2755_v25 = vadd.f32 %v2723_v37, %v10053_v1  ;;  %v2756_v47 = vadd.f32 %v2724_v42, %v10054_v50 }
 0x1f3   : > { %2774 = vst [vmem:[%s8516_s7 + $0x68] sm:$0xff] %v2742_v60  ;;  %2775 = vst [vmem:[%s8516_s7 + $0x70] sm:$0xff] %v2743_v14  ;;  %v2757_v54 = vadd.f32 %v2725_v36, %v10055_v9  ;;  %v2758_v51 = vadd.f32 %v2726_v48, %v10056_v33  ;;  %v2759_v28 = vadd.f32 %v2727_v24, %v10057_v35 }
 0x1f4   : > { %2776 = vst [vmem:[%s8516_s7 + $0x78] sm:$0xff] %v2744_v20  ;;  %2777 = vst [vmem:[%s8516_s7 + $0x80] sm:$0xff] %v2745_v12  ;;  %v2760_v27 = vadd.f32 %v2728_v57, %v10058_v16 }
 0x1f5   : > { %2778 = vst [vmem:[%s8516_s7 + $0x88] sm:$0xff] %v2746_v15  ;;  %2779 = vst [vmem:[%s8516_s7 + $0x90] sm:$0xff] %v2747_v59 }
 0x1f6   : > { %2780 = vst [vmem:[%s8516_s7 + $0x98] sm:$0xff] %v2748_v55  ;;  %2781 = vst [vmem:[%s8516_s7 + $0xa0] sm:$0xff] %v2749_v52 }
 0x1f7   : > { %2782 = vst [vmem:[%s8516_s7 + $0xa8] sm:$0xff] %v2750_v34  ;;  %2783 = vst [vmem:[%s8516_s7 + $0xb0] sm:$0xff] %v2751_v45 }
 0x1f8   : > { %2784 = vst [vmem:[%s8516_s7 + $0xb8] sm:$0xff] %v2752_v22  ;;  %2785 = vst [vmem:[%s8516_s7 + $0xc0] sm:$0xff] %v2753_v17 }
 0x1f9   : > { %2786 = vst [vmem:[%s8516_s7 + $0xc8] sm:$0xff] %v2754_v58  ;;  %2787 = vst [vmem:[%s8516_s7 + $0xd0] sm:$0xff] %v2755_v25 }
 0x1fa   : > { %2788 = vst [vmem:[%s8516_s7 + $0xd8] sm:$0xff] %v2756_v47  ;;  %2789 = vst [vmem:[%s8516_s7 + $0xe0] sm:$0xff] %v2757_v54 }
 0x1fb   : > { %2790 = vst [vmem:[%s8516_s7 + $0xe8] sm:$0xff] %v2758_v51  ;;  %2791 = vst [vmem:[%s8516_s7 + $0xf0] sm:$0xff] %v2759_v28 }
 0x1fc   : > { %2792 = vst [vmem:[%s8516_s7 + $0xf8] sm:$0xff] %v2760_v27 }
 0x1fd   : > { %3666 = shalt.err (!%p3663_p5)
}
 0x1fe   : > { %s3667_s4 = scalar_lea.hbm %s8559_s23, 4096  ;;  %s3671_s8 = scalar_lea.hbm %s8630_s3, 8192 }
 0x1ff   : > { %p3668_p6 = scmp.ne.s32.totalorder %s8559_s23, %s3667_s4  ;;  %p3672_p10 = scmp.lt.u32.totalorder %s8559_s23, %s8630_s3 }
 0x200   : > { %p3673_p11 = scmp.lt.u32.totalorder %s3671_s8, %s3667_s4  ;;  %p3675_p13 = scmp.lt.u32.totalorder %s3667_s4, %s8559_s23 }
 0x201   : > { %p3669_p7 = pnand %p3668_p6, %p3796_p4 }
 0x202   : > { %p3674_p12 = por %p3673_p11, %p3672_p10 }
 0x203   : > { %p3670_p9 = pneg %p3669_p7 }
 0x204   : > { %p3676_p0 = por %p3675_p13, %p3674_p12 }
 0x206   : > { %p3677_p1 = pnand %p3676_p0, %p3670_p9 }
 0x208   : > { %3680 = shalt.err (!%p3677_p1)
}
 0x209   : > { %s3734_s11 = smov 128   ;;  %s3735_s7 = smov 8  }
 0x20a   : > { %3595 = dma.vmem_to_hbm [thread:$0]  (%p3796_p4), %s8561_s19, 4096, %s8559_s23, %s8581_s26, %s3734_s11, %s3734_s11, %s3735_s7  }
 0x20b PF: > { %p3601_p2 = scmp.ge.s32.totalorder %s3731_s17, 2  ;;  %s2823_s18 = sand.u32 1, %s3711_s12  }
 0x20c   : > { %s2824_s15 = scalar_lea.sflag [#allocation3], %s2823_s18 }
 0x20d   : > { %p3598_p3 = pnand %p3601_p2, %p3803_p8 }
 0x20f   : > { %3706 = dma.done.wait (!%p3598_p3), %s2824_s15, 4096  }
 0x210   : > { %3708 = vsyncadd (!%p3598_p3), %s2824_s15, 4294963200  ;;  %s16_s17 = sadd.s32 1, %s3731_s17   ;;  %s10059_s12 = smov %s3715_s13 }
 0x211   : > { %p13_p5 = scmp.ge.s32.totalorder %s16_s17, 4   ;;  %s10060_s13 = smov %s3719_s14 }
 0x212   : > { %s10061_s14 = smov %s3809_s25  ;;  %s10062_s15 = smov %s3727_s16 }
 0x213   : > { %s10063_s16 = smov %s10065_s20  ;;  %15 = sbr.rel (!%p13_p5) target bundleno = 4 (0x4), region = 77 }
 0x21a   :  { %2829 = vsyncpa [#allocation3], 1 }
 0x21b   :  { %2831 = vsyncpa [#allocation3 + $0x1], 1 }

</bundles_post_ra>
